<compile_context>
chip_gen: v5e
topology: v5e:2x2
jax: 0.10.0
libtpu: 0.0.40
codegen_flags: <defaults>
</compile_context>

<pallas_src>
import math

import jax
import jax.numpy as jnp
from jax import lax
from jax.experimental import pallas as pl
from jax.experimental.pallas import tpu as pltpu


def _make_kernel(n_heads, matmul_dtype=None):
    """Builds the per-grid-step kernel. One step processes Bt batch elements."""

    def kernel(x_ref, route_ref, wq_ref, wk_ref, wv_ref, wo_ref,
               w1_ref, b1_ref, w2_ref, b2_ref, o_ref):
        H = n_heads
        Bt, n_route, N, _ = route_ref.shape
        BN, D = x_ref.shape                      # BN == Bt * N
        K = wq_ref.shape[1] // H
        Kv = wv_ref.shape[1] // H
        E = wo_ref.shape[1]
        n_hidden = w1_ref.shape[0]
        n_aspect = w1_ref.shape[1]               # == H + n_route

        if matmul_dtype is None:
            cast = lambda a: a
        else:
            cast = lambda a: a.astype(matmul_dtype)

        x = x_ref[...]                                            # (Bt*N, D) f32

        # --- all-head Q/K/V projections: three wide (Bt*N, D) @ (D, H*K) matmuls ---
        q_all = jnp.dot(cast(x), cast(wq_ref[...]), preferred_element_type=jnp.float32)
        k_all = jnp.dot(cast(x), cast(wk_ref[...]), preferred_element_type=jnp.float32)
        v_all = jnp.dot(cast(x), cast(wv_ref[...]), preferred_element_type=jnp.float32)
        q3 = q_all.reshape(Bt, N, H * K)
        k3 = k_all.reshape(Bt, N, H * K)
        v3 = v_all.reshape(Bt, N, H * Kv)

        # --- aspect stack: H per-head QK^T compat maps + route-attn maps, (Bt,N,N) ---
        route = route_ref[...]                                    # (Bt, n_route, N, N)
        aspects = []
        for h in range(H):
            qh = q3[:, :, h * K:(h + 1) * K]
            kh = k3[:, :, h * K:(h + 1) * K]
            aspects.append(jnp.einsum('bqk,bnk->bqn', cast(qh), cast(kh),
                                      preferred_element_type=jnp.float32))
        for a in range(n_route):
            aspects.append(route[:, a])                           # (Bt, N, N)

        # --- score_aggr: Linear(n_aspect->n_hidden)+ReLU+Linear(n_hidden->H),
        # pointwise over every (batch, query, key) pair.  SMEM scalar weights are
        # hoisted once; the mixing itself is scalar-weighted VPU combines on the
        # (Bt, N, N) tiles.  (For large Bt*N*N this would become two small MXU
        # matmuls on a lane-flattened aspect stack; at N=8 the relayout costs more
        # than it saves.)
        w1s = [[w1_ref[g, a] for a in range(n_aspect)] for g in range(n_hidden)]
        b1s = [b1_ref[g] for g in range(n_hidden)]
        w2s = [[w2_ref[h, g] for g in range(n_hidden)] for h in range(H)]
        b2s = [b2_ref[h] for h in range(H)]

        hidden = []
        for g in range(n_hidden):
            acc = aspects[0] * w1s[g][0]
            for a in range(1, n_aspect):
                acc = acc + aspects[a] * w1s[g][a]
            hidden.append(jnp.maximum(acc + b1s[g], 0.0))

        logits = []
        for h in range(H):
            acc = hidden[0] * w2s[h][0]
            for g in range(1, n_hidden):
                acc = acc + hidden[g] * w2s[h][g]
            logits.append(acc + b2s[h])

        # --- head-stacked softmax: one max / exp / sum / reciprocal for all heads ---
        logit_stack = jnp.concatenate(logits, axis=0)             # (H*Bt, N, N)
        m = jnp.max(logit_stack, axis=-1, keepdims=True)
        p = jnp.exp(logit_stack - m)
        denom = jnp.sum(p, axis=-1, keepdims=True)
        attn = p * pl.reciprocal(denom, approx=False)             # exact reciprocal

        # --- attention @ V per head, then ONE fused output projection ---
        heads = []
        for h in range(H):
            attn_h = attn[h * Bt:(h + 1) * Bt]                    # (Bt, N, N)
            vh = v3[:, :, h * Kv:(h + 1) * Kv]                    # (Bt, N, Kv)
            heads.append(jnp.einsum('bqn,bnk->bqk', cast(attn_h), cast(vh),
                                    preferred_element_type=jnp.float32))
        heads_cat = jnp.concatenate(heads, axis=-1).reshape(BN, H * Kv)
        out = jnp.dot(cast(heads_cat), cast(wo_ref[...]),
                      preferred_element_type=jnp.float32)         # (Bt*N, E)

        # --- residual + 'layer' normalization per batch element over (node, feature),
        # unbiased variance (matches torch.var default used by the module) ---
        y = (out + x.astype(jnp.float32)).reshape(Bt, N, E)       # D == E
        row_sum = jnp.sum(y, axis=-1, keepdims=True)              # (Bt, N, 1)
        mean = jnp.sum(row_sum, axis=1, keepdims=True) * (1.0 / (N * E))
        c = y - mean
        row_ss = jnp.sum(c * c, axis=-1, keepdims=True)
        var = jnp.sum(row_ss, axis=1, keepdims=True) * (1.0 / (N * E - 1))
        o_ref[...] = (c * lax.rsqrt(var + 1e-5)).reshape(BN, E).astype(o_ref.dtype)

    return kernel


def _pick_block_batch(B, N, D, E, n_route, target_rows=256,
                      vmem_budget_bytes=24 * 1024 * 1024):
    """Largest batch tile Bt dividing B with Bt*N <= target_rows and the
    double-buffered f32 activation blocks within a v7x-safe VMEM budget."""
    best = 1
    for cand in range(1, B + 1):
        if B % cand:
            continue
        rows = cand * N
        blk_bytes = 4 * (rows * D + cand * n_route * N * N + rows * E)
        if rows <= target_rows and 2 * blk_bytes <= vmem_budget_bytes:
            best = cand
    return best


def mha_sublayer(x, W_query, W_key, W_val, W_out, w1, b1, w2, b2, route_attn,
                 *, block_batch=None, matmul_dtype=None):
    """MultiHeadAttentionsubLayer forward (layer-normalization variant).

    x:           (B, N, D)                node embeddings (input1)
    route_attn:  (H*(A-1), B, N, N)       extra compatibility aspects (input2)
    W_query/W_key: (H, D, K); W_val: (H, D, Kv); W_out: (H, Kv, E)
    w1, b1, w2, b2: score_aggr Linear(H*A->2H) / Linear(2H->H) params (torch layout).
    Returns (normalized_out (B, N, E), route_attn).
    """
    B, N, D = x.shape
    H, _, K = W_query.shape
    Kv = W_val.shape[-1]
    E = W_out.shape[-1]
    n_route = route_attn.shape[0]

    bt = block_batch if block_batch is not None else _pick_block_batch(B, N, D, E, n_route)
    assert B % bt == 0, "block_batch must divide the batch size"

    # Head-stacked weights -> per-head projections become single wide matmuls.
    wq_s = jnp.transpose(W_query, (1, 0, 2)).reshape(D, H * K)
    wk_s = jnp.transpose(W_key, (1, 0, 2)).reshape(D, H * K)
    wv_s = jnp.transpose(W_val, (1, 0, 2)).reshape(D, H * Kv)
    wo_s = W_out.reshape(H * W_out.shape[1], E)

    # Flatten (B, N, D) -> (B*N, D) so a Bt-batch block is a contiguous row slab
    # (no in-kernel squeeze).  Transpose route_attn once in XLA so each grid step
    # pulls one contiguous (Bt, n_route, N, N) slab instead of n_route strided rows.
    x2 = x.reshape(B * N, D)
    route_t = jnp.transpose(route_attn, (1, 0, 2, 3))             # (B, n_route, N, N)

    # NOTE(v7x): with larger real batches the grid has >=2 "parallel" steps so both
    # TensorCores are used; at the toy size below a single step minimizes overhead.
    out2 = pl.pallas_call(
        _make_kernel(H, matmul_dtype),
        out_shape=jax.ShapeDtypeStruct((B * N, E), x.dtype),
        grid_spec=pltpu.PrefetchScalarGridSpec(
            num_scalar_prefetch=0,
            grid=(B // bt,),
            in_specs=[
                pl.BlockSpec((bt * N, D), lambda b: (b, 0)),               # x rows
                pl.BlockSpec((bt, n_route, N, N), lambda b: (b, 0, 0, 0)), # route slab
                pl.BlockSpec(wq_s.shape, lambda b: (0, 0)),                # stacked W_query
                pl.BlockSpec(wk_s.shape, lambda b: (0, 0)),                # stacked W_key
                pl.BlockSpec(wv_s.shape, lambda b: (0, 0)),                # stacked W_val
                pl.BlockSpec(wo_s.shape, lambda b: (0, 0)),                # stacked W_out
                pl.BlockSpec(memory_space=pltpu.MemorySpace.SMEM),         # score_aggr W1
                pl.BlockSpec(memory_space=pltpu.MemorySpace.SMEM),         # score_aggr b1
                pl.BlockSpec(memory_space=pltpu.MemorySpace.SMEM),         # score_aggr W2
                pl.BlockSpec(memory_space=pltpu.MemorySpace.SMEM),         # score_aggr b2
            ],
            out_specs=pl.BlockSpec((bt * N, E), lambda b: (b, 0)),
        ),
        compiler_params=pltpu.CompilerParams(
            dimension_semantics=("parallel",),
        ),
    )(x2, route_t, wq_s, wk_s, wv_s, wo_s, w1, b1, w2, b2)

    return out2.reshape(B, N, E), route_attn


def _reference(x, W_query, W_key, W_val, W_out, w1, b1, w2, b2, route_attn):
    """Pure-JAX mirror of the PyTorch MultiHeadAttentionsubLayer forward."""
    B, N, D = x.shape
    H = W_query.shape[0]
    Kv = W_val.shape[-1]
    E = W_out.shape[-1]
    Q = jnp.einsum('bnd,hdk->hbnk', x, W_query)
    Kp = jnp.einsum('bnd,hdk->hbnk', x, W_key)
    V = jnp.einsum('bnd,hdk->hbnk', x, W_val)
    compat = jnp.einsum('hbqk,hbnk->hbqn', Q, Kp)                  # (H, B, N, N)
    compat = jnp.concatenate([compat, route_attn], axis=0)         # (2H, B, N, N)
    mixed = jnp.transpose(compat, (1, 2, 3, 0))                    # (B, N, N, 2H)
    hid = jax.nn.relu(mixed @ w1.T + b1)
    logits = hid @ w2.T + b2                                       # (B, N, N, H)
    attn = jax.nn.softmax(jnp.transpose(logits, (3, 0, 1, 2)), axis=-1)   # (H, B, N, N)
    heads = jnp.einsum('hbqn,hbnk->hbqk', attn, V)                 # (H, B, N, Kv)
    heads_cat = jnp.transpose(heads, (1, 2, 0, 3)).reshape(B * N, H * Kv)
    out = (heads_cat @ W_out.reshape(H * Kv, E)).reshape(B, N, E)
    y = out + x
    mean = y.mean(axis=(1, 2), keepdims=True)
    var = y.var(axis=(1, 2), ddof=1, keepdims=True)                # unbiased, like torch
    return (y - mean) / jnp.sqrt(var + 1e-5), route_attn


if __name__ == "__main__":
    # Module hyperparameters (consistent with MultiHeadAttentionsubLayer defaults).
    n_heads = 4
    embed_dim = 32
    input_dim = embed_dim
    number_aspect = 2
    val_dim = embed_dim // n_heads     # 8
    key_dim = val_dim                  # 8

    batch_size = 2
    graph_size = 8

    key = jax.random.PRNGKey(0)
    keys = jax.random.split(key, 10)

    def init_uniform(k, shape):
        stdv = 1.0 / math.sqrt(shape[-1])
        return jax.random.uniform(k, shape, jnp.float32, -stdv, stdv)

    W_query = init_uniform(keys[0], (n_heads, input_dim, key_dim))
    W_key = init_uniform(keys[1], (n_heads, input_dim, key_dim))
    W_val = init_uniform(keys[2], (n_heads, input_dim, val_dim))
    W_out = init_uniform(keys[3], (n_heads, key_dim, embed_dim))
    # score_aggr: Linear(n_heads*number_aspect -> 2*n_heads), ReLU, Linear(2*n_heads -> n_heads)
    w1 = init_uniform(keys[4], (2 * n_heads, n_heads * number_aspect))
    b1 = init_uniform(keys[5], (2 * n_heads,))
    w2 = init_uniform(keys[6], (n_heads, 2 * n_heads))
    b2 = init_uniform(keys[7], (n_heads,))

    x = jax.random.normal(keys[8], (batch_size, graph_size, input_dim), jnp.float32)
    route_attn = jax.random.normal(
        keys[9],
        (n_heads * (number_aspect - 1), batch_size, graph_size, graph_size),
        jnp.float32)

    out, out_route = mha_sublayer(x, W_query, W_key, W_val, W_out,
                                  w1, b1, w2, b2, route_attn)
    out = jax.block_until_ready(out)

    ref_out, _ = _reference(x, W_query, W_key, W_val, W_out, w1, b1, w2, b2, route_attn)
    assert out.shape == (batch_size, graph_size, embed_dim)
    assert out_route.shape == route_attn.shape
    assert jnp.allclose(out, ref_out, atol=5e-3, rtol=5e-3), "mismatch vs reference"

    print("KERNEL_OK")
</pallas_src>

<mosaic_0001>
module attributes {stable_mosaic.version = 11 : i64} {
  func.func @kernel(%arg0: i32, %arg1: memref<16x32xf32, #tpu.memory_space<vmem>>, %arg2: memref<2x4x8x8xf32, #tpu.memory_space<vmem>>, %arg3: memref<32x32xf32, #tpu.memory_space<vmem>>, %arg4: memref<32x32xf32, #tpu.memory_space<vmem>>, %arg5: memref<32x32xf32, #tpu.memory_space<vmem>>, %arg6: memref<32x32xf32, #tpu.memory_space<vmem>>, %arg7: memref<8x8xf32, #tpu.memory_space<smem>>, %arg8: memref<8xf32, #tpu.memory_space<smem>>, %arg9: memref<4x8xf32, #tpu.memory_space<smem>>, %arg10: memref<4xf32, #tpu.memory_space<smem>>, %arg11: memref<16x32xf32, #tpu.memory_space<vmem>>) attributes {dimension_semantics = [#tpu.dimension_semantics<parallel>], iteration_bounds = array<i64: 1>, scalar_prefetch = 0 : i64, scratch_operands = 0 : i64, tpu.core_type = #tpu.core_type<tc>, window_params = [{transform_indices = @transform_0, window_bounds = array<i64: 16, 32>}, {transform_indices = @transform_1, window_bounds = array<i64: 2, 4, 8, 8>}, {pipeline_mode = #tpu.pipeline_mode<synchronous>, transform_indices = @transform_2, window_bounds = array<i64: 32, 32>}, {pipeline_mode = #tpu.pipeline_mode<synchronous>, transform_indices = @transform_3, window_bounds = array<i64: 32, 32>}, {pipeline_mode = #tpu.pipeline_mode<synchronous>, transform_indices = @transform_4, window_bounds = array<i64: 32, 32>}, {pipeline_mode = #tpu.pipeline_mode<synchronous>, transform_indices = @transform_5, window_bounds = array<i64: 32, 32>}, {transform_indices = @transform_6, window_bounds = array<i64: 8, 8>}, {transform_indices = @transform_7, window_bounds = array<i64: 8>}, {transform_indices = @transform_8, window_bounds = array<i64: 4, 8>}, {transform_indices = @transform_9, window_bounds = array<i64: 4>}, {transform_indices = @transform_10, window_bounds = array<i64: 16, 32>}]} {
    %c0 = arith.constant 0 : index
    %c0_0 = arith.constant 0 : index
    %0 = vector.load %arg1[%c0, %c0_0] : memref<16x32xf32, #tpu.memory_space<vmem>>, vector<16x32xf32>
    %c0_1 = arith.constant 0 : index
    %c0_2 = arith.constant 0 : index
    %1 = vector.load %arg3[%c0_1, %c0_2] : memref<32x32xf32, #tpu.memory_space<vmem>>, vector<32x32xf32>
    %cst = arith.constant dense<0.000000e+00> : vector<16x32xf32>
    %2 = tpu.matmul %0, %1, %cst {dimension_numbers = #tpu.dot_dimension_numbers<[1], [0], [0], [1], [0, 0, 1, 1], [], []>} : vector<16x32xf32>, vector<32x32xf32>, vector<16x32xf32> -> vector<16x32xf32>
    %c0_3 = arith.constant 0 : index
    %c0_4 = arith.constant 0 : index
    %3 = vector.load %arg4[%c0_3, %c0_4] : memref<32x32xf32, #tpu.memory_space<vmem>>, vector<32x32xf32>
    %cst_5 = arith.constant dense<0.000000e+00> : vector<16x32xf32>
    %4 = tpu.matmul %0, %3, %cst_5 {dimension_numbers = #tpu.dot_dimension_numbers<[1], [0], [0], [1], [0, 0, 1, 1], [], []>} : vector<16x32xf32>, vector<32x32xf32>, vector<16x32xf32> -> vector<16x32xf32>
    %c0_6 = arith.constant 0 : index
    %c0_7 = arith.constant 0 : index
    %5 = vector.load %arg5[%c0_6, %c0_7] : memref<32x32xf32, #tpu.memory_space<vmem>>, vector<32x32xf32>
    %cst_8 = arith.constant dense<0.000000e+00> : vector<16x32xf32>
    %6 = tpu.matmul %0, %5, %cst_8 {dimension_numbers = #tpu.dot_dimension_numbers<[1], [0], [0], [1], [0, 0, 1, 1], [], []>} : vector<16x32xf32>, vector<32x32xf32>, vector<16x32xf32> -> vector<16x32xf32>
    %7 = vector.shape_cast %2 : vector<16x32xf32> to vector<2x8x32xf32>
    %8 = vector.shape_cast %4 : vector<16x32xf32> to vector<2x8x32xf32>
    %9 = vector.shape_cast %6 : vector<16x32xf32> to vector<2x8x32xf32>
    %c0_9 = arith.constant 0 : index
    %c0_10 = arith.constant 0 : index
    %c0_11 = arith.constant 0 : index
    %c0_12 = arith.constant 0 : index
    %10 = vector.load %arg2[%c0_9, %c0_10, %c0_11, %c0_12] : memref<2x4x8x8xf32, #tpu.memory_space<vmem>>, vector<2x4x8x8xf32>
    %11 = vector.extract_strided_slice %7 {offsets = [0, 0, 0], sizes = [2, 8, 8], strides = [1, 1, 1]} : vector<2x8x32xf32> to vector<2x8x8xf32>
    %12 = vector.extract_strided_slice %8 {offsets = [0, 0, 0], sizes = [2, 8, 8], strides = [1, 1, 1]} : vector<2x8x32xf32> to vector<2x8x8xf32>
    "tpu.trace_start"() <{level = 10 : i32, message = "bqk,bnk->bqn"}> : () -> ()
    %cst_13 = arith.constant dense<0.000000e+00> : vector<2x8x8xf32>
    %13 = tpu.matmul %11, %12, %cst_13 {dimension_numbers = #tpu.dot_dimension_numbers<[2], [2], [1], [1], [0, 0, 0, 1, 1, 1], [0], [0]>} : vector<2x8x8xf32>, vector<2x8x8xf32>, vector<2x8x8xf32> -> vector<2x8x8xf32>
    "tpu.trace_stop"() : () -> ()
    %14 = vector.extract_strided_slice %7 {offsets = [0, 0, 8], sizes = [2, 8, 8], strides = [1, 1, 1]} : vector<2x8x32xf32> to vector<2x8x8xf32>
    %15 = vector.extract_strided_slice %8 {offsets = [0, 0, 8], sizes = [2, 8, 8], strides = [1, 1, 1]} : vector<2x8x32xf32> to vector<2x8x8xf32>
    "tpu.trace_start"() <{level = 10 : i32, message = "bqk,bnk->bqn"}> : () -> ()
    %cst_14 = arith.constant dense<0.000000e+00> : vector<2x8x8xf32>
    %16 = tpu.matmul %14, %15, %cst_14 {dimension_numbers = #tpu.dot_dimension_numbers<[2], [2], [1], [1], [0, 0, 0, 1, 1, 1], [0], [0]>} : vector<2x8x8xf32>, vector<2x8x8xf32>, vector<2x8x8xf32> -> vector<2x8x8xf32>
    "tpu.trace_stop"() : () -> ()
    %17 = vector.extract_strided_slice %7 {offsets = [0, 0, 16], sizes = [2, 8, 8], strides = [1, 1, 1]} : vector<2x8x32xf32> to vector<2x8x8xf32>
    %18 = vector.extract_strided_slice %8 {offsets = [0, 0, 16], sizes = [2, 8, 8], strides = [1, 1, 1]} : vector<2x8x32xf32> to vector<2x8x8xf32>
    "tpu.trace_start"() <{level = 10 : i32, message = "bqk,bnk->bqn"}> : () -> ()
    %cst_15 = arith.constant dense<0.000000e+00> : vector<2x8x8xf32>
    %19 = tpu.matmul %17, %18, %cst_15 {dimension_numbers = #tpu.dot_dimension_numbers<[2], [2], [1], [1], [0, 0, 0, 1, 1, 1], [0], [0]>} : vector<2x8x8xf32>, vector<2x8x8xf32>, vector<2x8x8xf32> -> vector<2x8x8xf32>
    "tpu.trace_stop"() : () -> ()
    %20 = vector.extract_strided_slice %7 {offsets = [0, 0, 24], sizes = [2, 8, 8], strides = [1, 1, 1]} : vector<2x8x32xf32> to vector<2x8x8xf32>
    %21 = vector.extract_strided_slice %8 {offsets = [0, 0, 24], sizes = [2, 8, 8], strides = [1, 1, 1]} : vector<2x8x32xf32> to vector<2x8x8xf32>
    "tpu.trace_start"() <{level = 10 : i32, message = "bqk,bnk->bqn"}> : () -> ()
    %cst_16 = arith.constant dense<0.000000e+00> : vector<2x8x8xf32>
    %22 = tpu.matmul %20, %21, %cst_16 {dimension_numbers = #tpu.dot_dimension_numbers<[2], [2], [1], [1], [0, 0, 0, 1, 1, 1], [0], [0]>} : vector<2x8x8xf32>, vector<2x8x8xf32>, vector<2x8x8xf32> -> vector<2x8x8xf32>
    "tpu.trace_stop"() : () -> ()
    %23 = vector.extract_strided_slice %10 {offsets = [0, 0, 0, 0], sizes = [2, 1, 8, 8], strides = [1, 1, 1, 1]} : vector<2x4x8x8xf32> to vector<2x1x8x8xf32>
    %24 = vector.shape_cast %23 : vector<2x1x8x8xf32> to vector<2x8x8xf32>
    %25 = vector.extract_strided_slice %10 {offsets = [0, 1, 0, 0], sizes = [2, 1, 8, 8], strides = [1, 1, 1, 1]} : vector<2x4x8x8xf32> to vector<2x1x8x8xf32>
    %26 = vector.shape_cast %25 : vector<2x1x8x8xf32> to vector<2x8x8xf32>
    %27 = vector.extract_strided_slice %10 {offsets = [0, 2, 0, 0], sizes = [2, 1, 8, 8], strides = [1, 1, 1, 1]} : vector<2x4x8x8xf32> to vector<2x1x8x8xf32>
    %28 = vector.shape_cast %27 : vector<2x1x8x8xf32> to vector<2x8x8xf32>
    %29 = vector.extract_strided_slice %10 {offsets = [0, 3, 0, 0], sizes = [2, 1, 8, 8], strides = [1, 1, 1, 1]} : vector<2x4x8x8xf32> to vector<2x1x8x8xf32>
    %30 = vector.shape_cast %29 : vector<2x1x8x8xf32> to vector<2x8x8xf32>
    %c0_17 = arith.constant 0 : index
    %c0_18 = arith.constant 0 : index
    %31 = memref.load %arg7[%c0_17, %c0_18] : memref<8x8xf32, #tpu.memory_space<smem>>
    %c0_19 = arith.constant 0 : index
    %c1 = arith.constant 1 : index
    %32 = memref.load %arg7[%c0_19, %c1] : memref<8x8xf32, #tpu.memory_space<smem>>
    %c0_20 = arith.constant 0 : index
    %c2 = arith.constant 2 : index
    %33 = memref.load %arg7[%c0_20, %c2] : memref<8x8xf32, #tpu.memory_space<smem>>
    %c0_21 = arith.constant 0 : index
    %c3 = arith.constant 3 : index
    %34 = memref.load %arg7[%c0_21, %c3] : memref<8x8xf32, #tpu.memory_space<smem>>
    %c0_22 = arith.constant 0 : index
    %c4 = arith.constant 4 : index
    %35 = memref.load %arg7[%c0_22, %c4] : memref<8x8xf32, #tpu.memory_space<smem>>
    %c0_23 = arith.constant 0 : index
    %c5 = arith.constant 5 : index
    %36 = memref.load %arg7[%c0_23, %c5] : memref<8x8xf32, #tpu.memory_space<smem>>
    %c0_24 = arith.constant 0 : index
    %c6 = arith.constant 6 : index
    %37 = memref.load %arg7[%c0_24, %c6] : memref<8x8xf32, #tpu.memory_space<smem>>
    %c0_25 = arith.constant 0 : index
    %c7 = arith.constant 7 : index
    %38 = memref.load %arg7[%c0_25, %c7] : memref<8x8xf32, #tpu.memory_space<smem>>
    %c1_26 = arith.constant 1 : index
    %c0_27 = arith.constant 0 : index
    %39 = memref.load %arg7[%c1_26, %c0_27] : memref<8x8xf32, #tpu.memory_space<smem>>
    %c1_28 = arith.constant 1 : index
    %c1_29 = arith.constant 1 : index
    %40 = memref.load %arg7[%c1_28, %c1_29] : memref<8x8xf32, #tpu.memory_space<smem>>
    %c1_30 = arith.constant 1 : index
    %c2_31 = arith.constant 2 : index
    %41 = memref.load %arg7[%c1_30, %c2_31] : memref<8x8xf32, #tpu.memory_space<smem>>
    %c1_32 = arith.constant 1 : index
    %c3_33 = arith.constant 3 : index
    %42 = memref.load %arg7[%c1_32, %c3_33] : memref<8x8xf32, #tpu.memory_space<smem>>
    %c1_34 = arith.constant 1 : index
    %c4_35 = arith.constant 4 : index
    %43 = memref.load %arg7[%c1_34, %c4_35] : memref<8x8xf32, #tpu.memory_space<smem>>
    %c1_36 = arith.constant 1 : index
    %c5_37 = arith.constant 5 : index
    %44 = memref.load %arg7[%c1_36, %c5_37] : memref<8x8xf32, #tpu.memory_space<smem>>
    %c1_38 = arith.constant 1 : index
    %c6_39 = arith.constant 6 : index
    %45 = memref.load %arg7[%c1_38, %c6_39] : memref<8x8xf32, #tpu.memory_space<smem>>
    %c1_40 = arith.constant 1 : index
    %c7_41 = arith.constant 7 : index
    %46 = memref.load %arg7[%c1_40, %c7_41] : memref<8x8xf32, #tpu.memory_space<smem>>
    %c2_42 = arith.constant 2 : index
    %c0_43 = arith.constant 0 : index
    %47 = memref.load %arg7[%c2_42, %c0_43] : memref<8x8xf32, #tpu.memory_space<smem>>
    %c2_44 = arith.constant 2 : index
    %c1_45 = arith.constant 1 : index
    %48 = memref.load %arg7[%c2_44, %c1_45] : memref<8x8xf32, #tpu.memory_space<smem>>
    %c2_46 = arith.constant 2 : index
    %c2_47 = arith.constant 2 : index
    %49 = memref.load %arg7[%c2_46, %c2_47] : memref<8x8xf32, #tpu.memory_space<smem>>
    %c2_48 = arith.constant 2 : index
    %c3_49 = arith.constant 3 : index
    %50 = memref.load %arg7[%c2_48, %c3_49] : memref<8x8xf32, #tpu.memory_space<smem>>
    %c2_50 = arith.constant 2 : index
    %c4_51 = arith.constant 4 : index
    %51 = memref.load %arg7[%c2_50, %c4_51] : memref<8x8xf32, #tpu.memory_space<smem>>
    %c2_52 = arith.constant 2 : index
    %c5_53 = arith.constant 5 : index
    %52 = memref.load %arg7[%c2_52, %c5_53] : memref<8x8xf32, #tpu.memory_space<smem>>
    %c2_54 = arith.constant 2 : index
    %c6_55 = arith.constant 6 : index
    %53 = memref.load %arg7[%c2_54, %c6_55] : memref<8x8xf32, #tpu.memory_space<smem>>
    %c2_56 = arith.constant 2 : index
    %c7_57 = arith.constant 7 : index
    %54 = memref.load %arg7[%c2_56, %c7_57] : memref<8x8xf32, #tpu.memory_space<smem>>
    %c3_58 = arith.constant 3 : index
    %c0_59 = arith.constant 0 : index
    %55 = memref.load %arg7[%c3_58, %c0_59] : memref<8x8xf32, #tpu.memory_space<smem>>
    %c3_60 = arith.constant 3 : index
    %c1_61 = arith.constant 1 : index
    %56 = memref.load %arg7[%c3_60, %c1_61] : memref<8x8xf32, #tpu.memory_space<smem>>
    %c3_62 = arith.constant 3 : index
    %c2_63 = arith.constant 2 : index
    %57 = memref.load %arg7[%c3_62, %c2_63] : memref<8x8xf32, #tpu.memory_space<smem>>
    %c3_64 = arith.constant 3 : index
    %c3_65 = arith.constant 3 : index
    %58 = memref.load %arg7[%c3_64, %c3_65] : memref<8x8xf32, #tpu.memory_space<smem>>
    %c3_66 = arith.constant 3 : index
    %c4_67 = arith.constant 4 : index
    %59 = memref.load %arg7[%c3_66, %c4_67] : memref<8x8xf32, #tpu.memory_space<smem>>
    %c3_68 = arith.constant 3 : index
    %c5_69 = arith.constant 5 : index
    %60 = memref.load %arg7[%c3_68, %c5_69] : memref<8x8xf32, #tpu.memory_space<smem>>
    %c3_70 = arith.constant 3 : index
    %c6_71 = arith.constant 6 : index
    %61 = memref.load %arg7[%c3_70, %c6_71] : memref<8x8xf32, #tpu.memory_space<smem>>
    %c3_72 = arith.constant 3 : index
    %c7_73 = arith.constant 7 : index
    %62 = memref.load %arg7[%c3_72, %c7_73] : memref<8x8xf32, #tpu.memory_space<smem>>
    %c4_74 = arith.constant 4 : index
    %c0_75 = arith.constant 0 : index
    %63 = memref.load %arg7[%c4_74, %c0_75] : memref<8x8xf32, #tpu.memory_space<smem>>
    %c4_76 = arith.constant 4 : index
    %c1_77 = arith.constant 1 : index
    %64 = memref.load %arg7[%c4_76, %c1_77] : memref<8x8xf32, #tpu.memory_space<smem>>
    %c4_78 = arith.constant 4 : index
    %c2_79 = arith.constant 2 : index
    %65 = memref.load %arg7[%c4_78, %c2_79] : memref<8x8xf32, #tpu.memory_space<smem>>
    %c4_80 = arith.constant 4 : index
    %c3_81 = arith.constant 3 : index
    %66 = memref.load %arg7[%c4_80, %c3_81] : memref<8x8xf32, #tpu.memory_space<smem>>
    %c4_82 = arith.constant 4 : index
    %c4_83 = arith.constant 4 : index
    %67 = memref.load %arg7[%c4_82, %c4_83] : memref<8x8xf32, #tpu.memory_space<smem>>
    %c4_84 = arith.constant 4 : index
    %c5_85 = arith.constant 5 : index
    %68 = memref.load %arg7[%c4_84, %c5_85] : memref<8x8xf32, #tpu.memory_space<smem>>
    %c4_86 = arith.constant 4 : index
    %c6_87 = arith.constant 6 : index
    %69 = memref.load %arg7[%c4_86, %c6_87] : memref<8x8xf32, #tpu.memory_space<smem>>
    %c4_88 = arith.constant 4 : index
    %c7_89 = arith.constant 7 : index
    %70 = memref.load %arg7[%c4_88, %c7_89] : memref<8x8xf32, #tpu.memory_space<smem>>
    %c5_90 = arith.constant 5 : index
    %c0_91 = arith.constant 0 : index
    %71 = memref.load %arg7[%c5_90, %c0_91] : memref<8x8xf32, #tpu.memory_space<smem>>
    %c5_92 = arith.constant 5 : index
    %c1_93 = arith.constant 1 : index
    %72 = memref.load %arg7[%c5_92, %c1_93] : memref<8x8xf32, #tpu.memory_space<smem>>
    %c5_94 = arith.constant 5 : index
    %c2_95 = arith.constant 2 : index
    %73 = memref.load %arg7[%c5_94, %c2_95] : memref<8x8xf32, #tpu.memory_space<smem>>
    %c5_96 = arith.constant 5 : index
    %c3_97 = arith.constant 3 : index
    %74 = memref.load %arg7[%c5_96, %c3_97] : memref<8x8xf32, #tpu.memory_space<smem>>
    %c5_98 = arith.constant 5 : index
    %c4_99 = arith.constant 4 : index
    %75 = memref.load %arg7[%c5_98, %c4_99] : memref<8x8xf32, #tpu.memory_space<smem>>
    %c5_100 = arith.constant 5 : index
    %c5_101 = arith.constant 5 : index
    %76 = memref.load %arg7[%c5_100, %c5_101] : memref<8x8xf32, #tpu.memory_space<smem>>
    %c5_102 = arith.constant 5 : index
    %c6_103 = arith.constant 6 : index
    %77 = memref.load %arg7[%c5_102, %c6_103] : memref<8x8xf32, #tpu.memory_space<smem>>
    %c5_104 = arith.constant 5 : index
    %c7_105 = arith.constant 7 : index
    %78 = memref.load %arg7[%c5_104, %c7_105] : memref<8x8xf32, #tpu.memory_space<smem>>
    %c6_106 = arith.constant 6 : index
    %c0_107 = arith.constant 0 : index
    %79 = memref.load %arg7[%c6_106, %c0_107] : memref<8x8xf32, #tpu.memory_space<smem>>
    %c6_108 = arith.constant 6 : index
    %c1_109 = arith.constant 1 : index
    %80 = memref.load %arg7[%c6_108, %c1_109] : memref<8x8xf32, #tpu.memory_space<smem>>
    %c6_110 = arith.constant 6 : index
    %c2_111 = arith.constant 2 : index
    %81 = memref.load %arg7[%c6_110, %c2_111] : memref<8x8xf32, #tpu.memory_space<smem>>
    %c6_112 = arith.constant 6 : index
    %c3_113 = arith.constant 3 : index
    %82 = memref.load %arg7[%c6_112, %c3_113] : memref<8x8xf32, #tpu.memory_space<smem>>
    %c6_114 = arith.constant 6 : index
    %c4_115 = arith.constant 4 : index
    %83 = memref.load %arg7[%c6_114, %c4_115] : memref<8x8xf32, #tpu.memory_space<smem>>
    %c6_116 = arith.constant 6 : index
    %c5_117 = arith.constant 5 : index
    %84 = memref.load %arg7[%c6_116, %c5_117] : memref<8x8xf32, #tpu.memory_space<smem>>
    %c6_118 = arith.constant 6 : index
    %c6_119 = arith.constant 6 : index
    %85 = memref.load %arg7[%c6_118, %c6_119] : memref<8x8xf32, #tpu.memory_space<smem>>
    %c6_120 = arith.constant 6 : index
    %c7_121 = arith.constant 7 : index
    %86 = memref.load %arg7[%c6_120, %c7_121] : memref<8x8xf32, #tpu.memory_space<smem>>
    %c7_122 = arith.constant 7 : index
    %c0_123 = arith.constant 0 : index
    %87 = memref.load %arg7[%c7_122, %c0_123] : memref<8x8xf32, #tpu.memory_space<smem>>
    %c7_124 = arith.constant 7 : index
    %c1_125 = arith.constant 1 : index
    %88 = memref.load %arg7[%c7_124, %c1_125] : memref<8x8xf32, #tpu.memory_space<smem>>
    %c7_126 = arith.constant 7 : index
    %c2_127 = arith.constant 2 : index
    %89 = memref.load %arg7[%c7_126, %c2_127] : memref<8x8xf32, #tpu.memory_space<smem>>
    %c7_128 = arith.constant 7 : index
    %c3_129 = arith.constant 3 : index
    %90 = memref.load %arg7[%c7_128, %c3_129] : memref<8x8xf32, #tpu.memory_space<smem>>
    %c7_130 = arith.constant 7 : index
    %c4_131 = arith.constant 4 : index
    %91 = memref.load %arg7[%c7_130, %c4_131] : memref<8x8xf32, #tpu.memory_space<smem>>
    %c7_132 = arith.constant 7 : index
    %c5_133 = arith.constant 5 : index
    %92 = memref.load %arg7[%c7_132, %c5_133] : memref<8x8xf32, #tpu.memory_space<smem>>
    %c7_134 = arith.constant 7 : index
    %c6_135 = arith.constant 6 : index
    %93 = memref.load %arg7[%c7_134, %c6_135] : memref<8x8xf32, #tpu.memory_space<smem>>
    %c7_136 = arith.constant 7 : index
    %c7_137 = arith.constant 7 : index
    %94 = memref.load %arg7[%c7_136, %c7_137] : memref<8x8xf32, #tpu.memory_space<smem>>
    %c0_138 = arith.constant 0 : index
    %95 = memref.load %arg8[%c0_138] : memref<8xf32, #tpu.memory_space<smem>>
    %c1_139 = arith.constant 1 : index
    %96 = memref.load %arg8[%c1_139] : memref<8xf32, #tpu.memory_space<smem>>
    %c2_140 = arith.constant 2 : index
    %97 = memref.load %arg8[%c2_140] : memref<8xf32, #tpu.memory_space<smem>>
    %c3_141 = arith.constant 3 : index
    %98 = memref.load %arg8[%c3_141] : memref<8xf32, #tpu.memory_space<smem>>
    %c4_142 = arith.constant 4 : index
    %99 = memref.load %arg8[%c4_142] : memref<8xf32, #tpu.memory_space<smem>>
    %c5_143 = arith.constant 5 : index
    %100 = memref.load %arg8[%c5_143] : memref<8xf32, #tpu.memory_space<smem>>
    %c6_144 = arith.constant 6 : index
    %101 = memref.load %arg8[%c6_144] : memref<8xf32, #tpu.memory_space<smem>>
    %c7_145 = arith.constant 7 : index
    %102 = memref.load %arg8[%c7_145] : memref<8xf32, #tpu.memory_space<smem>>
    %c0_146 = arith.constant 0 : index
    %c0_147 = arith.constant 0 : index
    %103 = memref.load %arg9[%c0_146, %c0_147] : memref<4x8xf32, #tpu.memory_space<smem>>
    %c0_148 = arith.constant 0 : index
    %c1_149 = arith.constant 1 : index
    %104 = memref.load %arg9[%c0_148, %c1_149] : memref<4x8xf32, #tpu.memory_space<smem>>
    %c0_150 = arith.constant 0 : index
    %c2_151 = arith.constant 2 : index
    %105 = memref.load %arg9[%c0_150, %c2_151] : memref<4x8xf32, #tpu.memory_space<smem>>
    %c0_152 = arith.constant 0 : index
    %c3_153 = arith.constant 3 : index
    %106 = memref.load %arg9[%c0_152, %c3_153] : memref<4x8xf32, #tpu.memory_space<smem>>
    %c0_154 = arith.constant 0 : index
    %c4_155 = arith.constant 4 : index
    %107 = memref.load %arg9[%c0_154, %c4_155] : memref<4x8xf32, #tpu.memory_space<smem>>
    %c0_156 = arith.constant 0 : index
    %c5_157 = arith.constant 5 : index
    %108 = memref.load %arg9[%c0_156, %c5_157] : memref<4x8xf32, #tpu.memory_space<smem>>
    %c0_158 = arith.constant 0 : index
    %c6_159 = arith.constant 6 : index
    %109 = memref.load %arg9[%c0_158, %c6_159] : memref<4x8xf32, #tpu.memory_space<smem>>
    %c0_160 = arith.constant 0 : index
    %c7_161 = arith.constant 7 : index
    %110 = memref.load %arg9[%c0_160, %c7_161] : memref<4x8xf32, #tpu.memory_space<smem>>
    %c1_162 = arith.constant 1 : index
    %c0_163 = arith.constant 0 : index
    %111 = memref.load %arg9[%c1_162, %c0_163] : memref<4x8xf32, #tpu.memory_space<smem>>
    %c1_164 = arith.constant 1 : index
    %c1_165 = arith.constant 1 : index
    %112 = memref.load %arg9[%c1_164, %c1_165] : memref<4x8xf32, #tpu.memory_space<smem>>
    %c1_166 = arith.constant 1 : index
    %c2_167 = arith.constant 2 : index
    %113 = memref.load %arg9[%c1_166, %c2_167] : memref<4x8xf32, #tpu.memory_space<smem>>
    %c1_168 = arith.constant 1 : index
    %c3_169 = arith.constant 3 : index
    %114 = memref.load %arg9[%c1_168, %c3_169] : memref<4x8xf32, #tpu.memory_space<smem>>
    %c1_170 = arith.constant 1 : index
    %c4_171 = arith.constant 4 : index
    %115 = memref.load %arg9[%c1_170, %c4_171] : memref<4x8xf32, #tpu.memory_space<smem>>
    %c1_172 = arith.constant 1 : index
    %c5_173 = arith.constant 5 : index
    %116 = memref.load %arg9[%c1_172, %c5_173] : memref<4x8xf32, #tpu.memory_space<smem>>
    %c1_174 = arith.constant 1 : index
    %c6_175 = arith.constant 6 : index
    %117 = memref.load %arg9[%c1_174, %c6_175] : memref<4x8xf32, #tpu.memory_space<smem>>
    %c1_176 = arith.constant 1 : index
    %c7_177 = arith.constant 7 : index
    %118 = memref.load %arg9[%c1_176, %c7_177] : memref<4x8xf32, #tpu.memory_space<smem>>
    %c2_178 = arith.constant 2 : index
    %c0_179 = arith.constant 0 : index
    %119 = memref.load %arg9[%c2_178, %c0_179] : memref<4x8xf32, #tpu.memory_space<smem>>
    %c2_180 = arith.constant 2 : index
    %c1_181 = arith.constant 1 : index
    %120 = memref.load %arg9[%c2_180, %c1_181] : memref<4x8xf32, #tpu.memory_space<smem>>
    %c2_182 = arith.constant 2 : index
    %c2_183 = arith.constant 2 : index
    %121 = memref.load %arg9[%c2_182, %c2_183] : memref<4x8xf32, #tpu.memory_space<smem>>
    %c2_184 = arith.constant 2 : index
    %c3_185 = arith.constant 3 : index
    %122 = memref.load %arg9[%c2_184, %c3_185] : memref<4x8xf32, #tpu.memory_space<smem>>
    %c2_186 = arith.constant 2 : index
    %c4_187 = arith.constant 4 : index
    %123 = memref.load %arg9[%c2_186, %c4_187] : memref<4x8xf32, #tpu.memory_space<smem>>
    %c2_188 = arith.constant 2 : index
    %c5_189 = arith.constant 5 : index
    %124 = memref.load %arg9[%c2_188, %c5_189] : memref<4x8xf32, #tpu.memory_space<smem>>
    %c2_190 = arith.constant 2 : index
    %c6_191 = arith.constant 6 : index
    %125 = memref.load %arg9[%c2_190, %c6_191] : memref<4x8xf32, #tpu.memory_space<smem>>
    %c2_192 = arith.constant 2 : index
    %c7_193 = arith.constant 7 : index
    %126 = memref.load %arg9[%c2_192, %c7_193] : memref<4x8xf32, #tpu.memory_space<smem>>
    %c3_194 = arith.constant 3 : index
    %c0_195 = arith.constant 0 : index
    %127 = memref.load %arg9[%c3_194, %c0_195] : memref<4x8xf32, #tpu.memory_space<smem>>
    %c3_196 = arith.constant 3 : index
    %c1_197 = arith.constant 1 : index
    %128 = memref.load %arg9[%c3_196, %c1_197] : memref<4x8xf32, #tpu.memory_space<smem>>
    %c3_198 = arith.constant 3 : index
    %c2_199 = arith.constant 2 : index
    %129 = memref.load %arg9[%c3_198, %c2_199] : memref<4x8xf32, #tpu.memory_space<smem>>
    %c3_200 = arith.constant 3 : index
    %c3_201 = arith.constant 3 : index
    %130 = memref.load %arg9[%c3_200, %c3_201] : memref<4x8xf32, #tpu.memory_space<smem>>
    %c3_202 = arith.constant 3 : index
    %c4_203 = arith.constant 4 : index
    %131 = memref.load %arg9[%c3_202, %c4_203] : memref<4x8xf32, #tpu.memory_space<smem>>
    %c3_204 = arith.constant 3 : index
    %c5_205 = arith.constant 5 : index
    %132 = memref.load %arg9[%c3_204, %c5_205] : memref<4x8xf32, #tpu.memory_space<smem>>
    %c3_206 = arith.constant 3 : index
    %c6_207 = arith.constant 6 : index
    %133 = memref.load %arg9[%c3_206, %c6_207] : memref<4x8xf32, #tpu.memory_space<smem>>
    %c3_208 = arith.constant 3 : index
    %c7_209 = arith.constant 7 : index
    %134 = memref.load %arg9[%c3_208, %c7_209] : memref<4x8xf32, #tpu.memory_space<smem>>
    %c0_210 = arith.constant 0 : index
    %135 = memref.load %arg10[%c0_210] : memref<4xf32, #tpu.memory_space<smem>>
    %c1_211 = arith.constant 1 : index
    %136 = memref.load %arg10[%c1_211] : memref<4xf32, #tpu.memory_space<smem>>
    %c2_212 = arith.constant 2 : index
    %137 = memref.load %arg10[%c2_212] : memref<4xf32, #tpu.memory_space<smem>>
    %c3_213 = arith.constant 3 : index
    %138 = memref.load %arg10[%c3_213] : memref<4xf32, #tpu.memory_space<smem>>
    %139 = vector.broadcast %31 : f32 to vector<2x8x8xf32>
    %140 = arith.mulf %13, %139 : vector<2x8x8xf32>
    %141 = vector.broadcast %32 : f32 to vector<2x8x8xf32>
    %142 = arith.mulf %16, %141 : vector<2x8x8xf32>
    %143 = arith.addf %140, %142 : vector<2x8x8xf32>
    %144 = vector.broadcast %33 : f32 to vector<2x8x8xf32>
    %145 = arith.mulf %19, %144 : vector<2x8x8xf32>
    %146 = arith.addf %143, %145 : vector<2x8x8xf32>
    %147 = vector.broadcast %34 : f32 to vector<2x8x8xf32>
    %148 = arith.mulf %22, %147 : vector<2x8x8xf32>
    %149 = arith.addf %146, %148 : vector<2x8x8xf32>
    %150 = vector.broadcast %35 : f32 to vector<2x8x8xf32>
    %151 = arith.mulf %24, %150 : vector<2x8x8xf32>
    %152 = arith.addf %149, %151 : vector<2x8x8xf32>
    %153 = vector.broadcast %36 : f32 to vector<2x8x8xf32>
    %154 = arith.mulf %26, %153 : vector<2x8x8xf32>
    %155 = arith.addf %152, %154 : vector<2x8x8xf32>
    %156 = vector.broadcast %37 : f32 to vector<2x8x8xf32>
    %157 = arith.mulf %28, %156 : vector<2x8x8xf32>
    %158 = arith.addf %155, %157 : vector<2x8x8xf32>
    %159 = vector.broadcast %38 : f32 to vector<2x8x8xf32>
    %160 = arith.mulf %30, %159 : vector<2x8x8xf32>
    %161 = arith.addf %158, %160 : vector<2x8x8xf32>
    %162 = vector.broadcast %95 : f32 to vector<2x8x8xf32>
    %163 = arith.addf %161, %162 : vector<2x8x8xf32>
    %cst_214 = arith.constant 0.000000e+00 : f32
    %164 = vector.broadcast %cst_214 : f32 to vector<2x8x8xf32>
    %165 = arith.maximumf %163, %164 : vector<2x8x8xf32>
    %166 = vector.broadcast %39 : f32 to vector<2x8x8xf32>
    %167 = arith.mulf %13, %166 : vector<2x8x8xf32>
    %168 = vector.broadcast %40 : f32 to vector<2x8x8xf32>
    %169 = arith.mulf %16, %168 : vector<2x8x8xf32>
    %170 = arith.addf %167, %169 : vector<2x8x8xf32>
    %171 = vector.broadcast %41 : f32 to vector<2x8x8xf32>
    %172 = arith.mulf %19, %171 : vector<2x8x8xf32>
    %173 = arith.addf %170, %172 : vector<2x8x8xf32>
    %174 = vector.broadcast %42 : f32 to vector<2x8x8xf32>
    %175 = arith.mulf %22, %174 : vector<2x8x8xf32>
    %176 = arith.addf %173, %175 : vector<2x8x8xf32>
    %177 = vector.broadcast %43 : f32 to vector<2x8x8xf32>
    %178 = arith.mulf %24, %177 : vector<2x8x8xf32>
    %179 = arith.addf %176, %178 : vector<2x8x8xf32>
    %180 = vector.broadcast %44 : f32 to vector<2x8x8xf32>
    %181 = arith.mulf %26, %180 : vector<2x8x8xf32>
    %182 = arith.addf %179, %181 : vector<2x8x8xf32>
    %183 = vector.broadcast %45 : f32 to vector<2x8x8xf32>
    %184 = arith.mulf %28, %183 : vector<2x8x8xf32>
    %185 = arith.addf %182, %184 : vector<2x8x8xf32>
    %186 = vector.broadcast %46 : f32 to vector<2x8x8xf32>
    %187 = arith.mulf %30, %186 : vector<2x8x8xf32>
    %188 = arith.addf %185, %187 : vector<2x8x8xf32>
    %189 = vector.broadcast %96 : f32 to vector<2x8x8xf32>
    %190 = arith.addf %188, %189 : vector<2x8x8xf32>
    %cst_215 = arith.constant 0.000000e+00 : f32
    %191 = vector.broadcast %cst_215 : f32 to vector<2x8x8xf32>
    %192 = arith.maximumf %190, %191 : vector<2x8x8xf32>
    %193 = vector.broadcast %47 : f32 to vector<2x8x8xf32>
    %194 = arith.mulf %13, %193 : vector<2x8x8xf32>
    %195 = vector.broadcast %48 : f32 to vector<2x8x8xf32>
    %196 = arith.mulf %16, %195 : vector<2x8x8xf32>
    %197 = arith.addf %194, %196 : vector<2x8x8xf32>
    %198 = vector.broadcast %49 : f32 to vector<2x8x8xf32>
    %199 = arith.mulf %19, %198 : vector<2x8x8xf32>
    %200 = arith.addf %197, %199 : vector<2x8x8xf32>
    %201 = vector.broadcast %50 : f32 to vector<2x8x8xf32>
    %202 = arith.mulf %22, %201 : vector<2x8x8xf32>
    %203 = arith.addf %200, %202 : vector<2x8x8xf32>
    %204 = vector.broadcast %51 : f32 to vector<2x8x8xf32>
    %205 = arith.mulf %24, %204 : vector<2x8x8xf32>
    %206 = arith.addf %203, %205 : vector<2x8x8xf32>
    %207 = vector.broadcast %52 : f32 to vector<2x8x8xf32>
    %208 = arith.mulf %26, %207 : vector<2x8x8xf32>
    %209 = arith.addf %206, %208 : vector<2x8x8xf32>
    %210 = vector.broadcast %53 : f32 to vector<2x8x8xf32>
    %211 = arith.mulf %28, %210 : vector<2x8x8xf32>
    %212 = arith.addf %209, %211 : vector<2x8x8xf32>
    %213 = vector.broadcast %54 : f32 to vector<2x8x8xf32>
    %214 = arith.mulf %30, %213 : vector<2x8x8xf32>
    %215 = arith.addf %212, %214 : vector<2x8x8xf32>
    %216 = vector.broadcast %97 : f32 to vector<2x8x8xf32>
    %217 = arith.addf %215, %216 : vector<2x8x8xf32>
    %cst_216 = arith.constant 0.000000e+00 : f32
    %218 = vector.broadcast %cst_216 : f32 to vector<2x8x8xf32>
    %219 = arith.maximumf %217, %218 : vector<2x8x8xf32>
    %220 = vector.broadcast %55 : f32 to vector<2x8x8xf32>
    %221 = arith.mulf %13, %220 : vector<2x8x8xf32>
    %222 = vector.broadcast %56 : f32 to vector<2x8x8xf32>
    %223 = arith.mulf %16, %222 : vector<2x8x8xf32>
    %224 = arith.addf %221, %223 : vector<2x8x8xf32>
    %225 = vector.broadcast %57 : f32 to vector<2x8x8xf32>
    %226 = arith.mulf %19, %225 : vector<2x8x8xf32>
    %227 = arith.addf %224, %226 : vector<2x8x8xf32>
    %228 = vector.broadcast %58 : f32 to vector<2x8x8xf32>
    %229 = arith.mulf %22, %228 : vector<2x8x8xf32>
    %230 = arith.addf %227, %229 : vector<2x8x8xf32>
    %231 = vector.broadcast %59 : f32 to vector<2x8x8xf32>
    %232 = arith.mulf %24, %231 : vector<2x8x8xf32>
    %233 = arith.addf %230, %232 : vector<2x8x8xf32>
    %234 = vector.broadcast %60 : f32 to vector<2x8x8xf32>
    %235 = arith.mulf %26, %234 : vector<2x8x8xf32>
    %236 = arith.addf %233, %235 : vector<2x8x8xf32>
    %237 = vector.broadcast %61 : f32 to vector<2x8x8xf32>
    %238 = arith.mulf %28, %237 : vector<2x8x8xf32>
    %239 = arith.addf %236, %238 : vector<2x8x8xf32>
    %240 = vector.broadcast %62 : f32 to vector<2x8x8xf32>
    %241 = arith.mulf %30, %240 : vector<2x8x8xf32>
    %242 = arith.addf %239, %241 : vector<2x8x8xf32>
    %243 = vector.broadcast %98 : f32 to vector<2x8x8xf32>
    %244 = arith.addf %242, %243 : vector<2x8x8xf32>
    %cst_217 = arith.constant 0.000000e+00 : f32
    %245 = vector.broadcast %cst_217 : f32 to vector<2x8x8xf32>
    %246 = arith.maximumf %244, %245 : vector<2x8x8xf32>
    %247 = vector.broadcast %63 : f32 to vector<2x8x8xf32>
    %248 = arith.mulf %13, %247 : vector<2x8x8xf32>
    %249 = vector.broadcast %64 : f32 to vector<2x8x8xf32>
    %250 = arith.mulf %16, %249 : vector<2x8x8xf32>
    %251 = arith.addf %248, %250 : vector<2x8x8xf32>
    %252 = vector.broadcast %65 : f32 to vector<2x8x8xf32>
    %253 = arith.mulf %19, %252 : vector<2x8x8xf32>
    %254 = arith.addf %251, %253 : vector<2x8x8xf32>
    %255 = vector.broadcast %66 : f32 to vector<2x8x8xf32>
    %256 = arith.mulf %22, %255 : vector<2x8x8xf32>
    %257 = arith.addf %254, %256 : vector<2x8x8xf32>
    %258 = vector.broadcast %67 : f32 to vector<2x8x8xf32>
    %259 = arith.mulf %24, %258 : vector<2x8x8xf32>
    %260 = arith.addf %257, %259 : vector<2x8x8xf32>
    %261 = vector.broadcast %68 : f32 to vector<2x8x8xf32>
    %262 = arith.mulf %26, %261 : vector<2x8x8xf32>
    %263 = arith.addf %260, %262 : vector<2x8x8xf32>
    %264 = vector.broadcast %69 : f32 to vector<2x8x8xf32>
    %265 = arith.mulf %28, %264 : vector<2x8x8xf32>
    %266 = arith.addf %263, %265 : vector<2x8x8xf32>
    %267 = vector.broadcast %70 : f32 to vector<2x8x8xf32>
    %268 = arith.mulf %30, %267 : vector<2x8x8xf32>
    %269 = arith.addf %266, %268 : vector<2x8x8xf32>
    %270 = vector.broadcast %99 : f32 to vector<2x8x8xf32>
    %271 = arith.addf %269, %270 : vector<2x8x8xf32>
    %cst_218 = arith.constant 0.000000e+00 : f32
    %272 = vector.broadcast %cst_218 : f32 to vector<2x8x8xf32>
    %273 = arith.maximumf %271, %272 : vector<2x8x8xf32>
    %274 = vector.broadcast %71 : f32 to vector<2x8x8xf32>
    %275 = arith.mulf %13, %274 : vector<2x8x8xf32>
    %276 = vector.broadcast %72 : f32 to vector<2x8x8xf32>
    %277 = arith.mulf %16, %276 : vector<2x8x8xf32>
    %278 = arith.addf %275, %277 : vector<2x8x8xf32>
    %279 = vector.broadcast %73 : f32 to vector<2x8x8xf32>
    %280 = arith.mulf %19, %279 : vector<2x8x8xf32>
    %281 = arith.addf %278, %280 : vector<2x8x8xf32>
    %282 = vector.broadcast %74 : f32 to vector<2x8x8xf32>
    %283 = arith.mulf %22, %282 : vector<2x8x8xf32>
    %284 = arith.addf %281, %283 : vector<2x8x8xf32>
    %285 = vector.broadcast %75 : f32 to vector<2x8x8xf32>
    %286 = arith.mulf %24, %285 : vector<2x8x8xf32>
    %287 = arith.addf %284, %286 : vector<2x8x8xf32>
    %288 = vector.broadcast %76 : f32 to vector<2x8x8xf32>
    %289 = arith.mulf %26, %288 : vector<2x8x8xf32>
    %290 = arith.addf %287, %289 : vector<2x8x8xf32>
    %291 = vector.broadcast %77 : f32 to vector<2x8x8xf32>
    %292 = arith.mulf %28, %291 : vector<2x8x8xf32>
    %293 = arith.addf %290, %292 : vector<2x8x8xf32>
    %294 = vector.broadcast %78 : f32 to vector<2x8x8xf32>
    %295 = arith.mulf %30, %294 : vector<2x8x8xf32>
    %296 = arith.addf %293, %295 : vector<2x8x8xf32>
    %297 = vector.broadcast %100 : f32 to vector<2x8x8xf32>
    %298 = arith.addf %296, %297 : vector<2x8x8xf32>
    %cst_219 = arith.constant 0.000000e+00 : f32
    %299 = vector.broadcast %cst_219 : f32 to vector<2x8x8xf32>
    %300 = arith.maximumf %298, %299 : vector<2x8x8xf32>
    %301 = vector.broadcast %79 : f32 to vector<2x8x8xf32>
    %302 = arith.mulf %13, %301 : vector<2x8x8xf32>
    %303 = vector.broadcast %80 : f32 to vector<2x8x8xf32>
    %304 = arith.mulf %16, %303 : vector<2x8x8xf32>
    %305 = arith.addf %302, %304 : vector<2x8x8xf32>
    %306 = vector.broadcast %81 : f32 to vector<2x8x8xf32>
    %307 = arith.mulf %19, %306 : vector<2x8x8xf32>
    %308 = arith.addf %305, %307 : vector<2x8x8xf32>
    %309 = vector.broadcast %82 : f32 to vector<2x8x8xf32>
    %310 = arith.mulf %22, %309 : vector<2x8x8xf32>
    %311 = arith.addf %308, %310 : vector<2x8x8xf32>
    %312 = vector.broadcast %83 : f32 to vector<2x8x8xf32>
    %313 = arith.mulf %24, %312 : vector<2x8x8xf32>
    %314 = arith.addf %311, %313 : vector<2x8x8xf32>
    %315 = vector.broadcast %84 : f32 to vector<2x8x8xf32>
    %316 = arith.mulf %26, %315 : vector<2x8x8xf32>
    %317 = arith.addf %314, %316 : vector<2x8x8xf32>
    %318 = vector.broadcast %85 : f32 to vector<2x8x8xf32>
    %319 = arith.mulf %28, %318 : vector<2x8x8xf32>
    %320 = arith.addf %317, %319 : vector<2x8x8xf32>
    %321 = vector.broadcast %86 : f32 to vector<2x8x8xf32>
    %322 = arith.mulf %30, %321 : vector<2x8x8xf32>
    %323 = arith.addf %320, %322 : vector<2x8x8xf32>
    %324 = vector.broadcast %101 : f32 to vector<2x8x8xf32>
    %325 = arith.addf %323, %324 : vector<2x8x8xf32>
    %cst_220 = arith.constant 0.000000e+00 : f32
    %326 = vector.broadcast %cst_220 : f32 to vector<2x8x8xf32>
    %327 = arith.maximumf %325, %326 : vector<2x8x8xf32>
    %328 = vector.broadcast %87 : f32 to vector<2x8x8xf32>
    %329 = arith.mulf %13, %328 : vector<2x8x8xf32>
    %330 = vector.broadcast %88 : f32 to vector<2x8x8xf32>
    %331 = arith.mulf %16, %330 : vector<2x8x8xf32>
    %332 = arith.addf %329, %331 : vector<2x8x8xf32>
    %333 = vector.broadcast %89 : f32 to vector<2x8x8xf32>
    %334 = arith.mulf %19, %333 : vector<2x8x8xf32>
    %335 = arith.addf %332, %334 : vector<2x8x8xf32>
    %336 = vector.broadcast %90 : f32 to vector<2x8x8xf32>
    %337 = arith.mulf %22, %336 : vector<2x8x8xf32>
    %338 = arith.addf %335, %337 : vector<2x8x8xf32>
    %339 = vector.broadcast %91 : f32 to vector<2x8x8xf32>
    %340 = arith.mulf %24, %339 : vector<2x8x8xf32>
    %341 = arith.addf %338, %340 : vector<2x8x8xf32>
    %342 = vector.broadcast %92 : f32 to vector<2x8x8xf32>
    %343 = arith.mulf %26, %342 : vector<2x8x8xf32>
    %344 = arith.addf %341, %343 : vector<2x8x8xf32>
    %345 = vector.broadcast %93 : f32 to vector<2x8x8xf32>
    %346 = arith.mulf %28, %345 : vector<2x8x8xf32>
    %347 = arith.addf %344, %346 : vector<2x8x8xf32>
    %348 = vector.broadcast %94 : f32 to vector<2x8x8xf32>
    %349 = arith.mulf %30, %348 : vector<2x8x8xf32>
    %350 = arith.addf %347, %349 : vector<2x8x8xf32>
    %351 = vector.broadcast %102 : f32 to vector<2x8x8xf32>
    %352 = arith.addf %350, %351 : vector<2x8x8xf32>
    %cst_221 = arith.constant 0.000000e+00 : f32
    %353 = vector.broadcast %cst_221 : f32 to vector<2x8x8xf32>
    %354 = arith.maximumf %352, %353 : vector<2x8x8xf32>
    %355 = vector.broadcast %103 : f32 to vector<2x8x8xf32>
    %356 = arith.mulf %165, %355 : vector<2x8x8xf32>
    %357 = vector.broadcast %104 : f32 to vector<2x8x8xf32>
    %358 = arith.mulf %192, %357 : vector<2x8x8xf32>
    %359 = arith.addf %356, %358 : vector<2x8x8xf32>
    %360 = vector.broadcast %105 : f32 to vector<2x8x8xf32>
    %361 = arith.mulf %219, %360 : vector<2x8x8xf32>
    %362 = arith.addf %359, %361 : vector<2x8x8xf32>
    %363 = vector.broadcast %106 : f32 to vector<2x8x8xf32>
    %364 = arith.mulf %246, %363 : vector<2x8x8xf32>
    %365 = arith.addf %362, %364 : vector<2x8x8xf32>
    %366 = vector.broadcast %107 : f32 to vector<2x8x8xf32>
    %367 = arith.mulf %273, %366 : vector<2x8x8xf32>
    %368 = arith.addf %365, %367 : vector<2x8x8xf32>
    %369 = vector.broadcast %108 : f32 to vector<2x8x8xf32>
    %370 = arith.mulf %300, %369 : vector<2x8x8xf32>
    %371 = arith.addf %368, %370 : vector<2x8x8xf32>
    %372 = vector.broadcast %109 : f32 to vector<2x8x8xf32>
    %373 = arith.mulf %327, %372 : vector<2x8x8xf32>
    %374 = arith.addf %371, %373 : vector<2x8x8xf32>
    %375 = vector.broadcast %110 : f32 to vector<2x8x8xf32>
    %376 = arith.mulf %354, %375 : vector<2x8x8xf32>
    %377 = arith.addf %374, %376 : vector<2x8x8xf32>
    %378 = vector.broadcast %135 : f32 to vector<2x8x8xf32>
    %379 = arith.addf %377, %378 : vector<2x8x8xf32>
    %380 = vector.broadcast %111 : f32 to vector<2x8x8xf32>
    %381 = arith.mulf %165, %380 : vector<2x8x8xf32>
    %382 = vector.broadcast %112 : f32 to vector<2x8x8xf32>
    %383 = arith.mulf %192, %382 : vector<2x8x8xf32>
    %384 = arith.addf %381, %383 : vector<2x8x8xf32>
    %385 = vector.broadcast %113 : f32 to vector<2x8x8xf32>
    %386 = arith.mulf %219, %385 : vector<2x8x8xf32>
    %387 = arith.addf %384, %386 : vector<2x8x8xf32>
    %388 = vector.broadcast %114 : f32 to vector<2x8x8xf32>
    %389 = arith.mulf %246, %388 : vector<2x8x8xf32>
    %390 = arith.addf %387, %389 : vector<2x8x8xf32>
    %391 = vector.broadcast %115 : f32 to vector<2x8x8xf32>
    %392 = arith.mulf %273, %391 : vector<2x8x8xf32>
    %393 = arith.addf %390, %392 : vector<2x8x8xf32>
    %394 = vector.broadcast %116 : f32 to vector<2x8x8xf32>
    %395 = arith.mulf %300, %394 : vector<2x8x8xf32>
    %396 = arith.addf %393, %395 : vector<2x8x8xf32>
    %397 = vector.broadcast %117 : f32 to vector<2x8x8xf32>
    %398 = arith.mulf %327, %397 : vector<2x8x8xf32>
    %399 = arith.addf %396, %398 : vector<2x8x8xf32>
    %400 = vector.broadcast %118 : f32 to vector<2x8x8xf32>
    %401 = arith.mulf %354, %400 : vector<2x8x8xf32>
    %402 = arith.addf %399, %401 : vector<2x8x8xf32>
    %403 = vector.broadcast %136 : f32 to vector<2x8x8xf32>
    %404 = arith.addf %402, %403 : vector<2x8x8xf32>
    %405 = vector.broadcast %119 : f32 to vector<2x8x8xf32>
    %406 = arith.mulf %165, %405 : vector<2x8x8xf32>
    %407 = vector.broadcast %120 : f32 to vector<2x8x8xf32>
    %408 = arith.mulf %192, %407 : vector<2x8x8xf32>
    %409 = arith.addf %406, %408 : vector<2x8x8xf32>
    %410 = vector.broadcast %121 : f32 to vector<2x8x8xf32>
    %411 = arith.mulf %219, %410 : vector<2x8x8xf32>
    %412 = arith.addf %409, %411 : vector<2x8x8xf32>
    %413 = vector.broadcast %122 : f32 to vector<2x8x8xf32>
    %414 = arith.mulf %246, %413 : vector<2x8x8xf32>
    %415 = arith.addf %412, %414 : vector<2x8x8xf32>
    %416 = vector.broadcast %123 : f32 to vector<2x8x8xf32>
    %417 = arith.mulf %273, %416 : vector<2x8x8xf32>
    %418 = arith.addf %415, %417 : vector<2x8x8xf32>
    %419 = vector.broadcast %124 : f32 to vector<2x8x8xf32>
    %420 = arith.mulf %300, %419 : vector<2x8x8xf32>
    %421 = arith.addf %418, %420 : vector<2x8x8xf32>
    %422 = vector.broadcast %125 : f32 to vector<2x8x8xf32>
    %423 = arith.mulf %327, %422 : vector<2x8x8xf32>
    %424 = arith.addf %421, %423 : vector<2x8x8xf32>
    %425 = vector.broadcast %126 : f32 to vector<2x8x8xf32>
    %426 = arith.mulf %354, %425 : vector<2x8x8xf32>
    %427 = arith.addf %424, %426 : vector<2x8x8xf32>
    %428 = vector.broadcast %137 : f32 to vector<2x8x8xf32>
    %429 = arith.addf %427, %428 : vector<2x8x8xf32>
    %430 = vector.broadcast %127 : f32 to vector<2x8x8xf32>
    %431 = arith.mulf %165, %430 : vector<2x8x8xf32>
    %432 = vector.broadcast %128 : f32 to vector<2x8x8xf32>
    %433 = arith.mulf %192, %432 : vector<2x8x8xf32>
    %434 = arith.addf %431, %433 : vector<2x8x8xf32>
    %435 = vector.broadcast %129 : f32 to vector<2x8x8xf32>
    %436 = arith.mulf %219, %435 : vector<2x8x8xf32>
    %437 = arith.addf %434, %436 : vector<2x8x8xf32>
    %438 = vector.broadcast %130 : f32 to vector<2x8x8xf32>
    %439 = arith.mulf %246, %438 : vector<2x8x8xf32>
    %440 = arith.addf %437, %439 : vector<2x8x8xf32>
    %441 = vector.broadcast %131 : f32 to vector<2x8x8xf32>
    %442 = arith.mulf %273, %441 : vector<2x8x8xf32>
    %443 = arith.addf %440, %442 : vector<2x8x8xf32>
    %444 = vector.broadcast %132 : f32 to vector<2x8x8xf32>
    %445 = arith.mulf %300, %444 : vector<2x8x8xf32>
    %446 = arith.addf %443, %445 : vector<2x8x8xf32>
    %447 = vector.broadcast %133 : f32 to vector<2x8x8xf32>
    %448 = arith.mulf %327, %447 : vector<2x8x8xf32>
    %449 = arith.addf %446, %448 : vector<2x8x8xf32>
    %450 = vector.broadcast %134 : f32 to vector<2x8x8xf32>
    %451 = arith.mulf %354, %450 : vector<2x8x8xf32>
    %452 = arith.addf %449, %451 : vector<2x8x8xf32>
    %453 = vector.broadcast %138 : f32 to vector<2x8x8xf32>
    %454 = arith.addf %452, %453 : vector<2x8x8xf32>
    %455 = tpu.concatenate %379, %404, %429, %454 in 0 : vector<2x8x8xf32>, vector<2x8x8xf32>, vector<2x8x8xf32>, vector<2x8x8xf32> -> vector<8x8x8xf32>
    %cst_222 = arith.constant dense<0xFF800000> : vector<8x8xf32>
    %456 = vector.multi_reduction <maximumf>, %455, %cst_222 [2] : vector<8x8x8xf32> to vector<8x8xf32>
    %457 = vector.shape_cast %456 : vector<8x8xf32> to vector<8x8x1xf32>
    %458 = vector.broadcast %457 : vector<8x8x1xf32> to vector<8x8x8xf32>
    %459 = arith.subf %455, %458 : vector<8x8x8xf32>
    %460 = math.exp %459 : vector<8x8x8xf32>
    %cst_223 = arith.constant dense<0.000000e+00> : vector<8x8xf32>
    %461 = vector.multi_reduction <add>, %460, %cst_223 [2] : vector<8x8x8xf32> to vector<8x8xf32>
    %462 = vector.shape_cast %461 : vector<8x8xf32> to vector<8x8x1xf32>
    %463 = tpu.reciprocal %462 : vector<8x8x1xf32> -> vector<8x8x1xf32>
    %464 = vector.broadcast %463 : vector<8x8x1xf32> to vector<8x8x8xf32>
    %465 = arith.mulf %460, %464 : vector<8x8x8xf32>
    %466 = vector.extract_strided_slice %465 {offsets = [0, 0, 0], sizes = [2, 8, 8], strides = [1, 1, 1]} : vector<8x8x8xf32> to vector<2x8x8xf32>
    %467 = vector.extract_strided_slice %9 {offsets = [0, 0, 0], sizes = [2, 8, 8], strides = [1, 1, 1]} : vector<2x8x32xf32> to vector<2x8x8xf32>
    "tpu.trace_start"() <{level = 10 : i32, message = "bqn,bnk->bqk"}> : () -> ()
    %cst_224 = arith.constant dense<0.000000e+00> : vector<2x8x8xf32>
    %468 = tpu.matmul %466, %467, %cst_224 {dimension_numbers = #tpu.dot_dimension_numbers<[2], [1], [1], [2], [0, 0, 0, 1, 1, 2], [0], [0]>} : vector<2x8x8xf32>, vector<2x8x8xf32>, vector<2x8x8xf32> -> vector<2x8x8xf32>
    "tpu.trace_stop"() : () -> ()
    %469 = vector.extract_strided_slice %465 {offsets = [2, 0, 0], sizes = [2, 8, 8], strides = [1, 1, 1]} : vector<8x8x8xf32> to vector<2x8x8xf32>
    %470 = vector.extract_strided_slice %9 {offsets = [0, 0, 8], sizes = [2, 8, 8], strides = [1, 1, 1]} : vector<2x8x32xf32> to vector<2x8x8xf32>
    "tpu.trace_start"() <{level = 10 : i32, message = "bqn,bnk->bqk"}> : () -> ()
    %cst_225 = arith.constant dense<0.000000e+00> : vector<2x8x8xf32>
    %471 = tpu.matmul %469, %470, %cst_225 {dimension_numbers = #tpu.dot_dimension_numbers<[2], [1], [1], [2], [0, 0, 0, 1, 1, 2], [0], [0]>} : vector<2x8x8xf32>, vector<2x8x8xf32>, vector<2x8x8xf32> -> vector<2x8x8xf32>
    "tpu.trace_stop"() : () -> ()
    %472 = vector.extract_strided_slice %465 {offsets = [4, 0, 0], sizes = [2, 8, 8], strides = [1, 1, 1]} : vector<8x8x8xf32> to vector<2x8x8xf32>
    %473 = vector.extract_strided_slice %9 {offsets = [0, 0, 16], sizes = [2, 8, 8], strides = [1, 1, 1]} : vector<2x8x32xf32> to vector<2x8x8xf32>
    "tpu.trace_start"() <{level = 10 : i32, message = "bqn,bnk->bqk"}> : () -> ()
    %cst_226 = arith.constant dense<0.000000e+00> : vector<2x8x8xf32>
    %474 = tpu.matmul %472, %473, %cst_226 {dimension_numbers = #tpu.dot_dimension_numbers<[2], [1], [1], [2], [0, 0, 0, 1, 1, 2], [0], [0]>} : vector<2x8x8xf32>, vector<2x8x8xf32>, vector<2x8x8xf32> -> vector<2x8x8xf32>
    "tpu.trace_stop"() : () -> ()
    %475 = vector.extract_strided_slice %465 {offsets = [6, 0, 0], sizes = [2, 8, 8], strides = [1, 1, 1]} : vector<8x8x8xf32> to vector<2x8x8xf32>
    %476 = vector.extract_strided_slice %9 {offsets = [0, 0, 24], sizes = [2, 8, 8], strides = [1, 1, 1]} : vector<2x8x32xf32> to vector<2x8x8xf32>
    "tpu.trace_start"() <{level = 10 : i32, message = "bqn,bnk->bqk"}> : () -> ()
    %cst_227 = arith.constant dense<0.000000e+00> : vector<2x8x8xf32>
    %477 = tpu.matmul %475, %476, %cst_227 {dimension_numbers = #tpu.dot_dimension_numbers<[2], [1], [1], [2], [0, 0, 0, 1, 1, 2], [0], [0]>} : vector<2x8x8xf32>, vector<2x8x8xf32>, vector<2x8x8xf32> -> vector<2x8x8xf32>
    "tpu.trace_stop"() : () -> ()
    %478 = tpu.concatenate %468, %471, %474, %477 in 2 : vector<2x8x8xf32>, vector<2x8x8xf32>, vector<2x8x8xf32>, vector<2x8x8xf32> -> vector<2x8x32xf32>
    %479 = vector.shape_cast %478 : vector<2x8x32xf32> to vector<16x32xf32>
    %c0_228 = arith.constant 0 : index
    %c0_229 = arith.constant 0 : index
    %480 = vector.load %arg6[%c0_228, %c0_229] : memref<32x32xf32, #tpu.memory_space<vmem>>, vector<32x32xf32>
    %cst_230 = arith.constant dense<0.000000e+00> : vector<16x32xf32>
    %481 = tpu.matmul %479, %480, %cst_230 {dimension_numbers = #tpu.dot_dimension_numbers<[1], [0], [0], [1], [0, 0, 1, 1], [], []>} : vector<16x32xf32>, vector<32x32xf32>, vector<16x32xf32> -> vector<16x32xf32>
    %482 = arith.addf %481, %0 : vector<16x32xf32>
    %483 = vector.shape_cast %482 : vector<16x32xf32> to vector<2x8x32xf32>
    %cst_231 = arith.constant dense<0.000000e+00> : vector<2x8xf32>
    %484 = vector.multi_reduction <add>, %483, %cst_231 [2] : vector<2x8x32xf32> to vector<2x8xf32>
    %485 = vector.shape_cast %484 : vector<2x8xf32> to vector<2x8x1xf32>
    %cst_232 = arith.constant dense<0.000000e+00> : vector<2x1xf32>
    %486 = vector.multi_reduction <add>, %485, %cst_232 [1] : vector<2x8x1xf32> to vector<2x1xf32>
    %487 = vector.shape_cast %486 : vector<2x1xf32> to vector<2x1x1xf32>
    %cst_233 = arith.constant 3.906250e-03 : f32
    %488 = vector.broadcast %cst_233 : f32 to vector<2x1x1xf32>
    %489 = arith.mulf %487, %488 : vector<2x1x1xf32>
    %490 = vector.broadcast %489 : vector<2x1x1xf32> to vector<2x8x32xf32>
    %491 = arith.subf %483, %490 : vector<2x8x32xf32>
    %492 = arith.mulf %491, %491 : vector<2x8x32xf32>
    %cst_234 = arith.constant dense<0.000000e+00> : vector<2x8xf32>
    %493 = vector.multi_reduction <add>, %492, %cst_234 [2] : vector<2x8x32xf32> to vector<2x8xf32>
    %494 = vector.shape_cast %493 : vector<2x8xf32> to vector<2x8x1xf32>
    %cst_235 = arith.constant dense<0.000000e+00> : vector<2x1xf32>
    %495 = vector.multi_reduction <add>, %494, %cst_235 [1] : vector<2x8x1xf32> to vector<2x1xf32>
    %496 = vector.shape_cast %495 : vector<2x1xf32> to vector<2x1x1xf32>
    %cst_236 = arith.constant 0.00392156886 : f32
    %497 = vector.broadcast %cst_236 : f32 to vector<2x1x1xf32>
    %498 = arith.mulf %496, %497 : vector<2x1x1xf32>
    %cst_237 = arith.constant 9.99999974E-6 : f32
    %499 = vector.broadcast %cst_237 : f32 to vector<2x1x1xf32>
    %500 = arith.addf %498, %499 : vector<2x1x1xf32>
    %501 = math.rsqrt %500 : vector<2x1x1xf32>
    %502 = vector.broadcast %501 : vector<2x1x1xf32> to vector<2x8x32xf32>
    %503 = arith.mulf %491, %502 : vector<2x8x32xf32>
    %504 = vector.shape_cast %503 : vector<2x8x32xf32> to vector<16x32xf32>
    %c0_238 = arith.constant 0 : index
    %c0_239 = arith.constant 0 : index
    %505 = vector.load %arg11[%c0_238, %c0_239] : memref<16x32xf32, #tpu.memory_space<vmem>>, vector<16x32xf32>
    tpu.vector_store %arg11[%c0_238, %c0_239], %504 {strides = array<i32>} : memref<16x32xf32, #tpu.memory_space<vmem>>, vector<16x32xf32>,
    return
  }
  func.func @transform_0(%arg0: i32) -> (i32, i32) {
    %c0_i32 = arith.constant 0 : i32
    %c0_i32_0 = arith.constant 0 : i32
    return %arg0, %c0_i32 : i32, i32
  }
  func.func @transform_1(%arg0: i32) -> (i32, i32, i32, i32) {
    %c0_i32 = arith.constant 0 : i32
    %c0_i32_0 = arith.constant 0 : i32
    %c0_i32_1 = arith.constant 0 : i32
    %c0_i32_2 = arith.constant 0 : i32
    return %arg0, %c0_i32, %c0_i32_0, %c0_i32_1 : i32, i32, i32, i32
  }
  func.func @transform_2(%arg0: i32) -> (i32, i32) {
    %c0_i32 = arith.constant 0 : i32
    %c0_i32_0 = arith.constant 0 : i32
    %c0_i32_1 = arith.constant 0 : i32
    return %c0_i32, %c0_i32_0 : i32, i32
  }
  func.func @transform_3(%arg0: i32) -> (i32, i32) {
    %c0_i32 = arith.constant 0 : i32
    %c0_i32_0 = arith.constant 0 : i32
    %c0_i32_1 = arith.constant 0 : i32
    return %c0_i32, %c0_i32_0 : i32, i32
  }
  func.func @transform_4(%arg0: i32) -> (i32, i32) {
    %c0_i32 = arith.constant 0 : i32
    %c0_i32_0 = arith.constant 0 : i32
    %c0_i32_1 = arith.constant 0 : i32
    return %c0_i32, %c0_i32_0 : i32, i32
  }
  func.func @transform_5(%arg0: i32) -> (i32, i32) {
    %c0_i32 = arith.constant 0 : i32
    %c0_i32_0 = arith.constant 0 : i32
    %c0_i32_1 = arith.constant 0 : i32
    return %c0_i32, %c0_i32_0 : i32, i32
  }
  func.func @transform_6(%arg0: i32) -> (i32, i32) {
    %c0_i32 = arith.constant 0 : i32
    %c0_i32_0 = arith.constant 0 : i32
    %c0_i32_1 = arith.constant 0 : i32
    return %c0_i32, %c0_i32_0 : i32, i32
  }
  func.func @transform_7(%arg0: i32) -> i32 {
    %c0_i32 = arith.constant 0 : i32
    %c0_i32_0 = arith.constant 0 : i32
    return %c0_i32 : i32
  }
  func.func @transform_8(%arg0: i32) -> (i32, i32) {
    %c0_i32 = arith.constant 0 : i32
    %c0_i32_0 = arith.constant 0 : i32
    %c0_i32_1 = arith.constant 0 : i32
    return %c0_i32, %c0_i32_0 : i32, i32
  }
  func.func @transform_9(%arg0: i32) -> i32 {
    %c0_i32 = arith.constant 0 : i32
    %c0_i32_0 = arith.constant 0 : i32
    return %c0_i32 : i32
  }
  func.func @transform_10(%arg0: i32) -> (i32, i32) {
    %c0_i32 = arith.constant 0 : i32
    %c0_i32_0 = arith.constant 0 : i32
    return %arg0, %c0_i32 : i32, i32
  }
}

</mosaic_0001>

<bundles_post_ra>
// kernel: tpu_custom_call.1
= control target key start
LH: loop header
LB: loop body
LE: loop exit
PB: predicated region body
PF: predicated region fallthrough
CT: control target
= control target key end

     0   :  { %s3410_s0 = inlined_call_operand.hbm [shape: f32[16,32], index: 0, kind: input, shape index: {}]   ;;  %s3411_s1 = inlined_call_operand.hbm [shape: f32[2,4,8,8], index: 1, kind: input, shape index: {}]   ;;  %s3412_s2 = inlined_call_operand.hbm [shape: f32[32,32], index: 2, kind: input, shape index: {}]   ;;  %s3413_s3 = inlined_call_operand.hbm [shape: f32[32,32], index: 3, kind: input, shape index: {}]   ;;  %s3414_s4 = inlined_call_operand.hbm [shape: f32[32,32], index: 4, kind: input, shape index: {}]   ;;  %s3415_s5 = inlined_call_operand.hbm [shape: f32[32,32], index: 5, kind: input, shape index: {}]   ;;  %s3416_s6 = inlined_call_operand.hbm [shape: f32[8,8], index: 6, kind: input, shape index: {}]   ;;  %s3417_s7 = inlined_call_operand.vmem [shape: f32[8], index: 7, kind: input, shape index: {}]   ;;  %s3418_s8 = inlined_call_operand.vmem [shape: f32[4,8], index: 8, kind: input, shape index: {}]   ;;  %s3419_s9 = inlined_call_operand.vmem [shape: f32[4], index: 9, kind: input, shape index: {}]   ;;  %s3420_s10 = inlined_call_operand.hbm [shape: f32[16,32], index: 10, kind: output, shape index: {}]  }
   0x1   :  { %3531 = sst [smem:[#allocation81_spill]] %s3420_s10 }
   0x2   :  { %15 = vsyncpa [#allocation3], 0 }
   0x3   :  { %16 = vsyncpa [#allocation8], 0 }
   0x4   :  { %17 = vsyncpa [#allocation11], 0 }
   0x5   :  { %18 = vsyncpa [#allocation14], 0 }
   0x6   :  { %19 = vsyncpa [#allocation5], 0 }
   0x7   :  { %20 = vsyncpa [#allocation6], 0 }
   0x8   :  { %21 = vsyncpa [#allocation18], 0 }
   0x9   :  { %22 = vsyncpa [#allocation4], 0  ;;  %s40_s15 = sshll.u32 %s3411_s1, 4  ;;  %s2102_s16 = smov [#allocation7]   ;;  %s41_s15 = int_to_ptr.hbm [resolvable:$true] %s40_s15 }
   0xa   :  { %s42_s17 = sshll.u32 %s2102_s16, 4  ;;  %s66_s20 = sshll.u32 %s3413_s3, 4  ;;  %s43_s17 = int_to_ptr.vmem [resolvable:$true] %s42_s17  ;;  %s67_s20 = int_to_ptr.hbm [resolvable:$true] %s66_s20 }
   0xb   :  { %s3421_s21 = smov 128   ;;  %s3422_s22 = smov 8  }
   0xc   :  { %48 = dma.hbm_to_vmem [thread:$0]  %s41_s15, 1024, %s43_s17, [#allocation8], %s3421_s21, %s3421_s21, %s3422_s22  }
   0xd   :  { %s2105_s23 = smov [#allocation10]   ;;  %s124_s1 = sshll.u32 %s3418_s8, 4  ;;  %s125_s1 = int_to_ptr.vmem [resolvable:$true] %s124_s1 }
   0xe   :  { %s68_s24 = sshll.u32 %s2105_s23, 4  ;;  %s27_s28 = sshll.u32 %s3410_s0, 4  ;;  %s69_s24 = int_to_ptr.vmem [resolvable:$true] %s68_s24  ;;  %s28_s28 = int_to_ptr.hbm [resolvable:$true] %s27_s28 }
   0xf   :  { %74 = dma.hbm_to_vmem [thread:$0]  %s67_s20, 512, %s69_s24, [#allocation11], %s3421_s21, %s3421_s21, %s3422_s22  }
  0x10   :  { %s2106_s29 = smov [#allocation17]   ;;  %s2107_s30 = smov [#allocation2]  }
  0x11   :  { %127 = dma.vmem_to_smem %s125_s1, 64, %s2106_s29, [#allocation18]  }
  0x12   :  { %s29_s11 = sshll.u32 %s2107_s30, 4  ;;  %s53_s14 = sshll.u32 %s3412_s2, 4  ;;  %s30_s11 = int_to_ptr.vmem [resolvable:$true] %s29_s11  ;;  %s54_s14 = int_to_ptr.hbm [resolvable:$true] %s53_s14 }
  0x13   :  { %35 = dma.hbm_to_vmem [thread:$0]  %s28_s28, 256, %s30_s11, [#allocation3], %s3421_s21, %s3421_s21, %s3422_s22  }
  0x14   :  { %s79_s16 = sshll.u32 %s3414_s4, 4  ;;  %s2108_s0 = smov [#allocation9]   ;;  %s80_s16 = int_to_ptr.hbm [resolvable:$true] %s79_s16 }
  0x15   :  { %s55_s17 = sshll.u32 %s2108_s0, 4  ;;  %s2109_s18 = smov [#allocation12]   ;;  %s56_s17 = int_to_ptr.vmem [resolvable:$true] %s55_s17 }
  0x16   :  { %61 = dma.hbm_to_vmem [thread:$0]  %s54_s14, 512, %s56_s17, [#allocation8], %s3421_s21, %s3421_s21, %s3422_s22  }
  0x17   :  { %s81_s2 = sshll.u32 %s2109_s18, 4  ;;  %s92_s23 = sshll.u32 %s3415_s5, 4  ;;  %s82_s2 = int_to_ptr.vmem [resolvable:$true] %s81_s2  ;;  %s93_s23 = int_to_ptr.hbm [resolvable:$true] %s92_s23 }
  0x18   :  { %87 = dma.hbm_to_vmem [thread:$0]  %s80_s16, 512, %s82_s2, [#allocation11], %s3421_s21, %s3421_s21, %s3422_s22  }
  0x19   :  { %s106_s25 = sshll.u32 %s3416_s6, 4  ;;  %s2110_s26 = smov [#allocation13]   ;;  %s107_s25 = int_to_ptr.hbm [resolvable:$true] %s106_s25 }
  0x1a   :  { %s94_s1 = sshll.u32 %s2110_s26, 4  ;;  %s2111_s3 = smov [#allocation15]   ;;  %s95_s1 = int_to_ptr.vmem [resolvable:$true] %s94_s1 }
  0x1b   :  { %100 = dma.hbm_to_vmem [thread:$0]  %s93_s23, 512, %s95_s1, [#allocation14], %s3421_s21, %s3421_s21, %s3422_s22  }
  0x1c   :  { %109 = dma.hbm_to_smem %s107_s25, 128, %s2111_s3, [#allocation5]  }
  0x1d   :  { %s115_s28 = sshll.u32 %s3417_s7, 4  ;;  %s133_s11 = sshll.u32 %s3419_s9, 4  ;;  %s116_s28 = int_to_ptr.vmem [resolvable:$true] %s115_s28  ;;  %s134_s11 = int_to_ptr.vmem [resolvable:$true] %s133_s11 }
  0x1e   :  { %s2112_s6 = smov [#allocation16]   ;;  %s2113_s12 = smov [#allocation19]  }
  0x1f   :  { %118 = dma.vmem_to_smem %s116_s28, 16, %s2112_s6, [#allocation6]  }
  0x20   :  { %136 = dma.vmem_to_smem %s134_s11, 16, %s2113_s12, [#allocation18]  }
  0x21   :  { %2086 = dma.done.wait [#allocation3], 256  }
  0x22   :  { %2087 = vsyncadd [#allocation3], 4294967040 }
  0x23   :  { %2088 = dma.done.wait [#allocation8], 1536  }
  0x24   :  { %2089 = vsyncadd [#allocation8], 4294965760 }
  0x25   :  { %2090 = dma.done.wait [#allocation11], 1024  }
  0x26   :  { %2091 = vsyncadd [#allocation11], 4294966272 }
  0x27   :  { %2092 = dma.done.wait [#allocation14], 512  }
  0x28   :  { %2093 = vsyncadd [#allocation14], 4294966784 }
  0x29   :  { %2094 = dma.done.wait [#allocation5], 128  }
  0x2a   :  { %2095 = vsyncadd [#allocation5], 4294967168 }
  0x2b   :  { %2096 = dma.done.wait [#allocation6], 16  }
  0x2c   :  { %2097 = vsyncadd [#allocation6], 4294967280 }
  0x2d   :  { %2098 = dma.done.wait [#allocation18], 80  }
  0x2e   :  { %2099 = vsyncadd [#allocation18], 4294967216 }
  0x2f   :  { %177 = sfence }
  0x30   :  { %v217_v0 = vld [vmem:[#allocation10 + $0x18] sm:$0xff]  ;;  %v216_v1 = vld [vmem:[#allocation10 + $0x10] sm:$0xff]  ;;  %v215_v3 = vld [vmem:[#allocation10 + $0x8] sm:$0xff]  ;;  %vm184_vm0 = vcmask 261120   ;;  %vm276_vm1 = vcmask 64512   ;;  %s3424_s7 = smov 112  }
  0x31   :  { %230 = vmatpush.msra.mxu1 %v217_v0  ;;  %1805 = vmatpush.msra.mxu2 %v217_v0  ;;  %v183_v2 = vld [vmem:[#allocation9 + $0x18] sm:$0xff]  ;;  %v182_v4 = vld [vmem:[#allocation9 + $0x10] sm:$0xff]  ;;  %v181_v5 = vld [vmem:[#allocation9 + $0x8] sm:$0xff]  ;;  %s3427_s9 = smov 104   ;;  %s3425_s13 = smov 120  }
  0x32   :  { %203 = vmatpush.msra.mxu0 %v183_v2  ;;  %v214_v6 = vld [vmem:[#allocation10] sm:$0xff]  ;;  %v178_v7 = vld [vmem:[#allocation2] sm:$0xff]  ;;  %v179_v8 = vld [vmem:[#allocation2 + $0x8] sm:$0xff]  ;;  %s2257_s14 = sld [smem:[#allocation15]] }
  0x33   :  { %231 = vmatpush.msra.mxu1 %v216_v1  ;;  %1806 = vmatpush.msra.mxu2 %v216_v1  ;;  %v180_v9 = vld [vmem:[#allocation9] sm:$0xff]  ;;  %v244_v14 = vld [vmem:[#allocation12 + $0x18] sm:$0xff]  ;;  %v243_v15 = vld [vmem:[#allocation12 + $0x10] sm:$0xff]  ;;  %s2259_s8 = sld [smem:[#allocation15 + $0x80]] }
  0x34   :  { %204 = vmatpush.msra.mxu0 %v182_v4  ;;  %v242_v16 = vld [vmem:[#allocation12 + $0x8] sm:$0xff]  ;;  %v241_v17 = vld [vmem:[#allocation12] sm:$0xff]  ;;  %s2261_s15 = sld [smem:[#allocation15 + $0x100]]  ;;  %v2543_v2 = vld [vmem:[#allocation7 + $0x30] sm:$0xff] }
  0x35   :  { %232 = vmatpush.msra.mxu1 %v215_v3  ;;  %1807 = vmatpush.msra.mxu2 %v215_v3  ;;  %s2263_s16 = sld [smem:[#allocation15 + $0x180]]  ;;  %3582 = vst [vmem:[#allocation62_spill] sm:$0xff] %v2543_v2 }
  0x36   :  { %205 = vmatpush.msra.mxu0 %v181_v5  ;;  %s2265_s0 = sld [smem:[#allocation15 + $0x200]] }
  0x37   :  { %233 = vmatpush.msra.mxu1 %v214_v6  ;;  %1808 = vmatpush.msra.mxu2 %v214_v6  ;;  %s2267_s17 = sld [smem:[#allocation15 + $0x280]] }
  0x38   :  { %1671 = vmatmul.msk.f32.vlgmr.msra.gmra.mxu1 %vm184_vm0, %v178_v7  ;;  %1672 = vmatmul.msk.f32.vlgmr.msra.gmra.mxu2 %vm184_vm0, %v179_v8  ;;  %s2269_s18 = sld [smem:[#allocation15 + $0x300]]  ;;  %v605_v32 = vstv %s2257_s14 }
  0x39   :  { %206 = vmatpush.msra.mxu0 %v180_v9  ;;  %257 = vmatpush.msrb.mxu2 %v244_v14  ;;  %s2271_s2 = sld [smem:[#allocation15 + $0x380]]  ;;  %v648_v33 = vstv %s2259_s8  ;;  %v2525_v9 = vld [vmem:[#allocation7 + $0x18] sm:$0xff] }
  0x3a   :  { %1669 = vmatmul.msk.f32.vlgmr.msra.gmra.mxu0 %vm184_vm0, %v178_v7  ;;  %s2273_s19 = sld [smem:[#allocation15 + $0x1]]  ;;  %v691_v34 = vstv %s2261_s15  ;;  %3579 = vst [vmem:[#allocation61_spill] sm:$0xff] %v2525_v9 }
  0x3b   :  { %258 = vmatpush.msrb.mxu2 %v243_v15  ;;  %s2275_s20 = sld [smem:[#allocation15 + $0x81]]  ;;  %v734_v35 = vstv %s2263_s16 }
  0x3c   :  { %s2277_s23 = sld [smem:[#allocation15 + $0x101]]  ;;  %v777_v36 = vstv %s2265_s0 }
  0x3d   :  { %259 = vmatpush.msrb.mxu2 %v242_v16  ;;  %s2279_s4 = sld [smem:[#allocation15 + $0x181]]  ;;  %v820_v37 = vstv %s2267_s17 }
  0x3e   :  { %s2281_s24 = sld [smem:[#allocation15 + $0x201]]  ;;  %v863_v38 = vstv %s2269_s18 }
  0x3f   :  { %260 = vmatpush.msrb.mxu2 %v241_v17  ;;  %s2283_s25 = sld [smem:[#allocation15 + $0x281]]  ;;  %v906_v39 = vstv %s2271_s2 }
  0x40   :  { %1673 = vmatmul.msk.f32.vlgmr.msrb.gmra.mxu2 %vm184_vm0, %v178_v7  ;;  %s2285_s26 = sld [smem:[#allocation15 + $0x301]]  ;;  %v3466_v58 = vstv %s2273_s19 }
  0x41   :  { %s2287_s1 = sld [smem:[#allocation15 + $0x381]]  ;;  %v3465_v59 = vstv %s2275_s20 }
  0x42   :  { %1670 = vmatmul.msk.f32.gmra.mxu0 %vm184_vm0, %v179_v8  ;;  %s2289_s3 = sld [smem:[#allocation15 + $0x2]]  ;;  %v3464_v60 = vstv %s2277_s23 }
  0x43   :  { %3532 = sst [smem:[#allocation29_spill]] %s2279_s4  ;;  %v3462_v61 = vstv %s2279_s4 }
  0x44   :  { %3533 = sst [smem:[#allocation30_spill]] %s2281_s24  ;;  %v3459_v62 = vstv %s2281_s24 }
  0x45   :  { %3534 = sst [smem:[#allocation31_spill]] %s2283_s25  ;;  %v3458_v63 = vstv %s2283_s25 }
  0x46   :  { %3535 = sst [smem:[#allocation32_spill]] %s2285_s26  ;;  %v3456_v0 = vstv %s2285_s26 }
  0x47   :  { %3536 = sst [smem:[#allocation33_spill]] %s2287_s1  ;;  %v3455_v1 = vstv %s2287_s1 }
  0x48   :  { %1674 = vmatmul.msk.f32.gmra.mxu2 %vm184_vm0, %v179_v8  ;;  %3537 = sst [smem:[#allocation34_spill]] %s2289_s3 }
  0x49   :  { %s2291_s5 = sld [smem:[#allocation15 + $0x82]] }
  0x4a   :  { %s2293_s27 = sld [smem:[#allocation15 + $0x102]] }
  0x4b   :  { %s2295_s28 = sld [smem:[#allocation15 + $0x182]] }
  0x4c   :  { %s2297_s29 = sld [smem:[#allocation15 + $0x202]] }
  0x4d   :  { %s2299_s30 = sld [smem:[#allocation15 + $0x282]] }
  0x4e   :  { %s2301_s11 = sld [smem:[#allocation15 + $0x302]] }
  0x4f   :  { %3538 = sst [smem:[#allocation35_spill]] %s2291_s5 }
  0x50   :  { %3539 = sst [smem:[#allocation36_spill]] %s2293_s27 }
  0x51   :  { %3540 = sst [smem:[#allocation37_spill]] %s2295_s28 }
  0x52   :  { %3541 = sst [smem:[#allocation38_spill]] %s2297_s29 }
  0x53   :  { %3542 = sst [smem:[#allocation39_spill]] %s2299_s30 }
  0x54   :  { %3543 = sst [smem:[#allocation40_spill]] %s2301_s11 }
  0x55   :  { %s2303_s6 = sld [smem:[#allocation15 + $0x382]] }
  0x56   :  { %s2305_s12 = sld [smem:[#allocation15 + $0x3]] }
  0x57   :  { %s2307_s21 = sld [smem:[#allocation15 + $0x83]] }
  0x58   :  { %s2309_s22 = sld [smem:[#allocation15 + $0x4]] }
  0x59   :  { %s2319_s10 = sld [smem:[#allocation15 + $0x85]] }
  0x5a   :  { %s2358_s14 = sld [smem:[#allocation15 + $0x204]] }
  0x5b   :  { %3544 = sst [smem:[#allocation41_spill]] %s2303_s6 }
  0x5c   :  { %3545 = sst [smem:[#allocation42_spill]] %s2305_s12 }
  0x5d   :  { %3546 = sst [smem:[#allocation43_spill]] %s2307_s21 }
  0x5e   :  { %3547 = sst [smem:[#allocation44_spill]] %s2309_s22 }
  0x5f   :  { %3552 = sst [smem:[#allocation49_spill]] %s2319_s10 }
  0x60   :  { %s2322_s21 = sld [smem:[#allocation15 + $0x86]] }
  0x61   :  { %s2324_s22 = sld [smem:[#allocation15 + $0x103]] }
  0x62   :  { %s2332_s12 = sld [smem:[#allocation15 + $0x183]] }
  0x63   :  { %s2338_s10 = sld [smem:[#allocation15 + $0x184]] }
  0x64   :  { %s2369_s8 = sld [smem:[#allocation15 + $0x205]] }
  0x65   :  { %s2371_s15 = sld [smem:[#allocation15 + $0x283]] }
  0x66   :  { %3553 = sst [smem:[#allocation50_spill]] %s2322_s21 }
  0x67   :  { %s2344_s21 = sld [smem:[#allocation15 + $0x185]] }
  0x68   :  { %s2373_s16 = sld [smem:[#allocation15 + $0x284]] }
  0x69   :  { %s2379_s0 = sld [smem:[#allocation15 + $0x303]] }
  0x6a   :  { %3556 = sst [smem:[#allocation53_spill]] %s2369_s8 }
  0x6b   :  { %s2385_s17 = sld [smem:[#allocation15 + $0x304]] }
  0x6c   :  { %s2391_s18 = sld [smem:[#allocation15 + $0x383]] }
  0x6d   :  { %s2397_s2 = sld [smem:[#allocation15 + $0x7]] }
  0x6e   :  { %s2407_s28 = sld [smem:[#allocation15 + $0x87]] }
  0x6f   :  { %3557 = sst [smem:[#allocation54_spill]] %s2379_s0 }
  0x70   :  { %s3560_s6 = sld [smem:[#allocation44_spill]] }
  0x71   :  { %3558 = sst [smem:[#allocation55_spill]] %s2385_s17  ;;  %v3457_v4 = vstv %s2385_s17 }
  0x72   :  { %s2417_s11 = sld [smem:[#allocation15 + $0x107]] }
  0x73   :  { %s3566_s5 = sld [smem:[#allocation43_spill]] }
  0x74   :  { %s2430_s3 = sld [smem:[#allocation15 + $0x186]]  ;;  %v3461_v8 = vstv %s2407_s28 }
  0x75   :  { %s3568_s1 = sld [smem:[#allocation49_spill]] }
  0x76   :  { %s2442_s26 = sld [smem:[#allocation15 + $0x187]] }
  0x77   :  { %s3570_s0 = sld [smem:[#allocation50_spill]] }
  0x78   :  { %s2449_s24 = sld [smem:[#allocation15 + $0x206]]  ;;  %v3463_v3 = vstv %s2417_s11 }
  0x79   :  { %s2459_s4 = sld [smem:[#allocation15 + $0x207]] }
  0x7a   :  { %3567 = sst [smem:[#allocation44_spill]] %s2430_s3 }
  0x7b   :  { %s3599_s17 = sld [smem:[#allocation31_spill]] }
  0xb5   :  { %v235_v10 = vpop.f32.mrf.mxu1 }
  0xb6   :  { %387 = vrot.lane.b32.xlu2 %v235_v10, %s3424_s7  ;;  %443 = vrot.lane.b32.xlu1 %v235_v10, %s3427_s9 }
  0xb7   :  { %331 = vrot.lane.b32.xlu0 %v235_v10, %s3425_s13  ;;  %1675 = vmatpush.xpose.msk.msra.mxu3 %vm276_vm1, %v235_v10  ;;  %v208_v11 = vpop.f32.mrf.mxu0  ;;  %v2523_v10 = vld [vmem:[#allocation7 + $0x28] sm:$0xff] }
  0xb8   :  { %3578 = vst [vmem:[#allocation60_spill] sm:$0xff] %v2523_v10 }
  0xba   :  { %1676 = vmatmul.msk.f32.vlgmr.msra.gmra.mxu3 %vm276_vm1, %v208_v11 }
  0xbb   :  { %v238_v12 = vpop.f32.mrf.mxu2 }
  0xbc   :  { %1677 = vmatpush.xpose.msk.msrb.mxu3 %vm276_vm1, %v238_v12 }
  0xbe   :  { %359 = vrot.lane.b32.xlu2 %v238_v12, %s3425_s13  ;;  %441 = vrot.lane.b32.xlu1 %v208_v11, %s3427_s9 }
  0xbf   :  { %329 = vrot.lane.b32.xlu0 %v208_v11, %s3425_s13  ;;  %v211_v13 = vpop.f32.mrf.mxu0 }
  0xc2   :  { %1678 = vmatmul.msk.f32.vlgmr.msrb.gmra.mxu3 %vm276_vm1, %v211_v13 }
  0xc3   :  { %v2317_v30 = vpop.f32.mrf.mxu2 }
  0xc4   :  { %3551 = vst [vmem:[#allocation48_spill] sm:$0xff] %v2317_v30 }
  0xc6   :  { %385 = vrot.lane.b32.xlu1 %v208_v11, %s3424_s7  ;;  %357 = vrot.lane.b32.xlu2 %v211_v13, %s3425_s13  ;;  %s2313_s13 = sld [smem:[#allocation15 + $0x6]] }
  0xc7   :  { %415 = vrot.lane.b32.xlu0 %v238_v12, %s3424_s7 }
  0xcb   :  { %v2346_v41 = vpop.f32.mrf.mxu2 }
  0xcc   :  { %3549 = sst [smem:[#allocation46_spill]] %s2313_s13  ;;  %3555 = vst [vmem:[#allocation52_spill] sm:$0xff] %v2346_v41 }
  0xcd   :  { %s2328_s13 = sld [smem:[#allocation15 + $0x105]] }
  0xce   :  { %471 = vrot.lane.b32.xlu1 %v238_v12, %s3427_s9  ;;  %469 = vrot.lane.b32.xlu2 %v211_v13, %s3427_s9  ;;  %s2315_s9 = sld [smem:[#allocation15 + $0x84]] }
  0xcf   :  { %413 = vrot.lane.b32.xlu0 %v211_v13, %s3424_s7  ;;  %s2311_s7 = sld [smem:[#allocation15 + $0x5]] }
  0xd0   :  { %s3565_s27 = sld [smem:[#allocation46_spill]] }
  0xd3   :  { %3554 = sst [smem:[#allocation51_spill]] %s2328_s13 }
  0xd4   :  { %3550 = sst [smem:[#allocation47_spill]] %s2315_s9 }
  0xd5   :  { %3548 = sst [smem:[#allocation45_spill]] %s2311_s7 }
  0xd6   :  { %s2326_s7 = sld [smem:[#allocation15 + $0x104]] }
  0xd7   :  { %s2330_s9 = sld [smem:[#allocation15 + $0x106]] }
  0xd8   :  { %s2348_s13 = sld [smem:[#allocation15 + $0x203]] }
  0xd9   :  { %s3561_s30 = sld [smem:[#allocation45_spill]] }
  0xda   :  { %s3562_s29 = sld [smem:[#allocation47_spill]] }
  0xdb   :  { %s3571_s25 = sld [smem:[#allocation51_spill]] }
  0xdc   :  { %3572 = sst [smem:[#allocation45_spill]] %s2449_s24 }
  0xdd   :  { %3573 = sst [smem:[#allocation47_spill]] %s2459_s4 }
 0x110   :  { %v388_v18 = vpop.permute.xlu2 %387 }
 0x111   :  { %1683 = vmatpush.xpose.msk.msrb.mxu1 %vm276_vm1, %v388_v18 }
 0x115   :  { %1323 = vmatpush.msra.mxu1 %v2317_v30 }
 0x118   :  { %v360_v19 = vpop.permute.xlu2 %359 }
 0x119   :  { %1681 = vmatpush.xpose.msk.msrb.mxu0 %vm276_vm1, %v360_v19 }
 0x120   :  { %v358_v20 = vpop.permute.xlu2 %357 }
 0x121   :  { %1682 = vmatmul.msk.f32.vlgmr.msrb.gmra.mxu0 %vm276_vm1, %v358_v20 }
 0x128   :  { %v444_v21 = vpop.permute.xlu1 %443  ;;  %v470_v29 = vpop.permute.xlu2 %469 }
 0x129   :  { %v332_v22 = vpop.permute.xlu0 %331 }
 0x12a   :  { %1679 = vmatpush.xpose.msk.msra.mxu3 %vm276_vm1, %v332_v22  ;;  %v2425_v22 = vld [vmem:[#allocation7] sm:$0xff] }
 0x12b   :  { %3563 = vst [vmem:[#allocation56_spill] sm:$0xff] %v2425_v22 }
 0x12e   :  { %1687 = vmatpush.xpose.msk.msrb.mxu3 %vm276_vm1, %v444_v21 }
 0x130   :  { %v442_v23 = vpop.permute.xlu1 %441 }
 0x131   :  { %v330_v24 = vpop.permute.xlu0 %329 }
 0x132   :  { %1680 = vmatmul.msk.f32.vlgmr.msra.gmra.mxu3 %vm276_vm1, %v330_v24  ;;  %v838_v24 = vstv %s2373_s16  ;;  %s3595_s16 = sld [smem:[#allocation29_spill]] }
 0x133   :  { %v2531_v7 = vmul.f32 %v838_v24, %v2425_v22 }
 0x138   :  { %v386_v25 = vpop.permute.xlu1 %385 }
 0x139   :  { %v416_v26 = vpop.permute.xlu0 %415  ;;  %1684 = vmatmul.msk.f32.vlgmr.msrb.gmra.mxu1 %vm276_vm1, %v386_v25 }
 0x13a   :  { %1685 = vmatpush.xpose.msk.msra.mxu2 %vm276_vm1, %v416_v26  ;;  %1688 = vmatmul.msk.f32.vlgmr.msrb.gmra.mxu3 %vm276_vm1, %v442_v23  ;;  %v2427_v23 = vld [vmem:[#allocation7 + $0x8] sm:$0xff] }
 0x13b   :  { %3564 = vst [vmem:[#allocation57_spill] sm:$0xff] %v2427_v23 }
 0x13d   :  { %v300_v31 = vpop.f32.mrf.mxu3 }
 0x13e   :  { %v2350_v42 = vmul.f32 %v605_v32, %v300_v31  ;;  %v2352_v43 = vmul.f32 %v648_v33, %v300_v31  ;;  %v2354_v44 = vmul.f32 %v691_v34, %v300_v31  ;;  %v2356_v45 = vmul.f32 %v734_v35, %v300_v31  ;;  %1346 = vmatpush.msrb.mxu2 %v2346_v41 }
 0x13f   :  { %v2361_v46 = vmul.f32 %v777_v36, %v300_v31  ;;  %v2363_v47 = vmul.f32 %v820_v37, %v300_v31  ;;  %v2365_v48 = vmul.f32 %v863_v38, %v300_v31  ;;  %v2367_v49 = vmul.f32 %v906_v39, %v300_v31 }
 0x140   :  { %v472_v27 = vpop.permute.xlu1 %471 }
 0x141   :  { %v414_v28 = vpop.permute.xlu0 %413  ;;  %1689 = vmatpush.xpose.msk.msra.mxu0 %vm276_vm1, %v472_v27 }
 0x142   :  { %1686 = vmatmul.msk.f32.vlgmr.msra.gmra.mxu2 %vm276_vm1, %v414_v28 }
 0x144   :  { %1690 = vmatmul.msk.f32.vlgmr.msra.gmra.mxu0 %vm276_vm1, %v470_v29  ;;  %v2440_v29 = vld [vmem:[#allocation7 + $0x10] sm:$0xff] }
 0x145   :  { %v326_v40 = vpop.f32.mrf.mxu3  ;;  %3569 = vst [vmem:[#allocation58_spill] sm:$0xff] %v2440_v29 }
 0x146   :  { %v607_v50 = vmul.f32 %v605_v32, %v326_v40  ;;  %v650_v51 = vmul.f32 %v648_v33, %v326_v40  ;;  %v693_v52 = vmul.f32 %v691_v34, %v326_v40  ;;  %v736_v53 = vmul.f32 %v734_v35, %v326_v40 }
 0x147   :  { %v779_v54 = vmul.f32 %v777_v36, %v326_v40  ;;  %v822_v55 = vmul.f32 %v820_v37, %v326_v40  ;;  %v865_v56 = vmul.f32 %v863_v38, %v326_v40  ;;  %v908_v57 = vmul.f32 %v906_v39, %v326_v40 }
 0x148   :  { %v623_v32 = vstv %s3560_s6  ;;  %v628_v33 = vstv %s3561_s30  ;;  %v666_v34 = vstv %s3562_s29  ;;  %v633_v37 = vstv %s3565_s27  ;;  %s2469_s29 = sld [smem:[#allocation15 + $0x285]] }
 0x149   :  { %v2452_v35 = vmul.f32 %v623_v32, %v2425_v22  ;;  %v2455_v36 = vmul.f32 %v628_v33, %v2427_v23  ;;  %v2462_v39 = vmul.f32 %v633_v37, %v2440_v29  ;;  %v2465_v40 = vmul.f32 %v666_v34, %v2425_v22  ;;  %s2477_s27 = sld [smem:[#allocation15 + $0x286]] }
 0x14a   :  { %s2507_s30 = sld [smem:[#allocation16 + $0x2]]  ;;  %v2553_v5 = vmul.f32 %v628_v33, %v2523_v10 }
 0x14b   :  { %s2545_s6 = sld [smem:[#allocation16 + $0x3]] }
 0x14e   :  { %3574 = sst [smem:[#allocation46_spill]] %s2469_s29 }
 0x14f   :  { %3575 = sst [smem:[#allocation43_spill]] %s2477_s27  ;;  %v3489_v30 = vstv %s2477_s27 }
 0x150   :  { %s3613_s27 = sld [smem:[#allocation36_spill]] }
 0x151   :  { %3583 = sst [smem:[#allocation51_spill]] %s2545_s6 }
 0x19e   :  { %v382_v6 = vpop.f32.mrf.mxu0 }
 0x19f   :  { %v610_v11 = vmul.f32 %v3466_v58, %v382_v6  ;;  %v653_v12 = vmul.f32 %v3465_v59, %v382_v6  ;;  %v696_v13 = vmul.f32 %v3464_v60, %v382_v6  ;;  %v739_v14 = vmul.f32 %v3462_v61, %v382_v6 }
 0x1a0   :  { %v782_v15 = vmul.f32 %v3459_v62, %v382_v6  ;;  %v825_v16 = vmul.f32 %v3458_v63, %v382_v6  ;;  %v868_v17 = vmul.f32 %v3456_v0, %v382_v6  ;;  %v911_v18 = vmul.f32 %v3455_v1, %v382_v6 }
 0x1a1   :  { %v2419_v19 = vadd.f32 %v610_v11, %v607_v50  ;;  %v2421_v20 = vadd.f32 %v653_v12, %v650_v51  ;;  %v2423_v21 = vadd.f32 %v696_v13, %v693_v52  ;;  %v2432_v25 = vadd.f32 %v739_v14, %v736_v53 }
 0x1a2   :  { %v2434_v26 = vadd.f32 %v782_v15, %v779_v54  ;;  %v2436_v27 = vadd.f32 %v825_v16, %v822_v55  ;;  %v2438_v28 = vadd.f32 %v868_v17, %v865_v56  ;;  %v2444_v31 = vadd.f32 %v911_v18, %v908_v57  ;;  %v2521_v17 = vld [vmem:[#allocation7 + $0x20] sm:$0xff] }
 0x1a3   :  { %v671_v50 = vstv %s3568_s1  ;;  %v709_v51 = vstv %s2326_s7  ;;  %v676_v53 = vstv %s3570_s0  ;;  %v714_v55 = vstv %s3571_s25  ;;  %s2489_s7 = sld [smem:[#allocation16]]  ;;  %3577 = vst [vmem:[#allocation59_spill] sm:$0xff] %v2521_v17 }
 0x1a4   :  { %v2472_v52 = vmul.f32 %v671_v50, %v2427_v23  ;;  %v2480_v56 = vmul.f32 %v676_v53, %v2440_v29  ;;  %v2483_v57 = vmul.f32 %v709_v51, %v2425_v22  ;;  %v2486_v6 = vmul.f32 %v714_v55, %v2427_v23  ;;  %s2499_s25 = sld [smem:[#allocation16 + $0x1]] }
 0x1a5   :  { %v3453_v11 = vstv %s2330_s9  ;;  %v752_v14 = vstv %s2338_s10  ;;  %v757_v15 = vstv %s2344_s21  ;;  %s3576_s1 = sld [smem:[#allocation54_spill]]  ;;  %v795_v18 = vstv %s2358_s14 }
 0x1a6   :  { %v2494_v12 = vmul.f32 %v3453_v11, %v2440_v29  ;;  %v2502_v16 = vmul.f32 %v752_v14, %v2425_v22  ;;  %v3454_v54 = vstv %s2369_s8  ;;  %v2510_v11 = vmul.f32 %v757_v15, %v2427_v23  ;;  %s2527_s10 = sld [smem:[#allocation15 + $0x287]] }
 0x1a7   :  { %v2513_v13 = vmul.f32 %v795_v18, %v2425_v22  ;;  %v2518_v38 = vmul.f32 %v3454_v54, %v2427_v23  ;;  %s2535_s21 = sld [smem:[#allocation15 + $0x305]]  ;;  %v2540_v54 = vmul.f32 %v3457_v4, %v2425_v22  ;;  %v3460_v1 = vstv %s2397_s2 }
 0x1a8   :  { %v2550_v0 = vmul.f32 %v623_v32, %v2521_v17  ;;  %s2555_s14 = sld [smem:[#allocation16 + $0x4]]  ;;  %v2560_v4 = vmul.f32 %v3460_v1, %v2525_v9  ;;  %v2564_v63 = vmul.f32 %v666_v34, %v2521_v17  ;;  %v2567_v32 = vmul.f32 %v709_v51, %v2521_v17 }
 0x1a9   :  { %v2570_v33 = vmul.f32 %v752_v14, %v2521_v17  ;;  %v2575_v62 = vmul.f32 %v3461_v8, %v2525_v9  ;;  %v2578_v1 = vmul.f32 %v633_v37, %v2543_v2  ;;  %v2581_v34 = vmul.f32 %v795_v18, %v2521_v17  ;;  %s3597_s0 = sld [smem:[#allocation30_spill]] }
 0x1aa   :  { %3585 = vst [vmem:[#allocation63_spill] sm:$0xff] %v2560_v4  ;;  %v2584_v51 = vmul.f32 %v838_v24, %v2521_v17  ;;  %v2589_v14 = vmul.f32 %v3463_v3, %v2525_v9  ;;  %v2592_v8 = vmul.f32 %v671_v50, %v2523_v10  ;;  %v2595_v37 = vmul.f32 %v714_v55, %v2523_v10  ;;  %s3601_s8 = sld [smem:[#allocation32_spill]] }
 0x1ab   :  { %3586 = vst [vmem:[#allocation64_spill] sm:$0xff] %v2575_v62  ;;  %v2598_v18 = vmul.f32 %v757_v15, %v2523_v10  ;;  %v3472_v24 = vstv %s2430_s3  ;;  %v2602_v61 = vmul.f32 %v676_v53, %v2543_v2  ;;  %v3475_v59 = vstv %s2442_s26  ;;  %s3602_s3 = sld [smem:[#allocation33_spill]] }
 0x1ac   :  { %3580 = sst [smem:[#allocation49_spill]] %s2527_s10  ;;  %3587 = vst [vmem:[#allocation65_spill] sm:$0xff] %v2578_v1  ;;  %v3480_v55 = vstv %s2449_s24  ;;  %v3481_v58 = vstv %s2459_s4  ;;  %v3485_v15 = vstv %s2469_s29  ;;  %v2614_v41 = vmul.f32 %v3472_v24, %v2440_v29 }
 0x1ad   :  { %3581 = sst [smem:[#allocation50_spill]] %s2535_s21  ;;  %3588 = vst [vmem:[#allocation66_spill] sm:$0xff] %v2584_v51  ;;  %v2619_v53 = vmul.f32 %v3475_v59, %v2525_v9  ;;  %v2624_v50 = vmul.f32 %v3480_v55, %v2440_v29  ;;  %v2629_v60 = vmul.f32 %v3481_v58, %v2525_v9  ;;  %v2635_v24 = vmul.f32 %v3485_v15, %v2427_v23 }
 0x1ae   :  { %3584 = sst [smem:[#allocation54_spill]] %s2555_s14  ;;  %3589 = vst [vmem:[#allocation67_spill] sm:$0xff] %v2589_v14  ;;  %v3493_v59 = vstv %s2527_s10  ;;  %v2643_v55 = vmul.f32 %v3489_v30, %v2440_v29  ;;  %v3606_v3 = vstv %s2273_s19  ;;  %v3608_v15 = vstv %s2277_s23 }
 0x1af   :  { %3590 = vst [vmem:[#allocation68_spill] sm:$0xff] %v2592_v8  ;;  %v2648_v58 = vmul.f32 %v3493_v59, %v2525_v9  ;;  %s3609_s29 = sld [smem:[#allocation34_spill]]  ;;  %v3614_v30 = vstv %s3599_s17  ;;  %v3634_v51 = vstv %s3566_s5  ;;  %v3636_v62 = vstv %s2332_s12 }
 0x1b0   :  { %3591 = vst [vmem:[#allocation69_spill] sm:$0xff] %v2595_v37  ;;  %s3611_s4 = sld [smem:[#allocation35_spill]]  ;;  %v3637_v4 = vstv %s2348_s13 }
 0x1b1   :  { %3592 = vst [vmem:[#allocation70_spill] sm:$0xff] %v2598_v18  ;;  %s3615_s24 = sld [smem:[#allocation37_spill]]  ;;  %v3617_v9 = vstv %s3602_s3 }
 0x1b2   :  { %3593 = vst [vmem:[#allocation71_spill] sm:$0xff] %v2602_v61  ;;  %s3618_s10 = sld [smem:[#allocation38_spill]] }
 0x1b3   :  { %3594 = vst [vmem:[#allocation72_spill] sm:$0xff] %v2614_v41  ;;  %s3619_s19 = sld [smem:[#allocation39_spill]] }
 0x1b4   :  { %3596 = vst [vmem:[#allocation73_spill] sm:$0xff] %v2619_v53  ;;  %s3623_s23 = sld [smem:[#allocation41_spill]] }
 0x1b5   :  { %3598 = vst [vmem:[#allocation74_spill] sm:$0xff] %v2624_v50  ;;  %v354_v17 = vpop.f32.mrf.mxu3  ;;  %v3612_v50 = vstv %s3597_s0  ;;  %v3624_v41 = vstv %s3609_s29  ;;  %s3627_s3 = sld [smem:[#allocation42_spill]] }
 0x1b6   :  { %3600 = vst [vmem:[#allocation75_spill] sm:$0xff] %v2629_v60  ;;  %v609_v22 = vmul.f32 %v3606_v3, %v354_v17  ;;  %v3607_v60 = vstv %s2275_s20  ;;  %v695_v61 = vmul.f32 %v3608_v15, %v354_v17  ;;  %v781_v1 = vmul.f32 %v3612_v50, %v354_v17  ;;  %v410_v3 = vpop.f32.mrf.mxu1  ;;  %s3620_s20 = sld [smem:[#allocation40_spill]] }
 0x1b7   :  { %3603 = vst [vmem:[#allocation76_spill] sm:$0xff] %v2635_v24  ;;  %v652_v53 = vmul.f32 %v3607_v60, %v354_v17  ;;  %v3610_v24 = vstv %s3595_s16  ;;  %v824_v29 = vmul.f32 %v3614_v30, %v354_v17  ;;  %v910_v2 = vmul.f32 %v3617_v9, %v354_v17  ;;  %s2718_s17 = sld [smem:[#allocation15 + $0x307]] }
 0x1b8   :  { %3604 = vst [vmem:[#allocation77_spill] sm:$0xff] %v2643_v55  ;;  %v738_v10 = vmul.f32 %v3610_v24, %v354_v17  ;;  %v3616_v55 = vstv %s3601_s8  ;;  %v611_v60 = vadd.f32 %v609_v22, %v2350_v42  ;;  %v697_v24 = vadd.f32 %v695_v61, %v2354_v44  ;;  %s2712_s8 = sld [smem:[#allocation15 + $0x306]] }
 0x1b9   :  { %3605 = vst [vmem:[#allocation78_spill] sm:$0xff] %v2648_v58  ;;  %v867_v59 = vmul.f32 %v3616_v55, %v354_v17  ;;  %v654_v15 = vadd.f32 %v652_v53, %v2352_v43  ;;  %v3621_v58 = vstv %s2535_s21  ;;  %v783_v55 = vadd.f32 %v781_v1, %v2361_v46  ;;  %s2729_s16 = sld [smem:[#allocation15 + $0x384]] }
 0x1ba   :  { %v2673_v50 = vmul.f32 %v3621_v58, %v2427_v23  ;;  %v740_v30 = vadd.f32 %v738_v10, %v2356_v45  ;;  %v826_v9 = vadd.f32 %v824_v29, %v2363_v47  ;;  %v614_v18 = vmul.f32 %v3624_v41, %v410_v3  ;;  %s2736_s0 = sld [smem:[#allocation15 + $0x385]] }
 0x1bb   :  { %v869_v17 = vadd.f32 %v867_v59, %v2365_v48  ;;  %v3625_v42 = vstv %s3611_s4  ;;  %v3626_v43 = vstv %s3613_s27  ;;  %v3628_v61 = vstv %s3615_s24  ;;  %s2873_s21 = sld [smem:[#allocation17 + $0x2]] }
 0x1bc   :  { %3622 = vst [vmem:[#allocation79_spill] sm:$0xff] %v2673_v50  ;;  %v657_v22 = vmul.f32 %v3625_v42, %v410_v3  ;;  %v700_v44 = vmul.f32 %v3626_v43, %v410_v3  ;;  %v743_v58 = vmul.f32 %v3628_v61, %v410_v3  ;;  %v912_v53 = vadd.f32 %v910_v2, %v2367_v49 }
 0x1bd   :  { %v3629_v45 = vstv %s3618_s10  ;;  %v3630_v1 = vstv %s3619_s19  ;;  %v3631_v48 = vstv %s3620_s20  ;;  %v616_v59 = vadd.f32 %v614_v18, %v611_v60  ;;  %v466_v2 = vpop.f32.mrf.mxu3  ;;  %3641 = sst [smem:[#allocation29_spill]] %s2718_s17 }
 0x1be   :  { %v786_v46 = vmul.f32 %v3629_v45, %v410_v3  ;;  %v829_v47 = vmul.f32 %v3630_v1, %v410_v3  ;;  %v872_v41 = vmul.f32 %v3631_v48, %v410_v3  ;;  %v659_v10 = vadd.f32 %v657_v22, %v654_v15 }
 0x1bf   :  { %v702_v29 = vadd.f32 %v700_v44, %v697_v24  ;;  %v3632_v42 = vstv %s3623_s23  ;;  %v745_v61 = vadd.f32 %v743_v58, %v740_v30  ;;  %v3633_v14 = vstv %s3627_s3 }
 0x1c0   :  { %v915_v43 = vmul.f32 %v3632_v42, %v410_v3  ;;  %v788_v23 = vadd.f32 %v786_v46, %v783_v55  ;;  %v831_v50 = vadd.f32 %v829_v47, %v826_v9  ;;  %v874_v49 = vadd.f32 %v872_v41, %v869_v17  ;;  %3643 = sst [smem:[#allocation30_spill]] %s2736_s0 }
 0x1c1   :  { %v619_v45 = vmul.f32 %v3633_v14, %v466_v2  ;;  %v662_v37 = vmul.f32 %v3634_v51, %v466_v2  ;;  %v3635_v1 = vstv %s2324_s22  ;;  %v748_v48 = vmul.f32 %v3636_v62, %v466_v2  ;;  %v494_v47 = vpop.f32.mrf.mxu0  ;;  %s2754_s22 = sld [smem:[#allocation15 + $0x387]] }
 0x1c2   :  { %v705_v8 = vmul.f32 %v3635_v1, %v466_v2  ;;  %v791_v18 = vmul.f32 %v3637_v4, %v466_v2  ;;  %v3638_v60 = vstv %s2371_s15  ;;  %v3639_v24 = vstv %s3576_s1  ;;  %s2796_s15 = sld [smem:[#allocation17 + $0x82]] }
 0x1c3   :  { %v834_v15 = vmul.f32 %v3638_v60, %v466_v2  ;;  %v877_v22 = vmul.f32 %v3639_v24, %v466_v2  ;;  %v3640_v3 = vstv %s2391_s18  ;;  %v621_v55 = vadd.f32 %v619_v45, %v616_v59  ;;  %s2802_s18 = sld [smem:[#allocation17 + $0x83]] }
 0x1c4   :  { %v920_v30 = vmul.f32 %v3640_v3, %v466_v2  ;;  %v664_v9 = vadd.f32 %v662_v37, %v659_v10  ;;  %v707_v17 = vadd.f32 %v705_v8, %v702_v29  ;;  %v750_v44 = vadd.f32 %v748_v48, %v745_v61  ;;  %s2826_s1 = sld [smem:[#allocation17 + $0x86]] }
 0x1c5   :  { %v917_v58 = vadd.f32 %v915_v43, %v912_v53  ;;  %v793_v14 = vadd.f32 %v791_v18, %v788_v23  ;;  %v836_v46 = vadd.f32 %v834_v15, %v831_v50  ;;  %v879_v51 = vadd.f32 %v877_v22, %v874_v49 }
 0x1c6   :  { %v626_v62 = vadd.f32 %v2452_v35, %v621_v55  ;;  %v669_v4 = vadd.f32 %v2465_v40, %v664_v9  ;;  %v712_v41 = vadd.f32 %v2483_v57, %v707_v17  ;;  %v755_v8 = vadd.f32 %v2502_v16, %v750_v44 }
 0x1c7   :  { %v798_v23 = vadd.f32 %v2513_v13, %v793_v14  ;;  %v2722_v37 = vadd.f32 %v2531_v7, %v836_v46  ;;  %v2725_v50 = vadd.f32 %v2540_v54, %v879_v51  ;;  %v2727_v35 = vadd.f32 %v920_v30, %v917_v58  ;;  %3649 = sst [smem:[#allocation32_spill]] %s2754_s22 }
 0x1c8   :  { %v631_v40 = vadd.f32 %v2455_v36, %v626_v62  ;;  %v674_v57 = vadd.f32 %v2472_v52, %v669_v4  ;;  %v717_v16 = vadd.f32 %v2486_v6, %v712_v41  ;;  %v3642_v13 = vstv %s3627_s3  ;;  %v438_v6 = vpop.f32.mrf.mxu2  ;;  %s2747_s3 = sld [smem:[#allocation15 + $0x386]] }
 0x1c9   :  { %v620_v7 = vmul.f32 %v3642_v13, %v494_v47  ;;  %v2739_v54 = vadd.f32 %v2510_v11, %v755_v8  ;;  %v3644_v53 = vstv %s3566_s5  ;;  %v3645_v10 = vmov %v3635_v1  ;;  %s2764_s5 = sld [smem:[#allocation16 + $0x5]] }
 0x1ca   :  { %v663_v59 = vmul.f32 %v3644_v53, %v494_v47  ;;  %v706_v36 = vmul.f32 %v3645_v10, %v494_v47  ;;  %v3646_v29 = vstv %s2332_s12  ;;  %v636_v42 = vadd.f32 %v2462_v39, %v631_v40  ;;  %s2783_s12 = sld [smem:[#allocation16 + $0x7]] }
 0x1cb   :  { %v749_v52 = vmul.f32 %v3646_v29, %v494_v47  ;;  %v679_v43 = vadd.f32 %v2480_v56, %v674_v57  ;;  %v722_v11 = vadd.f32 %v2494_v12, %v717_v16  ;;  %v3648_v61 = vstv %s2348_s13  ;;  %s2774_s13 = sld [smem:[#allocation16 + $0x6]]  ;;  %v3671_v29 = vld [vmem:[#allocation68_spill] sm:$0xff] }
 0x1cc   :  { %v792_v49 = vmul.f32 %v3648_v61, %v494_v47  ;;  %v3650_v2 = vmov %v3638_v60  ;;  %v3651_v1 = vmov %v3639_v24  ;;  %v3652_v18 = vmov %v3640_v3  ;;  %3665 = sst [smem:[#allocation37_spill]] %s2796_s15  ;;  %v3673_v61 = vld [vmem:[#allocation66_spill] sm:$0xff] }
 0x1cd   :  { %v835_v45 = vmul.f32 %v3650_v2, %v494_v47  ;;  %v878_v48 = vmul.f32 %v3651_v1, %v494_v47  ;;  %v921_v60 = vmul.f32 %v3652_v18, %v494_v47  ;;  %v3653_v15 = vstv %s3609_s29  ;;  %3666 = sst [smem:[#allocation38_spill]] %s2802_s18  ;;  %v3676_v2 = vld [vmem:[#allocation70_spill] sm:$0xff]  ;;  %v3679_v18 = vld [vmem:[#allocation72_spill] sm:$0xff] }
 0x1ce   :  { %3647 = sst [smem:[#allocation31_spill]] %s2747_s3  ;;  %v615_v24 = vmul.f32 %v3653_v15, %v438_v6  ;;  %v3655_v39 = vstv %s3611_s4  ;;  %v3656_v22 = vstv %s3613_s27  ;;  %v3657_v12 = vstv %s3615_s24  ;;  %v3680_v15 = vld [vmem:[#allocation65_spill] sm:$0xff] }
 0x1cf   :  { %3654 = sst [smem:[#allocation33_spill]] %s2764_s5  ;;  %v658_v56 = vmul.f32 %v3655_v39, %v438_v6  ;;  %v701_v3 = vmul.f32 %v3656_v22, %v438_v6  ;;  %v744_v30 = vmul.f32 %v3657_v12, %v438_v6  ;;  %v3658_v55 = vstv %s3618_s10 }
 0x1d0   :  { %v787_v9 = vmul.f32 %v3658_v55, %v438_v6  ;;  %v617_v17 = vadd.f32 %v615_v24, %v2419_v19  ;;  %v3660_v44 = vstv %s3619_s19  ;;  %v3661_v14 = vstv %s3620_s20  ;;  %3663 = sst [smem:[#allocation35_spill]] %s2783_s12 }
 0x1d1   :  { %3659 = sst [smem:[#allocation34_spill]] %s2774_s13  ;;  %v830_v58 = vmul.f32 %v3660_v44, %v438_v6  ;;  %v873_v46 = vmul.f32 %v3661_v14, %v438_v6  ;;  %v3662_v51 = vstv %s3623_s23  ;;  %v660_v62 = vadd.f32 %v658_v56, %v2421_v20  ;;  %v3682_v56 = vld [vmem:[#allocation74_spill] sm:$0xff] }
 0x1d2   :  { %v916_v47 = vmul.f32 %v3662_v51, %v438_v6  ;;  %v703_v4 = vadd.f32 %v701_v3, %v2423_v21  ;;  %v746_v41 = vadd.f32 %v744_v30, %v2432_v25  ;;  %v789_v8 = vadd.f32 %v787_v9, %v2434_v26  ;;  %s2789_s4 = sld [smem:[#allocation17 + $0x80]]  ;;  %v3683_v3 = vld [vmem:[#allocation76_spill] sm:$0xff]  ;;  %v3684_v30 = vld [vmem:[#allocation71_spill] sm:$0xff] }
 0x1d3   :  { %v622_v40 = vadd.f32 %v620_v7, %v617_v17  ;;  %v832_v19 = vadd.f32 %v830_v58, %v2436_v27  ;;  %v875_v57 = vadd.f32 %v873_v46, %v2438_v28  ;;  %s2794_s24 = sld [smem:[#allocation17 + $0x81]]  ;;  %v665_v13 = vadd.f32 %v663_v59, %v660_v62  ;;  %v3685_v17 = vld [vmem:[#allocation73_spill] sm:$0xff]  ;;  %v3686_v58 = vld [vmem:[#allocation75_spill] sm:$0xff] }
 0x1d4   :  { %v918_v16 = vadd.f32 %v916_v47, %v2444_v31  ;;  %v708_v53 = vadd.f32 %v706_v36, %v703_v4  ;;  %v751_v20 = vadd.f32 %v749_v52, %v746_v41  ;;  %v794_v10 = vadd.f32 %v792_v49, %v789_v8  ;;  %s2809_s29 = sld [smem:[#allocation17 + $0x84]]  ;;  %v3670_v36 = vld [vmem:[#allocation64_spill] sm:$0xff]  ;;  %v3687_v46 = vld [vmem:[#allocation77_spill] sm:$0xff]  ;;  %v3688_v47 = vld [vmem:[#allocation79_spill] sm:$0xff] }
 0x1d5   :  { %v803_v21 = vadd.f32 %v2518_v38, %v798_v23  ;;  %v627_v25 = vadd.f32 %v2550_v0, %v622_v40  ;;  %v837_v26 = vadd.f32 %v835_v45, %v832_v19  ;;  %v2800_v7 = vadd.f32 %v878_v48, %v875_v57  ;;  %s2815_s27 = sld [smem:[#allocation17 + $0x85]]  ;;  %v3669_v23 = vld [vmem:[#allocation63_spill] sm:$0xff] }
 0x1d6   :  { %v670_v27 = vadd.f32 %v2564_v63, %v665_v13  ;;  %v713_v28 = vadd.f32 %v2567_v32, %v708_v53  ;;  %v756_v31 = vadd.f32 %v2570_v33, %v751_v20  ;;  %v2807_v59 = vadd.f32 %v921_v60, %v918_v16  ;;  %v3672_v33 = vld [vmem:[#allocation69_spill] sm:$0xff]  ;;  %3674 = sst [smem:[#allocation41_spill]] %s2826_s1  ;;  %v3691_v13 = vld [vmem:[#allocation78_spill] sm:$0xff] }
 0x1d7   :  { %v632_v38 = vadd.f32 %v2553_v5, %v627_v25  ;;  %v2813_v0 = vadd.f32 %v2581_v34, %v794_v10  ;;  %v641_v63 = vadd.f32 %v3669_v23, %v636_v42  ;;  %v684_v32 = vadd.f32 %v3670_v36, %v679_v43  ;;  %v3675_v5 = vld [vmem:[#allocation67_spill] sm:$0xff]  ;;  %s2832_s10 = sld [smem:[#allocation17 + $0x87]]  ;;  %v3692_v20 = vld [vmem:[#allocation58_spill] sm:$0xff]  ;;  %v3693_v10 = vld [vmem:[#allocation61_spill] sm:$0xff] }
 0x1d8   :  { %v675_v52 = vadd.f32 %v3671_v29, %v670_v27  ;;  %v2821_v6 = vadd.f32 %v3672_v33, %v713_v28  ;;  %v2824_v49 = vadd.f32 %v3673_v61, %v837_v26  ;;  %v727_v34 = vadd.f32 %v3675_v5, %v722_v11  ;;  %s2843_s19 = sld [smem:[#allocation19 + $0x1]]  ;;  %v3695_v29 = vld [vmem:[#allocation57_spill] sm:$0xff] }
 0x1d9   :  { %3664 = sst [smem:[#allocation36_spill]] %s2794_s24  ;;  %v2830_v45 = vadd.f32 %v3676_v2, %v756_v31  ;;  %v3677_v42 = vstv %s2489_s7  ;;  %v3678_v1 = vstv %s2499_s25  ;;  %v765_v60 = vadd.f32 %v3679_v18, %v2739_v54 }
 0x1da   :  { %3667 = sst [smem:[#allocation39_spill]] %s2809_s29  ;;  %v644_v43 = vadd.f32 %v3677_v42, %v641_v63  ;;  %v687_v48 = vadd.f32 %v3678_v1, %v684_v32  ;;  %v2841_v24 = vadd.f32 %v3680_v15, %v632_v38  ;;  %v3681_v11 = vstv %s2507_s30  ;;  %v3694_v63 = vld [vmem:[#allocation56_spill] sm:$0xff] }
 0x1db   :  { %3668 = sst [smem:[#allocation40_spill]] %s2815_s27  ;;  %v730_v39 = vadd.f32 %v3681_v11, %v727_v34  ;;  %v808_v22 = vadd.f32 %v3682_v56, %v803_v21  ;;  %v846_v12 = vadd.f32 %v3683_v3, %v2722_v37  ;;  %v2851_v55 = vadd.f32 %v3684_v30, %v675_v52 }
 0x1dc   :  { %v2853_v54 = vmax.f32 %v644_v43, 0.0  ;;  %v2855_v9 = vmax.f32 %v687_v48, 0.0  ;;  %v770_v44 = vadd.f32 %v3685_v17, %v765_v60  ;;  %s2858_s20 = sld [smem:[#allocation17]]  ;;  %v858_v51 = vstv %s2764_s5 }
 0x1dd   :  { %v813_v14 = vadd.f32 %v3686_v58, %v808_v22  ;;  %v851_v37 = vadd.f32 %v3687_v46, %v846_v12  ;;  %v889_v62 = vadd.f32 %v3688_v47, %v2725_v50  ;;  %s2865_s23 = sld [smem:[#allocation17 + $0x1]]  ;;  %v2867_v4 = vmax.f32 %v730_v39, 0.0 }
 0x1de   :  { %v3689_v41 = vstv %s2545_s6  ;;  %v891_v40 = vstv %s2712_s8  ;;  %v896_v19 = vstv %s2718_s17  ;;  %v3690_v57 = vstv %s2555_s14  ;;  %s2884_s6 = sld [smem:[#allocation17 + $0x3]] }
 0x1df   :  { %v773_v8 = vadd.f32 %v3689_v41, %v770_v44  ;;  %v816_v16 = vadd.f32 %v3690_v57, %v813_v14  ;;  %v856_v53 = vadd.f32 %v3691_v13, %v851_v37  ;;  %v892_v50 = vmul.f32 %v891_v40, %v3692_v20  ;;  %s2890_s14 = sld [smem:[#allocation17 + $0x4]] }
 0x1e0   :  { %v897_v21 = vmul.f32 %v896_v19, %v3693_v10  ;;  %v901_v25 = vstv %s2774_s13  ;;  %v924_v26 = vstv %s2729_s16  ;;  %v929_v27 = vstv %s2736_s0  ;;  %s2899_s17 = sld [smem:[#allocation17 + $0x5]] }
 0x1e1   :  { %v934_v28 = vstv %s2747_s3  ;;  %v2892_v31 = vmax.f32 %v773_v8, 0.0  ;;  %v859_v38 = vadd.f32 %v858_v51, %v856_v53  ;;  %v894_v23 = vadd.f32 %v892_v50, %v889_v62  ;;  %s2910_s5 = sld [smem:[#allocation17 + $0x6]] }
 0x1e2   :  { %v925_v36 = vmul.f32 %v924_v26, %v3694_v63  ;;  %v2901_v32 = vmax.f32 %v816_v16, 0.0  ;;  %v930_v52 = vmul.f32 %v929_v27, %v3695_v29  ;;  %v935_v33 = vmul.f32 %v934_v28, %v3692_v20  ;;  %s2918_s0 = sld [smem:[#allocation17 + $0x7]] }
 0x1e3   :  { %v939_v61 = vstv %s2754_s22  ;;  %v2912_v5 = vmax.f32 %v859_v38, 0.0  ;;  %v899_v34 = vadd.f32 %v897_v21, %v894_v23  ;;  %v990_v43 = vstv %s2789_s4  ;;  %s2924_s3 = sld [smem:[#allocation19]] }
 0x1e4   :  { %v927_v2 = vadd.f32 %v925_v36, %v2727_v35  ;;  %v940_v42 = vmul.f32 %v939_v61, %v3693_v10  ;;  %v993_v1 = vstv %s2794_s24  ;;  %v998_v48 = vstv %s2796_s15  ;;  %s2934_s22 = sld [smem:[#allocation17 + $0x100]] }
 0x1e5   :  { %v1003_v18 = vstv %s2802_s18  ;;  %v902_v60 = vadd.f32 %v901_v25, %v899_v34  ;;  %v991_v35 = vmul.f32 %v990_v43, %v2853_v54  ;;  %v994_v11 = vmul.f32 %v993_v1, %v2855_v9  ;;  %s2942_s13 = sld [smem:[#allocation17 + $0x101]] }
 0x1e6   :  { %v932_v15 = vadd.f32 %v930_v52, %v927_v2  ;;  %v944_v39 = vstv %s2783_s12  ;;  %v999_v56 = vmul.f32 %v998_v48, %v2867_v4  ;;  %v3529_v22 = vstv %s2809_s29  ;;  %s2949_s24 = sld [smem:[#allocation17 + $0x102]] }
 0x1e7   :  { %v3527_v3 = vstv %s2815_s27  ;;  %v2944_v12 = vmax.f32 %v902_v60, 0.0  ;;  %v996_v17 = vadd.f32 %v994_v11, %v991_v35  ;;  %v1004_v44 = vmul.f32 %v1003_v18, %v2892_v31  ;;  %s2959_s15 = sld [smem:[#allocation17 + $0x103]] }
 0x1e8   :  { %v937_v30 = vadd.f32 %v935_v33, %v932_v15  ;;  %v1009_v58 = vmul.f32 %v3529_v22, %v2901_v32  ;;  %v1014_v14 = vmul.f32 %v3527_v3, %v2912_v5  ;;  %v3518_v46 = vstv %s2826_s1  ;;  %s2963_s29 = sld [smem:[#allocation17 + $0x104]] }
 0x1e9   :  { %v3517_v37 = vstv %s2832_s10  ;;  %v1001_v62 = vadd.f32 %v999_v56, %v996_v17  ;;  %v3526_v41 = vstv %s2843_s19  ;;  %v949_v8 = vstv %s2858_s20  ;;  %s2971_s27 = sld [smem:[#allocation17 + $0x105]] }
 0x1ea   :  { %v942_v47 = vadd.f32 %v940_v42, %v937_v30  ;;  %v950_v57 = vmul.f32 %v949_v8, %v2853_v54  ;;  %v952_v16 = vstv %s2865_s23  ;;  %v957_v13 = vstv %s2873_s21  ;;  %s2981_s18 = sld [smem:[#allocation17 + $0x106]] }
 0x1eb   :  { %v962_v53 = vstv %s2884_s6  ;;  %v1006_v50 = vadd.f32 %v1004_v44, %v1001_v62  ;;  %v1019_v10 = vmul.f32 %v3518_v46, %v2944_v12  ;;  %v953_v21 = vmul.f32 %v952_v16, %v2855_v9  ;;  %s2989_s12 = sld [smem:[#allocation17 + $0x107]] }
 0x1ec   :  { %3696 = sst [smem:[#allocation42_spill]] %s2949_s24  ;;  %v945_v20 = vadd.f32 %v944_v39, %v942_v47  ;;  %v958_v38 = vmul.f32 %v957_v13, %v2867_v4  ;;  %v967_v23 = vstv %s2890_s14  ;;  %v3530_v63 = vstv %s2899_s17 }
 0x1ed   :  { %v3528_v36 = vstv %s2910_s5  ;;  %v1011_v52 = vadd.f32 %v1009_v58, %v1006_v50  ;;  %v955_v33 = vadd.f32 %v953_v21, %v950_v57  ;;  %v963_v34 = vmul.f32 %v962_v53, %v2892_v31  ;;  %s2996_s1 = sld [smem:[#allocation19 + $0x2]] }
 0x1ee   :  { %3697 = sst [smem:[#allocation80_spill]] %s2963_s29  ;;  %v2991_v29 = vmax.f32 %v945_v20, 0.0  ;;  %v968_v2 = vmul.f32 %v967_v23, %v2901_v32  ;;  %v973_v42 = vmul.f32 %v3530_v63, %v2912_v5  ;;  %v978_v60 = vmul.f32 %v3528_v36, %v2944_v12 }
 0x1ef   :  { %v3524_v15 = vstv %s2918_s0  ;;  %v1016_v35 = vadd.f32 %v1014_v14, %v1011_v52  ;;  %v960_v56 = vadd.f32 %v958_v38, %v955_v33  ;;  %v987_v30 = vstv %s2924_s3  ;;  %s3182_s21 = sld [smem:[#allocation17 + $0x183]] }
 0x1f0   :  { %v1024_v11 = vmul.f32 %v3517_v37, %v2991_v29  ;;  %v3516_v17 = vstv %s2934_s22  ;;  %v3514_v44 = vstv %s2942_s13  ;;  %v3515_v58 = vstv %s2949_s24  ;;  %s3698_s24 = sld [smem:[#allocation44_spill]] }
 0x1f1   :  { %v3523_v47 = vstv %s2959_s15  ;;  %v1021_v62 = vadd.f32 %v1019_v10, %v1016_v35  ;;  %v965_v57 = vadd.f32 %v963_v34, %v960_v56  ;;  %v1032_v14 = vmul.f32 %v3516_v17, %v2853_v54  ;;  %v3033_v56 = vld [vmem:[#allocation7 + $0x38] sm:$0xff]  ;;  %s3741_s6 = sld [smem:[#allocation39_spill]] }
 0x1f2   :  { %v1035_v20 = vmul.f32 %v3514_v44, %v2855_v9  ;;  %v983_v50 = vmul.f32 %v3524_v15, %v2991_v29  ;;  %v1040_v21 = vmul.f32 %v3515_v58, %v2867_v4  ;;  %v3521_v38 = vstv %s2963_s29  ;;  %s3700_s29 = sld [smem:[#allocation53_spill]] }
 0x1f3   :  { %v3522_v10 = vstv %s2971_s27  ;;  %v1026_v52 = vadd.f32 %v1024_v11, %v1021_v62  ;;  %v970_v33 = vadd.f32 %v968_v2, %v965_v57  ;;  %v1045_v35 = vmul.f32 %v3523_v47, %v2892_v31  ;;  %v3702_v47 = vld [vmem:[#allocation62_spill] sm:$0xff]  ;;  %s3197_s4 = sld [smem:[#allocation17 + $0x184]] }
 0x1f4   :  { %v1037_v34 = vadd.f32 %v1035_v20, %v1032_v14  ;;  %v1050_v44 = vmul.f32 %v3521_v38, %v2901_v32  ;;  %v1055_v58 = vmul.f32 %v3522_v10, %v2912_v5  ;;  %v3525_v17 = vstv %s2981_s18  ;;  %s3199_s23 = sld [smem:[#allocation17 + $0x185]] }
 0x1f5   :  { %v1064_v37 = vstv %s2989_s12  ;;  %v3045_v46 = vadd.f32 %v3526_v41, %v1026_v52  ;;  %v975_v2 = vadd.f32 %v973_v42, %v970_v33  ;;  %v1069_v62 = vstv %s2996_s1  ;;  %s3742_s14 = sld [smem:[#allocation40_spill]]  ;;  %s3766_s12 = smov 8  }
 0x1f6   :  { %v1042_v11 = vadd.f32 %v1040_v21, %v1037_v34  ;;  %v1060_v57 = vmul.f32 %v3525_v17, %v2944_v12  ;;  %v3699_v14 = vstv %s2397_s2  ;;  %v3701_v38 = vstv %s2407_s28  ;;  %s3705_s2 = sld [smem:[#allocation45_spill]] }
 0x1f7   :  { %v640_v20 = vmul.f32 %v3699_v14, %v3033_v56  ;;  %v683_v10 = vmul.f32 %v3701_v38, %v3033_v56  ;;  %v3703_v15 = vstv %s2330_s9  ;;  %v1119_v42 = vsel %vm276_vm1, %v3045_v46, -inf  ;;  %s3711_s9 = sld [smem:[#allocation47_spill]] }
 0x1f8   :  { %v721_v52 = vmul.f32 %v3703_v15, %v3702_v47  ;;  %v980_v21 = vadd.f32 %v978_v60, %v975_v2  ;;  %v1047_v33 = vadd.f32 %v1045_v35, %v1042_v11  ;;  %v3704_v34 = vstv %s2417_s11  ;;  %1120 = vmax.xlane.f32.xlu0 %v1119_v42  ;;  %v3708_v11 = vld [vmem:[#allocation60_spill] sm:$0xff]  ;;  %s3713_s28 = sld [smem:[#allocation51_spill]] }
 0x1f9   :  { %v726_v17 = vmul.f32 %v3704_v34, %v3033_v56  ;;  %v642_v14 = vadd.f32 %v640_v20, %v2841_v24  ;;  %v685_v38 = vadd.f32 %v683_v10, %v2851_v55  ;;  %v3706_v15 = vstv %s3698_s24  ;;  %s3714_s11 = sld [smem:[#allocation46_spill]] }
 0x1fa   :  { %v723_v41 = vadd.f32 %v721_v52, %v2821_v6  ;;  %v764_v3 = vmul.f32 %v3706_v15, %v3702_v47  ;;  %v985_v36 = vadd.f32 %v983_v50, %v980_v21  ;;  %v1052_v60 = vadd.f32 %v1050_v44, %v1047_v33  ;;  %s3715_s24 = sld [smem:[#allocation43_spill]] }
 0x1fb   :  { %v3707_v35 = vstv %s2442_s26  ;;  %v3709_v34 = vstv %s3700_s29  ;;  %v3710_v22 = vstv %s2489_s7  ;;  %v3712_v20 = vstv %s2499_s25  ;;  %s3717_s26 = sld [smem:[#allocation55_spill]] }
 0x1fc   :  { %v769_v2 = vmul.f32 %v3707_v35, %v3033_v56  ;;  %v802_v42 = vmul.f32 %v3709_v34, %v3708_v11  ;;  %v645_v24 = vadd.f32 %v3710_v22, %v642_v14  ;;  %v688_v63 = vadd.f32 %v3712_v20, %v685_v38  ;;  %s3719_s7 = sld [smem:[#allocation49_spill]] }
 0x1fd   :  { %v728_v55 = vadd.f32 %v726_v17, %v723_v41  ;;  %v766_v6 = vadd.f32 %v764_v3, %v2830_v45  ;;  %v3084_v10 = vadd.f32 %v987_v30, %v985_v36  ;;  %v1057_v44 = vadd.f32 %v1055_v58, %v1052_v60  ;;  %s3720_s25 = sld [smem:[#allocation50_spill]] }
 0x1fe   :  { %v804_v50 = vadd.f32 %v802_v42, %v2813_v0  ;;  %v3716_v52 = vstv %s3705_s2  ;;  %v1065_v22 = vmul.f32 %v1064_v37, %v2991_v29  ;;  %v3093_v33 = vmax.f32 %v645_v24, 0.0  ;;  %s3722_s29 = sld [smem:[#allocation54_spill]] }
 0x1ff   :  { %v807_v21 = vmul.f32 %v3716_v52, %v3702_v47  ;;  %v3718_v41 = vstv %s2507_s30  ;;  %v771_v45 = vadd.f32 %v769_v2, %v766_v6  ;;  %v1113_v3 = vsel %vm276_vm1, %v3084_v10, -inf  ;;  %s3212_s30 = sld [smem:[#allocation17 + $0x186]] }
 0x200   :  { %v731_v17 = vadd.f32 %v3718_v41, %v728_v55  ;;  %v1062_v36 = vadd.f32 %v1060_v57, %v1057_v44  ;;  %v3721_v58 = vstv %s3711_s9  ;;  %1114 = vmax.xlane.f32.xlu1 %v1113_v3  ;;  %v3102_v38 = vmax.f32 %v688_v63, 0.0  ;;  %v3728_v55 = vld [vmem:[#allocation59_spill] sm:$0xff]  ;;  %s3745_s2 = sld [smem:[#allocation41_spill]] }
 0x201   :  { %v809_v0 = vadd.f32 %v807_v21, %v804_v50  ;;  %v812_v14 = vmul.f32 %v3721_v58, %v3033_v56  ;;  %v3723_v15 = vstv %s3713_s28  ;;  %v3724_v35 = vstv %s3714_s11  ;;  %s3136_s28 = sld [smem:[#allocation17 + $0x180]] }
 0x202   :  { %v774_v60 = vadd.f32 %v3723_v15, %v771_v45  ;;  %v845_v2 = vmul.f32 %v3724_v35, %v3708_v11  ;;  %v3725_v34 = vstv %s3715_s24  ;;  %v1067_v57 = vadd.f32 %v1065_v22, %v1062_v36  ;;  %s3223_s9 = sld [smem:[#allocation17 + $0x187]]  ;;  %s3768_s24 = smov 128  }
 0x203   :  { %v850_v42 = vmul.f32 %v3725_v34, %v3702_v47  ;;  %v3112_v24 = vmax.f32 %v731_v17, 0.0  ;;  %v814_v20 = vadd.f32 %v812_v14, %v809_v0  ;;  %v3729_v6 = vstv %s3717_s26  ;;  %s3147_s26 = sld [smem:[#allocation17 + $0x181]] }
 0x204   :  { %v883_v44 = vmul.f32 %v3729_v6, %v3728_v55  ;;  %v3117_v63 = vmax.f32 %v774_v60, 0.0  ;;  %v847_v50 = vadd.f32 %v845_v2, %v2824_v49  ;;  %v3730_v52 = vstv %s3719_s7  ;;  %s3755_s3 = sld [smem:[#allocation80_spill]] }
 0x205   :  { %v855_v21 = vmul.f32 %v3730_v52, %v3033_v56  ;;  %v3732_v41 = vstv %s3720_s25  ;;  %v3128_v22 = vadd.f32 %v1069_v62, %v1067_v57  ;;  %v3733_v17 = vstv %s3722_s29  ;;  %s3169_s25 = sld [smem:[#allocation17 + $0x182]] }
 0x206   :  { %v888_v45 = vmul.f32 %v3732_v41, %v3708_v11  ;;  %v817_v3 = vadd.f32 %v3733_v17, %v814_v20  ;;  %v885_v36 = vadd.f32 %v883_v44, %v2800_v7  ;;  %v893_v0 = vmul.f32 %v891_v40, %v3702_v47 }
 0x207   :  { %v852_v49 = vadd.f32 %v850_v42, %v847_v50  ;;  %v898_v58 = vmul.f32 %v896_v19, %v3033_v56  ;;  %v926_v14 = vmul.f32 %v924_v26, %v3728_v55  ;;  %v931_v15 = vmul.f32 %v929_v27, %v3708_v11 }
 0x208   :  { %v1125_v7 = vsel %vm276_vm1, %v3128_v22, -inf  ;;  %v3151_v40 = vmax.f32 %v817_v3, 0.0  ;;  %v890_v60 = vadd.f32 %v888_v45, %v885_v36  ;;  %v936_v19 = vmul.f32 %v934_v28, %v3702_v47 }
 0x209   :  { %1126 = vmax.xlane.f32.xlu0 %v1125_v7  ;;  %v857_v26 = vadd.f32 %v855_v21, %v852_v49  ;;  %v928_v35 = vadd.f32 %v926_v14, %v2807_v59  ;;  %v951_v27 = vmul.f32 %v949_v8, %v3093_v33  ;;  %v954_v11 = vmul.f32 %v952_v16, %v3102_v38 }
 0x20a   :  { %v895_v2 = vadd.f32 %v893_v0, %v890_v60  ;;  %v941_v34 = vmul.f32 %v939_v61, %v3033_v56  ;;  %v959_v28 = vmul.f32 %v957_v13, %v3112_v24  ;;  %v992_v16 = vmul.f32 %v990_v43, %v3093_v33 }
 0x20b   :  { %v860_v59 = vadd.f32 %v858_v51, %v857_v26  ;;  %v933_v47 = vadd.f32 %v931_v15, %v928_v35  ;;  %v956_v8 = vadd.f32 %v954_v11, %v951_v27  ;;  %v964_v57 = vmul.f32 %v962_v53, %v3117_v63 }
 0x20c   :  { %v900_v42 = vadd.f32 %v898_v58, %v895_v2  ;;  %v995_v61 = vmul.f32 %v993_v1, %v3102_v38  ;;  %v969_v20 = vmul.f32 %v967_v23, %v3151_v40  ;;  %v1000_v53 = vmul.f32 %v998_v48, %v3112_v24 }
 0x20d   :  { %v3184_v13 = vmax.f32 %v860_v59, 0.0  ;;  %v938_v56 = vadd.f32 %v936_v19, %v933_v47  ;;  %v961_v51 = vadd.f32 %v959_v28, %v956_v8  ;;  %v1005_v1 = vmul.f32 %v1003_v18, %v3117_v63 }
 0x20e   :  { %v903_v43 = vadd.f32 %v901_v25, %v900_v42  ;;  %v997_v55 = vadd.f32 %v995_v61, %v992_v16  ;;  %v1072_v50 = vstv %s3136_s28  ;;  %v1075_v23 = vstv %s3147_s26  ;;  %s3767_s28 = sld [smem:[#allocation81_spill]] }
 0x20f   :  { %v943_v6 = vadd.f32 %v941_v34, %v938_v56  ;;  %v966_v44 = vadd.f32 %v964_v57, %v961_v51  ;;  %v1074_v21 = vmul.f32 %v1072_v50, %v3093_v33  ;;  %v1077_v48 = vmul.f32 %v1075_v23, %v3102_v38 }
 0x210   :  { %v3203_v25 = vmax.f32 %v903_v43, 0.0  ;;  %v1002_v52 = vadd.f32 %v1000_v53, %v997_v55  ;;  %v3743_v45 = vstv %s2899_s17  ;;  %v3744_v36 = vstv %s3741_s6  ;;  %s3238_s17 = sld [smem:[#allocation19 + $0x3]] }
 0x211   :  { %v946_v18 = vadd.f32 %v944_v39, %v943_v6  ;;  %v971_v41 = vadd.f32 %v969_v20, %v966_v44  ;;  %v974_v17 = vmul.f32 %v3743_v45, %v3184_v13  ;;  %v1010_v0 = vmul.f32 %v3744_v36, %v3151_v40 }
 0x212   :  { %v1007_v3 = vadd.f32 %v1005_v1, %v1002_v52  ;;  %v1079_v49 = vadd.f32 %v1077_v48, %v1074_v21  ;;  %v1080_v58 = vstv %s3169_s25  ;;  %v3746_v39 = vstv %s2910_s5  ;;  %s3763_s5 = smov 120  }
 0x213   :  { %v3218_v14 = vmax.f32 %v946_v18, 0.0  ;;  %v976_v15 = vadd.f32 %v974_v17, %v971_v41  ;;  %v979_v7 = vmul.f32 %v3746_v39, %v3203_v25  ;;  %v1082_v60 = vmul.f32 %v1080_v58, %v3112_v24 }
 0x214   :  { %v1012_v19 = vadd.f32 %v1010_v0, %v1007_v3  ;;  %v3747_v26 = vstv %s3742_s14  ;;  %v1085_v27 = vstv %s3182_s21  ;;  %v3748_v2 = vstv %s2918_s0  ;;  %s3751_s0 = sld [smem:[#allocation42_spill]]  ;;  %s1650_s11 = sshll.u32 %s3767_s28, 4  ;;  %s1651_s11 = int_to_ptr.hbm [resolvable:$true] %s1650_s11 }
 0x215   :  { %v1015_v35 = vmul.f32 %v3747_v26, %v3184_v13  ;;  %v981_v11 = vadd.f32 %v979_v7, %v976_v15  ;;  %v984_v34 = vmul.f32 %v3748_v2, %v3218_v14  ;;  %v1084_v28 = vadd.f32 %v1082_v60, %v1079_v49 }
 0x216   :  { %v1087_v59 = vmul.f32 %v1085_v27, %v3117_v63  ;;  %v3749_v8 = vstv %s3745_s2  ;;  %v1090_v42 = vstv %s3197_s4  ;;  %v1095_v51 = vstv %s3199_s23 }
 0x217   :  { %v1017_v47 = vadd.f32 %v1015_v35, %v1012_v19  ;;  %v1020_v16 = vmul.f32 %v3749_v8, %v3203_v25  ;;  %v986_v57 = vadd.f32 %v984_v34, %v981_v11  ;;  %v1092_v56 = vmul.f32 %v1090_v42, %v3151_v40 }
 0x218   :  { %v1089_v61 = vadd.f32 %v1087_v59, %v1084_v28  ;;  %v3750_v43 = vstv %s2832_s10  ;;  %v1073_v53 = vmul.f32 %v1072_v50, %v2853_v54  ;;  %v1076_v1 = vmul.f32 %v1075_v23, %v2855_v9 }
 0x219   :  { %v1022_v20 = vadd.f32 %v1020_v16, %v1017_v47  ;;  %v1025_v55 = vmul.f32 %v3750_v43, %v3218_v14  ;;  %v3249_v6 = vadd.f32 %v987_v30, %v986_v57  ;;  %v1097_v52 = vmul.f32 %v1095_v51, %v3184_v13 }
 0x21a   :  { %v1094_v44 = vadd.f32 %v1092_v56, %v1089_v61  ;;  %v1100_v21 = vstv %s3212_s30  ;;  %v1078_v41 = vadd.f32 %v1076_v1, %v1073_v53  ;;  %v1081_v45 = vmul.f32 %v1080_v58, %v2867_v4 }
 0x21b   :  { %v1027_v48 = vadd.f32 %v1025_v55, %v1022_v20  ;;  %v1102_v18 = vmul.f32 %v1100_v21, %v3203_v25  ;;  %v1116_v54 = vsel %vm276_vm1, %v3249_v6, -inf  ;;  %v1105_v50 = vstv %s3223_s9 }
 0x21c   :  { %v1099_v9 = vadd.f32 %v1097_v52, %v1094_v44  ;;  %v1086_v30 = vmul.f32 %v1085_v27, %v2892_v31  ;;  %1117 = vmax.xlane.f32.xlu2 %v1116_v54  ;;  %v3752_v23 = vstv %s2843_s19  ;;  %v1083_v3 = vadd.f32 %v1081_v45, %v1078_v41 }
 0x21d   :  { %v3261_v17 = vadd.f32 %v3752_v23, %v1027_v48  ;;  %v3753_v36 = vstv %s2934_s22  ;;  %v3754_v4 = vstv %s2942_s13  ;;  %v1107_v15 = vmul.f32 %v1105_v50, %v3218_v14  ;;  %s3761_s22 = smov 104   ;;  %s3765_s13 = smov 112  }
 0x21e   :  { %v1033_v0 = vmul.f32 %v3753_v36, %v3093_v33  ;;  %v1036_v49 = vmul.f32 %v3754_v4, %v3102_v38  ;;  %v1104_v58 = vadd.f32 %v1102_v18, %v1099_v9  ;;  %v1091_v39 = vmul.f32 %v1090_v42, %v2901_v32 }
 0x21f   :  { %v1122_v31 = vsel %vm276_vm1, %v3261_v17, -inf  ;;  %v1088_v7 = vadd.f32 %v1086_v30, %v1083_v3  ;;  %v3756_v19 = vstv %s3751_s0  ;;  %v1110_v33 = vstv %s3238_s17 }
 0x220   :  { %v1038_v60 = vadd.f32 %v1036_v49, %v1033_v0  ;;  %v1041_v26 = vmul.f32 %v3756_v19, %v3112_v24  ;;  %1123 = vmax.xlane.f32.xlu1 %v1122_v31  ;;  %v1109_v35 = vadd.f32 %v1107_v15, %v1104_v58  ;;  %v1096_v38 = vmul.f32 %v1095_v51, %v2912_v5  ;;  %v3764_v19 = vld [vmem:[#allocation52_spill] sm:$0xff] }
 0x221   :  { %v1093_v27 = vadd.f32 %v1091_v39, %v1088_v7  ;;  %v3757_v32 = vstv %s2959_s15  ;;  %v1101_v59 = vmul.f32 %v1100_v21, %v2944_v12  ;;  %v3758_v24 = vstv %s3755_s3  ;;  %s2117_s15 = smov 16  }
 0x222   :  { %v1043_v11 = vadd.f32 %v1041_v26, %v1038_v60  ;;  %v1046_v2 = vmul.f32 %v3757_v32, %v3117_v63  ;;  %v1112_v34 = vadd.f32 %v1110_v33, %v1109_v35  ;;  %v1051_v8 = vmul.f32 %v3758_v24, %v3151_v40 }
 0x223   :  { %v1098_v28 = vadd.f32 %v1096_v38, %v1093_v27  ;;  %v1106_v5 = vmul.f32 %v1105_v50, %v2991_v29  ;;  %v3759_v61 = vstv %s2971_s27  ;;  %v3760_v20 = vstv %s2981_s18  ;;  %s2118_s18 = smov 24   ;;  %s2119_s27 = smov [#allocation20]  }
 0x224   :  { %v1048_v47 = vadd.f32 %v1046_v2, %v1043_v11  ;;  %v1134_v16 = vsel %vm276_vm1, %v1112_v34, -inf  ;;  %v1056_v63 = vmul.f32 %v3759_v61, %v3184_v13  ;;  %v1061_v12 = vmul.f32 %v3760_v20, %v3203_v25  ;;  %v3762_v13 = vld [vmem:[#allocation48_spill] sm:$0xff]  ;;  %s1648_s1 = sshll.u32 %s2119_s27, 4  ;;  %s1649_s1 = int_to_ptr.vmem [resolvable:$true] %s1648_s1 }
 0x225   :  { %1135 = vmax.xlane.f32.xlu0 %v1134_v16  ;;  %v1103_v42 = vadd.f32 %v1101_v59, %v1098_v28  ;;  %v1066_v40 = vmul.f32 %v1064_v37, %v3218_v14 }
 0x226   :  { %v1053_v57 = vadd.f32 %v1051_v8, %v1048_v47  ;;  %v1827_v47 = vpack.i.bf16 %v3764_v19, %v3762_v13 }
 0x227   :  { %v1108_v56 = vadd.f32 %v1106_v5, %v1103_v42 }
 0x228   :  { %v1058_v51 = vadd.f32 %v1056_v63, %v1053_v57 }
 0x229   :  { %v1111_v43 = vadd.f32 %v1110_v33, %v1108_v56 }
 0x22a   :  { %v1063_v55 = vadd.f32 %v1061_v12, %v1058_v51 }
 0x22b   :  { %v1131_v53 = vsel %vm276_vm1, %v1111_v43, -inf }
 0x22c   :  { %v1068_v1 = vadd.f32 %v1066_v40, %v1063_v55  ;;  %1132 = vmax.xlane.f32.xlu2 %v1131_v53 }
 0x22e   :  { %v1071_v29 = vadd.f32 %v1069_v62, %v1068_v1 }
 0x230   :  { %v1128_v44 = vsel %vm276_vm1, %v1071_v29, -inf }
 0x234   :  { %1129 = vmax.xlane.f32.xlu2 %v1128_v44 }
 0x239   :  { %1457 = vrot.lane.b32.xlu1 %v3762_v13, %s3761_s22 }
 0x24c   :  { %1352 = vrot.lane.b32.xlu2 %v3762_v13, %s3763_s5 }
 0x26b   :  { %v1121_v25 = vpop.xlane.xlu0 %1120 }
 0x26c   :  { %v1139_v52 = vsub.f32 %v3045_v46, %v1121_v25 }
 0x26e   :  { %v1149_v21 = vmul.f32 1.442695, %v1139_v52 }
 0x270   :  { %1832 = vpow2.f32 %v1149_v21 }
 0x273   :  { %v1115_v37 = vpop.xlane.xlu1 %1114 }
 0x274   :  { %v1137_v14 = vsub.f32 %v3084_v10, %v1115_v37 }
 0x276   :  { %v1145_v48 = vmul.f32 1.442695, %v1137_v14  ;;  %v3306_v18 = vpop.eup %1832 }
 0x277   :  { %v1167_v41 = vsel %vm276_vm1, %v3306_v18, 0.0 }
 0x278   :  { %1834 = vpow2.f32 %v1145_v48  ;;  %1168 = vadd.xlane.f32.xlu1 %v1167_v41 }
 0x27c   :  { %v1127_v62 = vpop.xlane.xlu0 %1126 }
 0x27d   :  { %v1141_v45 = vsub.f32 %v3128_v22, %v1127_v62 }
 0x27e   :  { %v3311_v9 = vpop.eup %1834 }
 0x27f   :  { %v1153_v54 = vmul.f32 1.442695, %v1141_v45  ;;  %v1161_v46 = vsel %vm276_vm1, %v3311_v9, 0.0 }
 0x280   :  { %1162 = vadd.xlane.f32.xlu2 %v1161_v46 }
 0x281   :  { %1836 = vpow2.f32 %v1153_v54 }
 0x287   :  { %v3315_v10 = vpop.eup %1836 }
 0x288   :  { %v1173_v50 = vsel %vm276_vm1, %v3315_v10, 0.0 }
 0x289   :  { %1174 = vadd.xlane.f32.xlu2 %v1173_v50 }
 0x28f   :  { %v1118_v30 = vpop.xlane.xlu2 %1117 }
 0x290   :  { %v1138_v23 = vsub.f32 %v3249_v6, %v1118_v30 }
 0x292   :  { %v1147_v3 = vmul.f32 1.442695, %v1138_v23 }
 0x293   :  { %v1124_v22 = vpop.xlane.xlu1 %1123 }
 0x294   :  { %v1140_v36 = vsub.f32 %v3261_v17, %v1124_v22  ;;  %1838 = vpow2.f32 %v1147_v3 }
 0x296   :  { %v1151_v0 = vmul.f32 1.442695, %v1140_v36 }
 0x298   :  { %v1136_v4 = vpop.xlane.xlu0 %1135  ;;  %1840 = vpow2.f32 %v1151_v0 }
 0x299   :  { %v1144_v58 = vsub.f32 %v1112_v34, %v1136_v4 }
 0x29a   :  { %v3321_v49 = vpop.eup %1838 }
 0x29b   :  { %v1164_v15 = vsel %vm276_vm1, %v3321_v49, 0.0  ;;  %v1159_v39 = vmul.f32 1.442695, %v1144_v58 }
 0x29c   :  { %1165 = vadd.xlane.f32.xlu0 %v1164_v15 }
 0x29d   :  { %1842 = vpow2.f32 %v1159_v39 }
 0x29e   :  { %v3325_v60 = vpop.eup %1840 }
 0x29f   :  { %v1133_v31 = vpop.xlane.xlu2 %1132  ;;  %v1170_v17 = vsel %vm276_vm1, %v3325_v60, 0.0 }
 0x2a0   :  { %v1143_v7 = vsub.f32 %v1111_v43, %v1133_v31 }
 0x2a1   :  { %1379 = vrot.lane.b32.xlu2 %v3764_v19, %s3763_s5 }
 0x2a2   :  { %v1157_v6 = vmul.f32 1.442695, %v1143_v7 }
 0x2a3   :  { %v3331_v33 = vpop.eup %1842 }
 0x2a4   :  { %1844 = vpow2.f32 %v1157_v6  ;;  %1171 = vadd.xlane.f32.xlu0 %v1170_v17  ;;  %v1182_v32 = vsel %vm276_vm1, %v3331_v33, 0.0 }
 0x2a7   :  { %v1130_v26 = vpop.xlane.xlu2 %1129 }
 0x2a8   :  { %v1142_v35 = vsub.f32 %v1071_v29, %v1130_v26 }
 0x2aa   :  { %v3333_v27 = vpop.eup %1844  ;;  %v1155_v38 = vmul.f32 1.442695, %v1142_v35 }
 0x2ab   :  { %v1179_v11 = vsel %vm276_vm1, %v3333_v27, 0.0  ;;  %v1458_v2 = vpop.permute.xlu1 %1457 }
 0x2ac   :  { %1846 = vpow2.f32 %v1155_v38  ;;  %1180 = vadd.xlane.f32.xlu1 %v1179_v11  ;;  %1183 = vadd.xlane.f32.xlu0 %v1182_v32 }
 0x2af   :  { %v1353_v34 = vpop.permute.xlu2 %1352 }
 0x2b0   :  { %1373 = vmatpush.msra.mxu3 %v1353_v34 }
 0x2b2   :  { %1478 = vmatpush.msrb.mxu3 %v1458_v2  ;;  %v3339_v28 = vpop.eup %1846 }
 0x2b3   :  { %v1176_v59 = vsel %vm276_vm1, %v3339_v28, 0.0 }
 0x2b4   :  { %1177 = vadd.xlane.f32.xlu1 %v1176_v59 }
 0x2c0   :  { %1828 = vrot.lane.b32.xlu0 %v1827_v47, %s3765_s13 }
 0x2cd   :  { %1483 = vrot.lane.b32.xlu1 %v3764_v19, %s3761_s22 }
 0x2eb   :  { %v1169_v24 = vpop.xlane.xlu1 %1168 }
 0x2ec   :  { %1848 = vrcp.f32 %v1169_v24  ;;  %vm1218_vm4 = vweird.f32 %v1169_v24  ;;  %v1224_v40 = vand.u32 2147483648, %v1169_v24  ;;  %v1222_v29 = vand.u32 2147483647, %v1169_v24 }
 0x2ee   :  { %v1225_v52 = vor.u32 1.1754944e-38, %v1224_v40  ;;  %vm1223_vm9 = vcmp.eq.f32.partialorder %v1222_v29, 8.507059e+37 }
 0x2f2   :  { %v1849_v16 = vpop.eup %1848 }
 0x2f3   :  { %v1163_v8 = vpop.xlane.xlu2 %1162  ;;  %v1214_v42 = vmul.f32 %v1849_v16, %v1169_v24  ;;  %vm1219_vm2 = vweird.f32 %v1849_v16 }
 0x2f4   :  { %1850 = vrcp.f32 %v1163_v8  ;;  %v1196_v55 = vand.u32 2147483648, %v1163_v8  ;;  %vm1190_vm5 = vweird.f32 %v1163_v8  ;;  %v1194_v1 = vand.u32 2147483647, %v1163_v8  ;;  %vm1220_vm6 = vmor %vm1218_vm4, %vm1219_vm2 }
 0x2f5   :  { %v1215_v57 = vsub.f32 1.0, %v1214_v42 }
 0x2f6   :  { %v1197_v25 = vor.u32 1.1754944e-38, %v1196_v55  ;;  %vm1195_vm8 = vcmp.eq.f32.partialorder %v1194_v1, 8.507059e+37 }
 0x2f7   :  { %v1216_v51 = vmul.f32 %v1849_v16, %v1215_v57 }
 0x2f9   :  { %v1217_v43 = vadd.f32 %v1849_v16, %v1216_v51 }
 0x2fa   :  { %v1851_v5 = vpop.eup %1850 }
 0x2fb   :  { %v1186_v61 = vmul.f32 %v1851_v5, %v1163_v8  ;;  %vm1191_vm3 = vweird.f32 %v1851_v5  ;;  %v1221_v13 = vsel %vm1220_vm6, %v1849_v16, %v1217_v43 }
 0x2fc   :  { %v3348_v63 = vpop.xlane.xlu2 %1174  ;;  %vm1192_vm7 = vmor %vm1190_vm5, %vm1191_vm3  ;;  %v1226_v37 = vsel %vm1223_vm9, %v1225_v52, %v1221_v13 }
 0x2fd   :  { %v1187_v56 = vsub.f32 1.0, %v1186_v61  ;;  %v1299_v62 = vmul.f32 %v3306_v18, %v1226_v37  ;;  %v1252_v57 = vand.u32 2147483648, %v3348_v63  ;;  %vm1246_vm6 = vweird.f32 %v3348_v63 }
 0x2fe   :  { %v1250_v51 = vand.u32 2147483647, %v3348_v63 }
 0x2ff   :  { %v1188_v20 = vmul.f32 %v1851_v5, %v1187_v56  ;;  %1797 = vmatmul.msk.f32.vlgmr.msra.gmra.mxu3 %vm276_vm1, %v1299_v62  ;;  %v1253_v40 = vor.u32 1.1754944e-38, %v1252_v57 }
 0x301   :  { %v1189_v12 = vadd.f32 %v1851_v5, %v1188_v20 }
 0x303   :  { %v1193_v44 = vsel %vm1192_vm7, %v1851_v5, %v1189_v12 }
 0x304   :  { %v1380_v53 = vpop.permute.xlu2 %1379  ;;  %v1198_v21 = vsel %vm1195_vm8, %v1197_v25, %v1193_v44 }
 0x305   :  { %1400 = vmatpush.msrb.mxu0 %v1380_v53  ;;  %v1297_v48 = vmul.f32 %v3311_v9, %v1198_v21 }
 0x307   :  { %1795 = vmatmul.msk.f32.vlgmr.msra.gmra.mxu1 %vm276_vm1, %v1297_v48 }
 0x30f   :  { %v1166_v14 = vpop.xlane.xlu0 %1165 }
 0x310   :  { %1852 = vrcp.f32 %v1166_v14  ;;  %v1210_v30 = vand.u32 2147483648, %v1166_v14  ;;  %v1208_v9 = vand.u32 2147483647, %v1166_v14  ;;  %vm1204_vm11 = vweird.f32 %v1166_v14 }
 0x311   :  { %1854 = vrcp.f32 %v3348_v63 }
 0x312   :  { %v1211_v36 = vor.u32 1.1754944e-38, %v1210_v30  ;;  %vm1209_vm13 = vcmp.eq.f32.partialorder %v1208_v9, 8.507059e+37 }
 0x316   :  { %v1853_v41 = vpop.eup %1852 }
 0x317   :  { %v1200_v45 = vmul.f32 %v1853_v41, %v1166_v14  ;;  %v1172_v54 = vpop.xlane.xlu0 %1171  ;;  %v3355_v50 = vpop.eup %1854  ;;  %vm1205_vm10 = vweird.f32 %v1853_v41 }
 0x318   :  { %1856 = vrcp.f32 %v1172_v54  ;;  %v1242_v18 = vmul.f32 %v3355_v50, %v3348_v63  ;;  %vm1206_vm12 = vmor %vm1204_vm11, %vm1205_vm10  ;;  %v1238_v6 = vand.u32 2147483648, %v1172_v54  ;;  %v1236_v26 = vand.u32 2147483647, %v1172_v54 }
 0x319   :  { %v1201_v46 = vsub.f32 1.0, %v1200_v45  ;;  %vm1232_vm15 = vweird.f32 %v1172_v54  ;;  %vm1247_vm4 = vweird.f32 %v3355_v50  ;;  %vm1251_vm11 = vcmp.eq.f32.partialorder %v1250_v51, 8.507059e+37 }
 0x31a   :  { %v1243_v31 = vsub.f32 1.0, %v1242_v18  ;;  %v1239_v32 = vor.u32 1.1754944e-38, %v1238_v6  ;;  %vm1237_vm3 = vcmp.eq.f32.partialorder %v1236_v26, 8.507059e+37  ;;  %vm1248_vm7 = vmor %vm1246_vm6, %vm1247_vm4  ;;  %v1543_v6 = vld [vmem:[#allocation13 + $0x10] sm:$0xff]  ;;  %vm1535_vm6 = vcmask 130048  }
 0x31b   :  { %v1202_v23 = vmul.f32 %v1853_v41, %v1201_v46 }
 0x31c   :  { %v1244_v38 = vmul.f32 %v3355_v50, %v1243_v31 }
 0x31d   :  { %v1203_v3 = vadd.f32 %v1853_v41, %v1202_v23 }
 0x31e   :  { %v1857_v22 = vpop.eup %1856  ;;  %v1245_v16 = vadd.f32 %v3355_v50, %v1244_v38 }
 0x31f   :  { %v1181_v0 = vpop.xlane.xlu1 %1180  ;;  %v1207_v4 = vsel %vm1206_vm12, %v1853_v41, %v1203_v3  ;;  %v1228_v58 = vmul.f32 %v1857_v22, %v1172_v54  ;;  %v3359_v15 = vpop.xlane.xlu0 %1183  ;;  %vm1233_vm14 = vweird.f32 %v1857_v22 }
 0x320   :  { %1858 = vrcp.f32 %v1181_v0  ;;  %v1212_v39 = vsel %vm1209_vm13, %v1211_v36, %v1207_v4  ;;  %vm1234_vm2 = vmor %vm1232_vm15, %vm1233_vm14  ;;  %v1280_v42 = vand.u32 2147483648, %v1181_v0  ;;  %v1278_v56 = vand.u32 2147483647, %v1181_v0 }
 0x321   :  { %v1229_v7 = vsub.f32 1.0, %v1228_v58  ;;  %1860 = vrcp.f32 %v3359_v15  ;;  %v1298_v17 = vmul.f32 %v3321_v49, %v1212_v39  ;;  %vm1274_vm8 = vweird.f32 %v1181_v0 }
 0x322   :  { %v1249_v55 = vsel %vm1248_vm7, %v3355_v50, %v1245_v16  ;;  %vm1279_vm10 = vcmp.eq.f32.partialorder %v1278_v56, 8.507059e+37  ;;  %v1294_v46 = vand.u32 2147483648, %v3359_v15  ;;  %v1292_v50 = vand.u32 2147483647, %v3359_v15  ;;  %v1869_v56 = vld [vmem:[#allocation2 + $0x8] sm:$0xff] }
 0x323   :  { %v1230_v19 = vmul.f32 %v1857_v22, %v1229_v7  ;;  %1796 = vmatmul.msk.f32.vlgmr.msrb.gmra.mxu2 %vm276_vm1, %v1298_v17  ;;  %v1254_v44 = vsel %vm1251_vm11, %v1253_v40, %v1249_v55  ;;  %v1542_v17 = vld [vmem:[#allocation13 + $0x8] sm:$0xff]  ;;  %vm1538_vm7 = vcmask 195584  }
 0x324   :  { %v1301_v41 = vmul.f32 %v3315_v10, %v1254_v44  ;;  %v1295_v18 = vor.u32 1.1754944e-38, %v1294_v46 }
 0x325   :  { %v1231_v11 = vadd.f32 %v1857_v22, %v1230_v19  ;;  %v1541_v19 = vld [vmem:[#allocation13] sm:$0xff] }
 0x326   :  { %v1859_v35 = vpop.eup %1858 }
 0x327   :  { %v1270_v2 = vmul.f32 %v1859_v35, %v1181_v0  ;;  %v1178_v34 = vpop.xlane.xlu1 %1177  ;;  %v3365_v59 = vpop.eup %1860  ;;  %v1235_v47 = vsel %vm1234_vm2, %v1857_v22, %v1231_v11  ;;  %vm1275_vm5 = vweird.f32 %v1859_v35  ;;  %vm1288_vm2 = vweird.f32 %v3359_v15 }
 0x328   :  { %1862 = vrcp.f32 %v1178_v34  ;;  %v1240_v49 = vsel %vm1237_vm3, %v1239_v32, %v1235_v47  ;;  %v1284_v8 = vmul.f32 %v3365_v59, %v3359_v15  ;;  %vm1276_vm9 = vmor %vm1274_vm8, %vm1275_vm5  ;;  %v1266_v52 = vand.u32 2147483648, %v1178_v34 }
 0x329   :  { %v1271_v24 = vsub.f32 1.0, %v1270_v2  ;;  %v1300_v5 = vmul.f32 %v3325_v60, %v1240_v49  ;;  %v1281_v60 = vor.u32 1.1754944e-38, %v1280_v42  ;;  %v1264_v37 = vand.u32 2147483647, %v1178_v34  ;;  %v1868_v42 = vld [vmem:[#allocation2] sm:$0xff] }
 0x32a   :  { %v1285_v12 = vsub.f32 1.0, %v1284_v8  ;;  %vm1289_vm13 = vweird.f32 %v3365_v59  ;;  %vm1260_vm14 = vweird.f32 %v1178_v34  ;;  %vm1293_vm5 = vcmp.eq.f32.partialorder %v1292_v50, 8.507059e+37 }
 0x32b   :  { %v1272_v61 = vmul.f32 %v1859_v35, %v1271_v24  ;;  %1798 = vmatmul.msk.f32.vlgmr.msrb.gmra.mxu0 %vm276_vm1, %v1300_v5  ;;  %vm1265_vm3 = vcmp.eq.f32.partialorder %v1264_v37, 8.507059e+37  ;;  %vm1290_vm4 = vmor %vm1288_vm2, %vm1289_vm13 }
 0x32c   :  { %v1286_v63 = vmul.f32 %v3365_v59, %v1285_v12 }
 0x32d   :  { %v1273_v20 = vadd.f32 %v1859_v35, %v1272_v61 }
 0x32e   :  { %v1863_v43 = vpop.eup %1862  ;;  %v1287_v45 = vadd.f32 %v3365_v59, %v1286_v63 }
 0x32f   :  { %v1277_v53 = vsel %vm1276_vm9, %v1859_v35, %v1273_v20  ;;  %v1256_v1 = vmul.f32 %v1863_v43, %v1178_v34  ;;  %vm1261_vm12 = vweird.f32 %v1863_v43 }
 0x330   :  { %v1282_v29 = vsel %vm1279_vm10, %v1281_v60, %v1277_v53  ;;  %vm1262_vm15 = vmor %vm1260_vm14, %vm1261_vm12  ;;  %v1291_v23 = vsel %vm1290_vm4, %v3365_v59, %v1287_v45 }
 0x331   :  { %v1257_v13 = vsub.f32 1.0, %v1256_v1  ;;  %v1303_v25 = vmul.f32 %v3333_v27, %v1282_v29  ;;  %v1267_v27 = vor.u32 1.1754944e-38, %v1266_v52  ;;  %v1296_v3 = vsel %vm1293_vm5, %v1295_v18, %v1291_v23 }
 0x332   :  { %v1829_v14 = vpop.permute.xlu0 %1828  ;;  %v1304_v36 = vmul.f32 %v3331_v33, %v1296_v3  ;;  %v1544_v33 = vld [vmem:[#allocation13 + $0x18] sm:$0xff] }
 0x333   :  { %v1258_v21 = vmul.f32 %v1863_v43, %v1257_v13  ;;  %1801 = vmatmul.msk.f32.vlgmr.msrb.gmra.mxu3 %vm276_vm1, %v1303_v25  ;;  %v1831_v48 = vunpack.i.h.bf16 %v1829_v14  ;;  %v1830_v62 = vunpack.i.l.bf16 %v1829_v14 }
 0x335   :  { %v1259_v54 = vadd.f32 %v1863_v43, %v1258_v21  ;;  %1426 = vmatpush.msrb.mxu1 %v1830_v62  ;;  %1452 = vmatpush.msra.mxu2 %v1831_v48 }
 0x336   :  { %1799 = vmatmul.msk.f32.vlgmr.msrb.gmra.mxu1 %vm276_vm1, %v1301_v41 }
 0x337   :  { %v1263_v30 = vsel %vm1262_vm15, %v1863_v43, %v1259_v54  ;;  %1563 = vmatpush.msra.mxu1 %v1544_v33 }
 0x338   :  { %v1268_v10 = vsel %vm1265_vm3, %v1267_v27, %v1263_v30 }
 0x339   :  { %v1302_v9 = vmul.f32 %v3339_v28, %v1268_v10  ;;  %1564 = vmatpush.msra.mxu1 %v1543_v6 }
 0x33b   :  { %1800 = vmatmul.msk.f32.vlgmr.msra.gmra.mxu2 %vm276_vm1, %v1302_v9  ;;  %1565 = vmatpush.msra.mxu1 %v1542_v17 }
 0x33d   :  { %1566 = vmatpush.msra.mxu1 %v1541_v19 }
 0x33f   :  { %v1484_v22 = vpop.permute.xlu1 %1483 }
 0x340   :  { %1504 = vmatpush.msra.mxu0 %v1484_v22 }
 0x341   :  { %1802 = vmatmul.msk.f32.vlgmr.msra.gmra.mxu0 %vm276_vm1, %v1304_v36 }
 0x382   :  { %v1375_v0 = vpop.f32.mrf.mxu3 }
 0x383   :  { %1511 = vrot.lane.b32.xlu0 %v1375_v0, %s3766_s12 }
 0x384   :  { %v1325_v58 = vpop.f32.mrf.mxu1 }
 0x3a6   :  { %v1348_v28 = vpop.f32.mrf.mxu2 }
 0x3a8   :  { %v1402_v4 = vpop.f32.mrf.mxu0 }
 0x3a9   :  { %1513 = vrot.lane.b32.xlu0 %v1402_v4, %s3766_s12 }
 0x3b3   :  { %v1428_v15 = vpop.f32.mrf.mxu1 }
 0x3b4   :  { %1519 = vrot.lane.b32.xlu2 %v1428_v15, %s2117_s15 }
 0x3b6   :  { %v1480_v39 = vpop.f32.mrf.mxu3 }
 0x3b7   :  { %1527 = vrot.lane.b32.xlu1 %v1480_v39, %s2118_s18 }
 0x3be   :  { %v1506_v31 = vpop.f32.mrf.mxu0  ;;  %v1454_v7 = vpop.f32.mrf.mxu2 }
 0x3bf   :  { %1529 = vrot.lane.b32.xlu1 %v1506_v31, %s2118_s18  ;;  %1521 = vrot.lane.b32.xlu2 %v1454_v7, %s2117_s15 }
 0x3f5   :  { %v1512_v26 = vpop.permute.xlu0 %1511 }
 0x3f6   :  { %v1533_v38 = vsel %vm276_vm1, %v1325_v58, %v1512_v26 }
 0x40e   :  { %v1520_v35 = vpop.permute.xlu2 %1519 }
 0x40f   :  { %v1536_v11 = vsel %vm1535_vm6, %v1533_v38, %v1520_v35 }
 0x419   :  { %v1522_v47 = vpop.permute.xlu2 %1521 }
 0x41b   :  { %v1514_v34 = vpop.permute.xlu0 %1513 }
 0x41c   :  { %v1534_v59 = vsel %vm276_vm1, %v1348_v28, %v1514_v34 }
 0x41d   :  { %v1537_v24 = vsel %vm1535_vm6, %v1534_v59, %v1522_v47 }
 0x429   :  { %v1528_v32 = vpop.permute.xlu1 %1527 }
 0x42a   :  { %v1539_v2 = vsel %vm1538_vm7, %v1536_v11, %v1528_v32 }
 0x42b   :  { %1803 = vmatmul.msk.f32.vlgmr.msra.gmra.mxu1 %vm184_vm0, %v1539_v2 }
 0x431   :  { %v1530_v49 = vpop.permute.xlu1 %1529 }
 0x432   :  { %v1540_v8 = vsel %vm1538_vm7, %v1537_v24, %v1530_v49 }
 0x433   :  { %1804 = vmatmul.msk.f32.gmra.mxu1 %vm184_vm0, %v1540_v8 }
 0x4a8   :  { %v1568_v16 = vpop.f32.mrf.mxu1 }
 0x4a9   :  { %v1569_v5 = vadd.f32 %v1868_v42, %v1568_v16 }
 0x4ab   :  { %v1574_v57 = vsel %vm184_vm0, %v1569_v5, 0.0 }
 0x4ac   :  { %1575 = vadd.xlane.f32.xlu0 %v1574_v57 }
 0x4b0   :  { %v1571_v61 = vpop.f32.mrf.mxu1 }
 0x4b1   :  { %v1572_v51 = vadd.f32 %v1869_v56, %v1571_v61 }
 0x4b3   :  { %v1577_v20 = vsel %vm184_vm0, %v1572_v51, 0.0 }
 0x4b4   :  { %1578 = vadd.xlane.f32.xlu2 %v1577_v20 }
 0x51f   :  { %v1576_v12 = vpop.xlane.xlu0 %1575 }
 0x520   :  { %v1580_v43 = vrot.slane %v1576_v12, 4 }
 0x522   :  { %v1581_v55 = vadd.f32 %v1580_v43, %v1576_v12 }
 0x524   :  { %v1582_v60 = vrot.slane %v1581_v55, 2 }
 0x526   :  { %v1583_v40 = vadd.f32 %v1582_v60, %v1581_v55 }
 0x527   :  { %v1579_v53 = vpop.xlane.xlu2 %1578 }
 0x528   :  { %v1584_v1 = vrot.slane %v1583_v40, 1  ;;  %v1586_v29 = vrot.slane %v1579_v53, 4 }
 0x52a   :  { %v1585_v44 = vadd.f32 %v1584_v1, %v1583_v40  ;;  %v1587_v63 = vadd.f32 %v1586_v29, %v1579_v53 }
 0x52c   :  { %v1592_v13 = vmul.f32 0.00390625, %v1585_v44  ;;  %v1588_v25 = vrot.slane %v1587_v63, 2 }
 0x52e   :  { %v1589_v52 = vadd.f32 %v1588_v25, %v1587_v63  ;;  %v1594_v21 = vsub.f32 %v1569_v5, %v1592_v13 }
 0x530   :  { %v1590_v37 = vrot.slane %v1589_v52, 1  ;;  %v1596_v14 = vmul.f32 %v1594_v21, %v1594_v21 }
 0x532   :  { %v1591_v48 = vadd.f32 %v1590_v37, %v1589_v52  ;;  %v1598_v62 = vsel %vm184_vm0, %v1596_v14, 0.0 }
 0x533   :  { %1599 = vadd.xlane.f32.xlu1 %v1598_v62 }
 0x534   :  { %v1593_v41 = vmul.f32 0.00390625, %v1591_v48 }
 0x536   :  { %v1595_v45 = vsub.f32 %v1572_v51, %v1593_v41 }
 0x538   :  { %v1597_v54 = vmul.f32 %v1595_v45, %v1595_v45 }
 0x53a   :  { %v1601_v46 = vsel %vm184_vm0, %v1597_v54, 0.0 }
 0x53b   :  { %1602 = vadd.xlane.f32.xlu0 %v1601_v46 }
 0x5a6   :  { %v1600_v27 = vpop.xlane.xlu1 %1599 }
 0x5a7   :  { %v1604_v50 = vrot.slane %v1600_v27, 4 }
 0x5a9   :  { %v1605_v30 = vadd.f32 %v1604_v50, %v1600_v27 }
 0x5ab   :  { %v1606_v10 = vrot.slane %v1605_v30, 2 }
 0x5ad   :  { %v1607_v23 = vadd.f32 %v1606_v10, %v1605_v30 }
 0x5ae   :  { %v1603_v9 = vpop.xlane.xlu0 %1602 }
 0x5af   :  { %v1608_v18 = vrot.slane %v1607_v23, 1  ;;  %v1610_v3 = vrot.slane %v1603_v9, 4 }
 0x5b1   :  { %v1609_v22 = vadd.f32 %v1608_v18, %v1607_v23  ;;  %v1611_v36 = vadd.f32 %v1610_v3, %v1603_v9 }
 0x5b3   :  { %v1616_v0 = vmul.f32 0.003921569, %v1609_v22  ;;  %v1612_v4 = vrot.slane %v1611_v36, 2 }
 0x5b5   :  { %v1618_v58 = vadd.f32 1e-05, %v1616_v0  ;;  %v1613_v15 = vadd.f32 %v1612_v4, %v1611_v36 }
 0x5b7   :  { %1864 = vrsqrt.f32 %v1618_v58  ;;  %v1614_v28 = vrot.slane %v1613_v15, 1  ;;  %vm1626_vm8 = vweird.f32 %v1618_v58 }
 0x5b9   :  { %v1615_v39 = vadd.f32 %v1614_v28, %v1613_v15 }
 0x5bb   :  { %v1617_v31 = vmul.f32 0.003921569, %v1615_v39 }
 0x5bd   :  { %v1865_v7 = vpop.eup %1864  ;;  %v1619_v33 = vadd.f32 1e-05, %v1617_v31 }
 0x5be   :  { %v1621_v6 = vmul.f32 %v1865_v7, %v1618_v58  ;;  %vm1627_vm1 = vweird.f32 %v1865_v7 }
 0x5bf   :  { %1866 = vrsqrt.f32 %v1619_v33  ;;  %vm1628_vm9 = vmor %vm1626_vm8, %vm1627_vm1  ;;  %vm1636_vm11 = vweird.f32 %v1619_v33 }
 0x5c0   :  { %v1622_v17 = vmul.f32 %v1865_v7, %v1621_v6 }
 0x5c2   :  { %v1623_v19 = vmul.f32 0.5, %v1622_v17 }
 0x5c4   :  { %v1624_v26 = vsub.f32 1.5, %v1623_v19 }
 0x5c5   :  { %v1867_v35 = vpop.eup %1866 }
 0x5c6   :  { %v1631_v38 = vmul.f32 %v1867_v35, %v1619_v33  ;;  %v1625_v11 = vmul.f32 %v1865_v7, %v1624_v26  ;;  %vm1637_vm10 = vweird.f32 %v1867_v35 }
 0x5c7   :  { %vm1638_vm12 = vmor %vm1636_vm11, %vm1637_vm10 }
 0x5c8   :  { %v1632_v32 = vmul.f32 %v1867_v35, %v1631_v38  ;;  %v1629_v2 = vsel %vm1628_vm9, %v1865_v7, %v1625_v11 }
 0x5c9   :  { %v1640_v34 = vmul.f32 %v1629_v2, %v1594_v21 }
 0x5ca   :  { %v1633_v59 = vmul.f32 0.5, %v1632_v32 }
 0x5cb   :  { %1642 = vst.msk [vmem:[#allocation20] sm:$0xff] %vm184_vm0, %v1640_v34 }
 0x5cc   :  { %v1634_v47 = vsub.f32 1.5, %v1633_v59 }
 0x5ce   :  { %v1635_v49 = vmul.f32 %v1867_v35, %v1634_v47 }
 0x5d0   :  { %v1639_v24 = vsel %vm1638_vm12, %v1867_v35, %v1635_v49 }
 0x5d1   :  { %v1641_v8 = vmul.f32 %v1639_v24, %v1595_v45 }
 0x5d3   :  { %1643 = vst.msk [vmem:[#allocation20 + $0x8] sm:$0xff] %vm184_vm0, %v1641_v8 }
 0x5d4   :  { %1656 = dma.vmem_to_hbm [thread:$0]  %s1649_s1, 256, %s1651_s11, [#allocation4], %s3768_s24, %s3768_s24, %s3766_s12  }
 0x5d5   :  { %2100 = dma.done.wait [#allocation4], 256  }
 0x5d6   :  { %2101 = vsyncadd [#allocation4], 4294967040 }
 0x5d7   :  { %1661 = vsyncpa [#allocation3], 1 }
 0x5d8   :  { %1662 = vsyncpa [#allocation8], 1 }
 0x5d9   :  { %1663 = vsyncpa [#allocation11], 1 }
 0x5da   :  { %1664 = vsyncpa [#allocation14], 1 }
 0x5db   :  { %1665 = vsyncpa [#allocation4], 1 }
 0x5dc   :  { %1666 = vsyncpa [#allocation5], 1 }
 0x5dd   :  { %1667 = vsyncpa [#allocation6], 1 }
 0x5de   :  { %1668 = vsyncpa [#allocation18], 1 }

</bundles_post_ra>
